<compile_context>
chip_gen: v5e
topology: v5e:2x2
jax: 0.10.0
libtpu: 0.0.40
codegen_flags: <defaults>
</compile_context>

<pallas_src>
import functools

import jax
import jax.numpy as jnp
from jax.experimental import pallas as pl
from jax.experimental.pallas import tpu as pltpu

EPS_GEM = 1e-6    # GeM eps
EPS_L2 = 1e-12    # torch F.normalize default eps


def siamese_fused_kernel(x_ref, w_ref, b_ref, o_ref, *, H, W, p, pad_rows):
    # x_ref: (bt, pad + H*W + pad, Cin)  bf16  -- zero rows at both ends
    # w_ref: (9, Cin, Cout)              bf16  -- 3x3 taps, row-major (kh, kw)
    # b_ref: (1, Cout)                   f32
    # o_ref: (1, bt, Cout)               f32
    bt = x_ref.shape[0]
    cout = o_ref.shape[-1]
    HW = H * W
    bias = b_ref[...]                                        # (1, Cout) f32

    # Horizontal-validity masks (f32 0/1), shared by all images / taps.
    # Applied to the f32 dot result (mask is per output row), so no bf16 VPU ops.
    col = jax.lax.broadcasted_iota(jnp.int32, (HW, 1), 0) % W
    left_ok = (col >= 1).astype(jnp.float32)                 # tap dw = -1
    right_ok = (col <= W - 2).astype(jnp.float32)            # tap dw = +1

    row_sel = jax.lax.broadcasted_iota(jnp.int32, (bt, 1), 0)
    out_rows = jnp.zeros((bt, cout), jnp.float32)

    for b in range(bt):                                      # static unroll
        # ---- backbone: 3x3 conv as 9 shifted dots (bf16 MXU, f32 acc) ----
        acc = jnp.zeros((HW, cout), jnp.float32)
        for dh in (-1, 0, 1):
            for dw in (-1, 0, 1):
                k = (dh + 1) * 3 + (dw + 1)
                start = pad_rows + dh * W + dw
                shifted = x_ref[b, start:start + HW, :]      # (HW, Cin) bf16
                part = jnp.dot(shifted, w_ref[k],
                               preferred_element_type=jnp.float32)
                if dw == -1:
                    part = part * left_ok
                elif dw == 1:
                    part = part * right_ok
                acc = acc + part
        feat = jnp.maximum(acc + bias, 0.0)                  # bias + ReLU (f32)

        # ---- GeM pooling over the full spatial extent ----
        clamped = jnp.maximum(feat, EPS_GEM)
        if p == 3.0:
            powed = clamped * clamped * clamped              # VPU, not EUP
        else:
            powed = clamped ** p
        pooled = jnp.mean(powed, axis=0, keepdims=True)      # (1, Cout)
        g = pooled ** (1.0 / p)

        # ---- L2 normalization over the feature dim ----
        nrm = jnp.sqrt(jnp.sum(g * g, axis=-1, keepdims=True))
        g = g / jnp.maximum(nrm, EPS_L2)

        # place this image's row into the (bt, Cout) output block
        sel = (row_sel == b).astype(jnp.float32)             # (bt, 1) one-hot
        out_rows = out_rows + sel * g

    o_ref[0] = out_rows


def _prep_images(x_nchw, pad_rows):
    # NCHW -> NHWC -> (B, H*W, Cin), zero rows top/bottom, cast to bf16.
    x = jnp.transpose(x_nchw, (0, 2, 3, 1))
    B, H, W, C = x.shape
    x = x.reshape(B, H * W, C)
    x = jnp.pad(x, ((0, 0), (pad_rows, pad_rows), (0, 0)))
    return x.astype(jnp.bfloat16)


def siamese_forward(x0_nchw, x1_nchw, w_oihw, bias, p=3.0, block_batch=2):
    B, Cin, H, W = x0_nchw.shape
    Cout = w_oihw.shape[0]
    pad_rows = W + 1                     # covers the max tap shift |dh*W + dw|

    # Fuse both branches: one input tensor, one pallas_call.
    x_all = jnp.concatenate([x0_nchw, x1_nchw], axis=0)       # (2B, Cin, H, W)
    ximg = _prep_images(x_all, pad_rows)                      # (2B, P, Cin) bf16
    P = ximg.shape[1]

    # weight (Cout, Cin, kh, kw) -> (kh, kw, Cin, Cout) -> (9, Cin, Cout)
    w9 = jnp.transpose(w_oihw, (2, 3, 1, 0)).reshape(9, Cin, Cout)
    w9 = w9.astype(jnp.bfloat16)
    b_row = bias.reshape(1, Cout).astype(jnp.float32)

    NB = 2 * B
    bt = block_batch if NB % block_batch == 0 else 1
    G = NB // bt

    kernel = functools.partial(
        siamese_fused_kernel, H=H, W=W, p=float(p), pad_rows=pad_rows)

    out = pl.pallas_call(
        kernel,
        out_shape=jax.ShapeDtypeStruct((G, bt, Cout), jnp.float32),
        grid_spec=pltpu.PrefetchScalarGridSpec(
            num_scalar_prefetch=0,
            grid=(G,),
            in_specs=[
                pl.BlockSpec((bt, P, Cin), lambda g: (g, 0, 0)),    # images
                pl.BlockSpec((9, Cin, Cout), lambda g: (0, 0, 0)),  # weights (resident)
                pl.BlockSpec((1, Cout), lambda g: (0, 0)),          # bias (resident)
            ],
            out_specs=pl.BlockSpec((1, bt, Cout), lambda g: (g, 0, 0)),
        ),
        compiler_params=pltpu.CompilerParams(
            dimension_semantics=("parallel",)),
    )(ximg, w9, b_row)

    out = out.reshape(NB, Cout)
    return out[:B], out[B:]


def _reference_branch(x_nchw, w_oihw, bias, p):
    # pure-JAX reference replicating the PyTorch forward
    out = jax.lax.conv_general_dilated(
        x_nchw, w_oihw, (1, 1), "SAME",
        dimension_numbers=("NCHW", "OIHW", "NCHW"))
    out = out + bias[None, :, None, None]
    out = jnp.maximum(out, 0.0)
    pooled = jnp.mean(jnp.maximum(out, EPS_GEM) ** p, axis=(2, 3)) ** (1.0 / p)
    nrm = jnp.sqrt(jnp.sum(pooled ** 2, axis=-1, keepdims=True))
    return pooled / jnp.maximum(nrm, EPS_L2)


if __name__ == "__main__":
    B, Cin, H, W = 2, 4, 16, 16
    Cout, K = 32, 3

    key = jax.random.PRNGKey(0)
    k_w, k_b, k_x0, k_x1 = jax.random.split(key, 4)

    fan_in = Cin * K * K
    w_oihw = jax.random.normal(k_w, (Cout, Cin, K, K), jnp.float32) / jnp.sqrt(fan_in)
    bias = jax.random.normal(k_b, (Cout,), jnp.float32) * 0.01

    x0 = jax.random.normal(k_x0, (B, Cin, H, W), jnp.float32)
    x1 = jax.random.normal(k_x1, (B, Cin, H, W), jnp.float32)

    fwd = jax.jit(siamese_forward, static_argnums=(4, 5))
    out0, out1 = fwd(x0, x1, w_oihw, bias, 3.0, 2)
    jax.block_until_ready((out0, out1))

    # Tight check: reference with the same bf16-rounded conv operands
    # (the kernel uses bf16 MXU operands with f32 accumulation).
    xq0 = x0.astype(jnp.bfloat16).astype(jnp.float32)
    xq1 = x1.astype(jnp.bfloat16).astype(jnp.float32)
    wq = w_oihw.astype(jnp.bfloat16).astype(jnp.float32)
    ref0 = _reference_branch(xq0, wq, bias, 3.0)
    ref1 = _reference_branch(xq1, wq, bias, 3.0)
    assert jnp.allclose(out0, ref0, atol=1e-3, rtol=1e-3), "branch 0 mismatch"
    assert jnp.allclose(out1, ref1, atol=1e-3, rtol=1e-3), "branch 1 mismatch"

    # Semantic check: full-f32 reference (looser tol due to bf16 MXU operands).
    rf0 = _reference_branch(x0, w_oihw, bias, 3.0)
    rf1 = _reference_branch(x1, w_oihw, bias, 3.0)
    assert jnp.allclose(out0, rf0, atol=2e-2, rtol=2e-2), "branch 0 drift vs f32"
    assert jnp.allclose(out1, rf1, atol=2e-2, rtol=2e-2), "branch 1 drift vs f32"

    print("KERNEL_OK")
</pallas_src>

<mosaic_0001>
module attributes {stable_mosaic.version = 11 : i64} {
  func.func @siamese_fused_kernel(%arg0: i32, %arg1: memref<2x290x4xbf16, #tpu.memory_space<vmem>>, %arg2: memref<9x4x32xbf16, #tpu.memory_space<vmem>>, %arg3: memref<1x32xf32, #tpu.memory_space<vmem>>, %arg4: memref<1x2x32xf32, #tpu.memory_space<vmem>>) attributes {dimension_semantics = [#tpu.dimension_semantics<parallel>], iteration_bounds = array<i64: 2>, scalar_prefetch = 0 : i64, scratch_operands = 0 : i64, tpu.core_type = #tpu.core_type<tc>, window_params = [{transform_indices = @transform_0, window_bounds = array<i64: 2, 290, 4>}, {pipeline_mode = #tpu.pipeline_mode<synchronous>, transform_indices = @transform_1, window_bounds = array<i64: 9, 4, 32>}, {pipeline_mode = #tpu.pipeline_mode<synchronous>, transform_indices = @transform_2, window_bounds = array<i64: 1, 32>}, {transform_indices = @transform_3, window_bounds = array<i64: 1, 2, 32>}]} {
    %c0 = arith.constant 0 : index
    %c0_0 = arith.constant 0 : index
    %0 = vector.load %arg3[%c0, %c0_0] : memref<1x32xf32, #tpu.memory_space<vmem>>, vector<1x32xf32>
    %1 = tpu.iota {dimensions = array<i32: 0>} : vector<256x1xi32>
    %c16_i32 = arith.constant 16 : i32
    %c0_i32 = arith.constant 0 : i32
    %2 = arith.cmpi eq, %c16_i32, %c0_i32 : i32
    %c1_i32 = arith.constant 1 : i32
    %3 = arith.select %2, %c1_i32, %c16_i32 : i32
    %4 = vector.broadcast %3 : i32 to vector<256x1xi32>
    %5 = arith.remsi %1, %4 : vector<256x1xi32>
    %c0_i32_1 = arith.constant 0 : i32
    %6 = vector.broadcast %c0_i32_1 : i32 to vector<256x1xi32>
    %7 = arith.cmpi ne, %5, %6 : vector<256x1xi32>
    %c0_i32_2 = arith.constant 0 : i32
    %8 = vector.broadcast %c0_i32_2 : i32 to vector<256x1xi32>
    %9 = arith.cmpi slt, %5, %8 : vector<256x1xi32>
    %c0_i32_3 = arith.constant 0 : i32
    %10 = arith.cmpi slt, %3, %c0_i32_3 : i32
    %11 = vector.broadcast %10 : i1 to vector<256x1xi1>
    %12 = vector.broadcast %11 : vector<256x1xi1> to vector<256x1xi1>
    %13 = arith.xori %9, %12 : vector<256x1xi1>
    %14 = arith.andi %13, %7 : vector<256x1xi1>
    %15 = vector.broadcast %3 : i32 to vector<256x1xi32>
    %16 = arith.addi %5, %15 : vector<256x1xi32>
    %17 = arith.select %14, %16, %5 : vector<256x1xi1>, vector<256x1xi32>
    %c1_i32_4 = arith.constant 1 : i32
    %18 = vector.broadcast %c1_i32_4 : i32 to vector<256x1xi32>
    %19 = arith.cmpi sge, %17, %18 : vector<256x1xi32>
    %20 = arith.extui %19 : vector<256x1xi1> to vector<256x1xi32>
    %21 = arith.sitofp %20 : vector<256x1xi32> to vector<256x1xf32>
    %c14_i32 = arith.constant 14 : i32
    %22 = vector.broadcast %c14_i32 : i32 to vector<256x1xi32>
    %23 = arith.cmpi sle, %17, %22 : vector<256x1xi32>
    %24 = arith.extui %23 : vector<256x1xi1> to vector<256x1xi32>
    %25 = arith.sitofp %24 : vector<256x1xi32> to vector<256x1xf32>
    %26 = tpu.iota {dimensions = array<i32: 0>} : vector<2x1xi32>
    %cst = arith.constant 0.000000e+00 : f32
    %27 = vector.broadcast %cst : f32 to vector<2x32xf32>
    %cst_5 = arith.constant 0.000000e+00 : f32
    %28 = vector.broadcast %cst_5 : f32 to vector<256x32xf32>
    %c0_6 = arith.constant 0 : index
    %c0_7 = arith.constant 0 : index
    %c0_8 = arith.constant 0 : index
    %29 = vector.load %arg1[%c0_6, %c0_7, %c0_8] : memref<2x290x4xbf16, #tpu.memory_space<vmem>>, vector<1x256x4xbf16>
    %30 = vector.shape_cast %29 : vector<1x256x4xbf16> to vector<256x4xbf16>
    %c0_9 = arith.constant 0 : index
    %c0_10 = arith.constant 0 : index
    %c0_11 = arith.constant 0 : index
    %31 = vector.load %arg2[%c0_9, %c0_10, %c0_11] : memref<9x4x32xbf16, #tpu.memory_space<vmem>>, vector<1x4x32xbf16>
    %32 = vector.shape_cast %31 : vector<1x4x32xbf16> to vector<4x32xbf16>
    %cst_12 = arith.constant dense<0.000000e+00> : vector<256x32xf32>
    %33 = tpu.matmul %30, %32, %cst_12 {dimension_numbers = #tpu.dot_dimension_numbers<[1], [0], [0], [1], [0, 0, 1, 1], [], []>} : vector<256x4xbf16>, vector<4x32xbf16>, vector<256x32xf32> -> vector<256x32xf32>
    %34 = vector.broadcast %21 : vector<256x1xf32> to vector<256x32xf32>
    %35 = arith.mulf %33, %34 : vector<256x32xf32>
    %36 = arith.addf %28, %35 : vector<256x32xf32>
    %c0_13 = arith.constant 0 : index
    %c1 = arith.constant 1 : index
    %c0_14 = arith.constant 0 : index
    %37 = vector.load %arg1[%c0_13, %c1, %c0_14] : memref<2x290x4xbf16, #tpu.memory_space<vmem>>, vector<1x256x4xbf16>
    %38 = vector.shape_cast %37 : vector<1x256x4xbf16> to vector<256x4xbf16>
    %c1_15 = arith.constant 1 : index
    %c0_16 = arith.constant 0 : index
    %c0_17 = arith.constant 0 : index
    %39 = vector.load %arg2[%c1_15, %c0_16, %c0_17] : memref<9x4x32xbf16, #tpu.memory_space<vmem>>, vector<1x4x32xbf16>
    %40 = vector.shape_cast %39 : vector<1x4x32xbf16> to vector<4x32xbf16>
    %cst_18 = arith.constant dense<0.000000e+00> : vector<256x32xf32>
    %41 = tpu.matmul %38, %40, %cst_18 {dimension_numbers = #tpu.dot_dimension_numbers<[1], [0], [0], [1], [0, 0, 1, 1], [], []>} : vector<256x4xbf16>, vector<4x32xbf16>, vector<256x32xf32> -> vector<256x32xf32>
    %42 = arith.addf %36, %41 : vector<256x32xf32>
    %c0_19 = arith.constant 0 : index
    %c2 = arith.constant 2 : index
    %c0_20 = arith.constant 0 : index
    %43 = vector.load %arg1[%c0_19, %c2, %c0_20] : memref<2x290x4xbf16, #tpu.memory_space<vmem>>, vector<1x256x4xbf16>
    %44 = vector.shape_cast %43 : vector<1x256x4xbf16> to vector<256x4xbf16>
    %c2_21 = arith.constant 2 : index
    %c0_22 = arith.constant 0 : index
    %c0_23 = arith.constant 0 : index
    %45 = vector.load %arg2[%c2_21, %c0_22, %c0_23] : memref<9x4x32xbf16, #tpu.memory_space<vmem>>, vector<1x4x32xbf16>
    %46 = vector.shape_cast %45 : vector<1x4x32xbf16> to vector<4x32xbf16>
    %cst_24 = arith.constant dense<0.000000e+00> : vector<256x32xf32>
    %47 = tpu.matmul %44, %46, %cst_24 {dimension_numbers = #tpu.dot_dimension_numbers<[1], [0], [0], [1], [0, 0, 1, 1], [], []>} : vector<256x4xbf16>, vector<4x32xbf16>, vector<256x32xf32> -> vector<256x32xf32>
    %48 = vector.broadcast %25 : vector<256x1xf32> to vector<256x32xf32>
    %49 = arith.mulf %47, %48 : vector<256x32xf32>
    %50 = arith.addf %42, %49 : vector<256x32xf32>
    %c0_25 = arith.constant 0 : index
    %c16 = arith.constant 16 : index
    %c0_26 = arith.constant 0 : index
    %51 = vector.load %arg1[%c0_25, %c16, %c0_26] : memref<2x290x4xbf16, #tpu.memory_space<vmem>>, vector<1x256x4xbf16>
    %52 = vector.shape_cast %51 : vector<1x256x4xbf16> to vector<256x4xbf16>
    %c3 = arith.constant 3 : index
    %c0_27 = arith.constant 0 : index
    %c0_28 = arith.constant 0 : index
    %53 = vector.load %arg2[%c3, %c0_27, %c0_28] : memref<9x4x32xbf16, #tpu.memory_space<vmem>>, vector<1x4x32xbf16>
    %54 = vector.shape_cast %53 : vector<1x4x32xbf16> to vector<4x32xbf16>
    %cst_29 = arith.constant dense<0.000000e+00> : vector<256x32xf32>
    %55 = tpu.matmul %52, %54, %cst_29 {dimension_numbers = #tpu.dot_dimension_numbers<[1], [0], [0], [1], [0, 0, 1, 1], [], []>} : vector<256x4xbf16>, vector<4x32xbf16>, vector<256x32xf32> -> vector<256x32xf32>
    %56 = vector.broadcast %21 : vector<256x1xf32> to vector<256x32xf32>
    %57 = arith.mulf %55, %56 : vector<256x32xf32>
    %58 = arith.addf %50, %57 : vector<256x32xf32>
    %c0_30 = arith.constant 0 : index
    %c17 = arith.constant 17 : index
    %c0_31 = arith.constant 0 : index
    %59 = vector.load %arg1[%c0_30, %c17, %c0_31] : memref<2x290x4xbf16, #tpu.memory_space<vmem>>, vector<1x256x4xbf16>
    %60 = vector.shape_cast %59 : vector<1x256x4xbf16> to vector<256x4xbf16>
    %c4 = arith.constant 4 : index
    %c0_32 = arith.constant 0 : index
    %c0_33 = arith.constant 0 : index
    %61 = vector.load %arg2[%c4, %c0_32, %c0_33] : memref<9x4x32xbf16, #tpu.memory_space<vmem>>, vector<1x4x32xbf16>
    %62 = vector.shape_cast %61 : vector<1x4x32xbf16> to vector<4x32xbf16>
    %cst_34 = arith.constant dense<0.000000e+00> : vector<256x32xf32>
    %63 = tpu.matmul %60, %62, %cst_34 {dimension_numbers = #tpu.dot_dimension_numbers<[1], [0], [0], [1], [0, 0, 1, 1], [], []>} : vector<256x4xbf16>, vector<4x32xbf16>, vector<256x32xf32> -> vector<256x32xf32>
    %64 = arith.addf %58, %63 : vector<256x32xf32>
    %c0_35 = arith.constant 0 : index
    %c18 = arith.constant 18 : index
    %c0_36 = arith.constant 0 : index
    %65 = vector.load %arg1[%c0_35, %c18, %c0_36] : memref<2x290x4xbf16, #tpu.memory_space<vmem>>, vector<1x256x4xbf16>
    %66 = vector.shape_cast %65 : vector<1x256x4xbf16> to vector<256x4xbf16>
    %c5 = arith.constant 5 : index
    %c0_37 = arith.constant 0 : index
    %c0_38 = arith.constant 0 : index
    %67 = vector.load %arg2[%c5, %c0_37, %c0_38] : memref<9x4x32xbf16, #tpu.memory_space<vmem>>, vector<1x4x32xbf16>
    %68 = vector.shape_cast %67 : vector<1x4x32xbf16> to vector<4x32xbf16>
    %cst_39 = arith.constant dense<0.000000e+00> : vector<256x32xf32>
    %69 = tpu.matmul %66, %68, %cst_39 {dimension_numbers = #tpu.dot_dimension_numbers<[1], [0], [0], [1], [0, 0, 1, 1], [], []>} : vector<256x4xbf16>, vector<4x32xbf16>, vector<256x32xf32> -> vector<256x32xf32>
    %70 = vector.broadcast %25 : vector<256x1xf32> to vector<256x32xf32>
    %71 = arith.mulf %69, %70 : vector<256x32xf32>
    %72 = arith.addf %64, %71 : vector<256x32xf32>
    %c0_40 = arith.constant 0 : index
    %c32 = arith.constant 32 : index
    %c0_41 = arith.constant 0 : index
    %73 = vector.load %arg1[%c0_40, %c32, %c0_41] : memref<2x290x4xbf16, #tpu.memory_space<vmem>>, vector<1x256x4xbf16>
    %74 = vector.shape_cast %73 : vector<1x256x4xbf16> to vector<256x4xbf16>
    %c6 = arith.constant 6 : index
    %c0_42 = arith.constant 0 : index
    %c0_43 = arith.constant 0 : index
    %75 = vector.load %arg2[%c6, %c0_42, %c0_43] : memref<9x4x32xbf16, #tpu.memory_space<vmem>>, vector<1x4x32xbf16>
    %76 = vector.shape_cast %75 : vector<1x4x32xbf16> to vector<4x32xbf16>
    %cst_44 = arith.constant dense<0.000000e+00> : vector<256x32xf32>
    %77 = tpu.matmul %74, %76, %cst_44 {dimension_numbers = #tpu.dot_dimension_numbers<[1], [0], [0], [1], [0, 0, 1, 1], [], []>} : vector<256x4xbf16>, vector<4x32xbf16>, vector<256x32xf32> -> vector<256x32xf32>
    %78 = vector.broadcast %21 : vector<256x1xf32> to vector<256x32xf32>
    %79 = arith.mulf %77, %78 : vector<256x32xf32>
    %80 = arith.addf %72, %79 : vector<256x32xf32>
    %c0_45 = arith.constant 0 : index
    %c33 = arith.constant 33 : index
    %c0_46 = arith.constant 0 : index
    %81 = vector.load %arg1[%c0_45, %c33, %c0_46] : memref<2x290x4xbf16, #tpu.memory_space<vmem>>, vector<1x256x4xbf16>
    %82 = vector.shape_cast %81 : vector<1x256x4xbf16> to vector<256x4xbf16>
    %c7 = arith.constant 7 : index
    %c0_47 = arith.constant 0 : index
    %c0_48 = arith.constant 0 : index
    %83 = vector.load %arg2[%c7, %c0_47, %c0_48] : memref<9x4x32xbf16, #tpu.memory_space<vmem>>, vector<1x4x32xbf16>
    %84 = vector.shape_cast %83 : vector<1x4x32xbf16> to vector<4x32xbf16>
    %cst_49 = arith.constant dense<0.000000e+00> : vector<256x32xf32>
    %85 = tpu.matmul %82, %84, %cst_49 {dimension_numbers = #tpu.dot_dimension_numbers<[1], [0], [0], [1], [0, 0, 1, 1], [], []>} : vector<256x4xbf16>, vector<4x32xbf16>, vector<256x32xf32> -> vector<256x32xf32>
    %86 = arith.addf %80, %85 : vector<256x32xf32>
    %c0_50 = arith.constant 0 : index
    %c34 = arith.constant 34 : index
    %c0_51 = arith.constant 0 : index
    %87 = vector.load %arg1[%c0_50, %c34, %c0_51] : memref<2x290x4xbf16, #tpu.memory_space<vmem>>, vector<1x256x4xbf16>
    %88 = vector.shape_cast %87 : vector<1x256x4xbf16> to vector<256x4xbf16>
    %c8 = arith.constant 8 : index
    %c0_52 = arith.constant 0 : index
    %c0_53 = arith.constant 0 : index
    %89 = vector.load %arg2[%c8, %c0_52, %c0_53] : memref<9x4x32xbf16, #tpu.memory_space<vmem>>, vector<1x4x32xbf16>
    %90 = vector.shape_cast %89 : vector<1x4x32xbf16> to vector<4x32xbf16>
    %cst_54 = arith.constant dense<0.000000e+00> : vector<256x32xf32>
    %91 = tpu.matmul %88, %90, %cst_54 {dimension_numbers = #tpu.dot_dimension_numbers<[1], [0], [0], [1], [0, 0, 1, 1], [], []>} : vector<256x4xbf16>, vector<4x32xbf16>, vector<256x32xf32> -> vector<256x32xf32>
    %92 = vector.broadcast %25 : vector<256x1xf32> to vector<256x32xf32>
    %93 = arith.mulf %91, %92 : vector<256x32xf32>
    %94 = arith.addf %86, %93 : vector<256x32xf32>
    %95 = vector.broadcast %0 : vector<1x32xf32> to vector<256x32xf32>
    %96 = arith.addf %94, %95 : vector<256x32xf32>
    %cst_55 = arith.constant 0.000000e+00 : f32
    %97 = vector.broadcast %cst_55 : f32 to vector<256x32xf32>
    %98 = arith.maximumf %96, %97 : vector<256x32xf32>
    %cst_56 = arith.constant 9.99999997E-7 : f32
    %99 = vector.broadcast %cst_56 : f32 to vector<256x32xf32>
    %100 = arith.maximumf %98, %99 : vector<256x32xf32>
    %101 = arith.mulf %100, %100 : vector<256x32xf32>
    %102 = arith.mulf %101, %100 : vector<256x32xf32>
    %cst_57 = arith.constant dense<0.000000e+00> : vector<32xf32>
    %103 = vector.multi_reduction <add>, %102, %cst_57 [0] : vector<256x32xf32> to vector<32xf32>
    %104 = vector.shape_cast %103 : vector<32xf32> to vector<1x32xf32>
    %cst_58 = arith.constant 2.560000e+02 : f32
    %105 = vector.broadcast %cst_58 : f32 to vector<1x32xf32>
    %106 = arith.divf %104, %105 : vector<1x32xf32>
    %cst_59 = arith.constant 0.333333343 : f32
    %107 = vector.broadcast %cst_59 : f32 to vector<1x32xf32>
    %108 = math.powf %106, %107 : vector<1x32xf32>
    %109 = arith.mulf %108, %108 : vector<1x32xf32>
    %cst_60 = arith.constant dense<0.000000e+00> : vector<1xf32>
    %110 = vector.multi_reduction <add>, %109, %cst_60 [1] : vector<1x32xf32> to vector<1xf32>
    %111 = vector.shape_cast %110 : vector<1xf32> to vector<1x1xf32>
    %112 = math.sqrt %111 : vector<1x1xf32>
    %cst_61 = arith.constant 9.99999996E-13 : f32
    %113 = vector.broadcast %cst_61 : f32 to vector<1x1xf32>
    %114 = arith.maximumf %112, %113 : vector<1x1xf32>
    %115 = vector.broadcast %114 : vector<1x1xf32> to vector<1x32xf32>
    %116 = arith.divf %108, %115 : vector<1x32xf32>
    %c0_i32_62 = arith.constant 0 : i32
    %117 = vector.broadcast %c0_i32_62 : i32 to vector<2x1xi32>
    %118 = arith.cmpi eq, %26, %117 : vector<2x1xi32>
    %119 = arith.extui %118 : vector<2x1xi1> to vector<2x1xi32>
    %120 = arith.sitofp %119 : vector<2x1xi32> to vector<2x1xf32>
    %121 = vector.broadcast %120 : vector<2x1xf32> to vector<2x32xf32>
    %122 = vector.broadcast %116 : vector<1x32xf32> to vector<2x32xf32>
    %123 = arith.mulf %121, %122 : vector<2x32xf32>
    %124 = arith.addf %27, %123 : vector<2x32xf32>
    %cst_63 = arith.constant 0.000000e+00 : f32
    %125 = vector.broadcast %cst_63 : f32 to vector<256x32xf32>
    %c1_64 = arith.constant 1 : index
    %c0_65 = arith.constant 0 : index
    %c0_66 = arith.constant 0 : index
    %126 = vector.load %arg1[%c1_64, %c0_65, %c0_66] : memref<2x290x4xbf16, #tpu.memory_space<vmem>>, vector<1x256x4xbf16>
    %127 = vector.shape_cast %126 : vector<1x256x4xbf16> to vector<256x4xbf16>
    %c0_67 = arith.constant 0 : index
    %c0_68 = arith.constant 0 : index
    %c0_69 = arith.constant 0 : index
    %128 = vector.load %arg2[%c0_67, %c0_68, %c0_69] : memref<9x4x32xbf16, #tpu.memory_space<vmem>>, vector<1x4x32xbf16>
    %129 = vector.shape_cast %128 : vector<1x4x32xbf16> to vector<4x32xbf16>
    %cst_70 = arith.constant dense<0.000000e+00> : vector<256x32xf32>
    %130 = tpu.matmul %127, %129, %cst_70 {dimension_numbers = #tpu.dot_dimension_numbers<[1], [0], [0], [1], [0, 0, 1, 1], [], []>} : vector<256x4xbf16>, vector<4x32xbf16>, vector<256x32xf32> -> vector<256x32xf32>
    %131 = vector.broadcast %21 : vector<256x1xf32> to vector<256x32xf32>
    %132 = arith.mulf %130, %131 : vector<256x32xf32>
    %133 = arith.addf %125, %132 : vector<256x32xf32>
    %c1_71 = arith.constant 1 : index
    %c1_72 = arith.constant 1 : index
    %c0_73 = arith.constant 0 : index
    %134 = vector.load %arg1[%c1_71, %c1_72, %c0_73] : memref<2x290x4xbf16, #tpu.memory_space<vmem>>, vector<1x256x4xbf16>
    %135 = vector.shape_cast %134 : vector<1x256x4xbf16> to vector<256x4xbf16>
    %c1_74 = arith.constant 1 : index
    %c0_75 = arith.constant 0 : index
    %c0_76 = arith.constant 0 : index
    %136 = vector.load %arg2[%c1_74, %c0_75, %c0_76] : memref<9x4x32xbf16, #tpu.memory_space<vmem>>, vector<1x4x32xbf16>
    %137 = vector.shape_cast %136 : vector<1x4x32xbf16> to vector<4x32xbf16>
    %cst_77 = arith.constant dense<0.000000e+00> : vector<256x32xf32>
    %138 = tpu.matmul %135, %137, %cst_77 {dimension_numbers = #tpu.dot_dimension_numbers<[1], [0], [0], [1], [0, 0, 1, 1], [], []>} : vector<256x4xbf16>, vector<4x32xbf16>, vector<256x32xf32> -> vector<256x32xf32>
    %139 = arith.addf %133, %138 : vector<256x32xf32>
    %c1_78 = arith.constant 1 : index
    %c2_79 = arith.constant 2 : index
    %c0_80 = arith.constant 0 : index
    %140 = vector.load %arg1[%c1_78, %c2_79, %c0_80] : memref<2x290x4xbf16, #tpu.memory_space<vmem>>, vector<1x256x4xbf16>
    %141 = vector.shape_cast %140 : vector<1x256x4xbf16> to vector<256x4xbf16>
    %c2_81 = arith.constant 2 : index
    %c0_82 = arith.constant 0 : index
    %c0_83 = arith.constant 0 : index
    %142 = vector.load %arg2[%c2_81, %c0_82, %c0_83] : memref<9x4x32xbf16, #tpu.memory_space<vmem>>, vector<1x4x32xbf16>
    %143 = vector.shape_cast %142 : vector<1x4x32xbf16> to vector<4x32xbf16>
    %cst_84 = arith.constant dense<0.000000e+00> : vector<256x32xf32>
    %144 = tpu.matmul %141, %143, %cst_84 {dimension_numbers = #tpu.dot_dimension_numbers<[1], [0], [0], [1], [0, 0, 1, 1], [], []>} : vector<256x4xbf16>, vector<4x32xbf16>, vector<256x32xf32> -> vector<256x32xf32>
    %145 = vector.broadcast %25 : vector<256x1xf32> to vector<256x32xf32>
    %146 = arith.mulf %144, %145 : vector<256x32xf32>
    %147 = arith.addf %139, %146 : vector<256x32xf32>
    %c1_85 = arith.constant 1 : index
    %c16_86 = arith.constant 16 : index
    %c0_87 = arith.constant 0 : index
    %148 = vector.load %arg1[%c1_85, %c16_86, %c0_87] : memref<2x290x4xbf16, #tpu.memory_space<vmem>>, vector<1x256x4xbf16>
    %149 = vector.shape_cast %148 : vector<1x256x4xbf16> to vector<256x4xbf16>
    %c3_88 = arith.constant 3 : index
    %c0_89 = arith.constant 0 : index
    %c0_90 = arith.constant 0 : index
    %150 = vector.load %arg2[%c3_88, %c0_89, %c0_90] : memref<9x4x32xbf16, #tpu.memory_space<vmem>>, vector<1x4x32xbf16>
    %151 = vector.shape_cast %150 : vector<1x4x32xbf16> to vector<4x32xbf16>
    %cst_91 = arith.constant dense<0.000000e+00> : vector<256x32xf32>
    %152 = tpu.matmul %149, %151, %cst_91 {dimension_numbers = #tpu.dot_dimension_numbers<[1], [0], [0], [1], [0, 0, 1, 1], [], []>} : vector<256x4xbf16>, vector<4x32xbf16>, vector<256x32xf32> -> vector<256x32xf32>
    %153 = vector.broadcast %21 : vector<256x1xf32> to vector<256x32xf32>
    %154 = arith.mulf %152, %153 : vector<256x32xf32>
    %155 = arith.addf %147, %154 : vector<256x32xf32>
    %c1_92 = arith.constant 1 : index
    %c17_93 = arith.constant 17 : index
    %c0_94 = arith.constant 0 : index
    %156 = vector.load %arg1[%c1_92, %c17_93, %c0_94] : memref<2x290x4xbf16, #tpu.memory_space<vmem>>, vector<1x256x4xbf16>
    %157 = vector.shape_cast %156 : vector<1x256x4xbf16> to vector<256x4xbf16>
    %c4_95 = arith.constant 4 : index
    %c0_96 = arith.constant 0 : index
    %c0_97 = arith.constant 0 : index
    %158 = vector.load %arg2[%c4_95, %c0_96, %c0_97] : memref<9x4x32xbf16, #tpu.memory_space<vmem>>, vector<1x4x32xbf16>
    %159 = vector.shape_cast %158 : vector<1x4x32xbf16> to vector<4x32xbf16>
    %cst_98 = arith.constant dense<0.000000e+00> : vector<256x32xf32>
    %160 = tpu.matmul %157, %159, %cst_98 {dimension_numbers = #tpu.dot_dimension_numbers<[1], [0], [0], [1], [0, 0, 1, 1], [], []>} : vector<256x4xbf16>, vector<4x32xbf16>, vector<256x32xf32> -> vector<256x32xf32>
    %161 = arith.addf %155, %160 : vector<256x32xf32>
    %c1_99 = arith.constant 1 : index
    %c18_100 = arith.constant 18 : index
    %c0_101 = arith.constant 0 : index
    %162 = vector.load %arg1[%c1_99, %c18_100, %c0_101] : memref<2x290x4xbf16, #tpu.memory_space<vmem>>, vector<1x256x4xbf16>
    %163 = vector.shape_cast %162 : vector<1x256x4xbf16> to vector<256x4xbf16>
    %c5_102 = arith.constant 5 : index
    %c0_103 = arith.constant 0 : index
    %c0_104 = arith.constant 0 : index
    %164 = vector.load %arg2[%c5_102, %c0_103, %c0_104] : memref<9x4x32xbf16, #tpu.memory_space<vmem>>, vector<1x4x32xbf16>
    %165 = vector.shape_cast %164 : vector<1x4x32xbf16> to vector<4x32xbf16>
    %cst_105 = arith.constant dense<0.000000e+00> : vector<256x32xf32>
    %166 = tpu.matmul %163, %165, %cst_105 {dimension_numbers = #tpu.dot_dimension_numbers<[1], [0], [0], [1], [0, 0, 1, 1], [], []>} : vector<256x4xbf16>, vector<4x32xbf16>, vector<256x32xf32> -> vector<256x32xf32>
    %167 = vector.broadcast %25 : vector<256x1xf32> to vector<256x32xf32>
    %168 = arith.mulf %166, %167 : vector<256x32xf32>
    %169 = arith.addf %161, %168 : vector<256x32xf32>
    %c1_106 = arith.constant 1 : index
    %c32_107 = arith.constant 32 : index
    %c0_108 = arith.constant 0 : index
    %170 = vector.load %arg1[%c1_106, %c32_107, %c0_108] : memref<2x290x4xbf16, #tpu.memory_space<vmem>>, vector<1x256x4xbf16>
    %171 = vector.shape_cast %170 : vector<1x256x4xbf16> to vector<256x4xbf16>
    %c6_109 = arith.constant 6 : index
    %c0_110 = arith.constant 0 : index
    %c0_111 = arith.constant 0 : index
    %172 = vector.load %arg2[%c6_109, %c0_110, %c0_111] : memref<9x4x32xbf16, #tpu.memory_space<vmem>>, vector<1x4x32xbf16>
    %173 = vector.shape_cast %172 : vector<1x4x32xbf16> to vector<4x32xbf16>
    %cst_112 = arith.constant dense<0.000000e+00> : vector<256x32xf32>
    %174 = tpu.matmul %171, %173, %cst_112 {dimension_numbers = #tpu.dot_dimension_numbers<[1], [0], [0], [1], [0, 0, 1, 1], [], []>} : vector<256x4xbf16>, vector<4x32xbf16>, vector<256x32xf32> -> vector<256x32xf32>
    %175 = vector.broadcast %21 : vector<256x1xf32> to vector<256x32xf32>
    %176 = arith.mulf %174, %175 : vector<256x32xf32>
    %177 = arith.addf %169, %176 : vector<256x32xf32>
    %c1_113 = arith.constant 1 : index
    %c33_114 = arith.constant 33 : index
    %c0_115 = arith.constant 0 : index
    %178 = vector.load %arg1[%c1_113, %c33_114, %c0_115] : memref<2x290x4xbf16, #tpu.memory_space<vmem>>, vector<1x256x4xbf16>
    %179 = vector.shape_cast %178 : vector<1x256x4xbf16> to vector<256x4xbf16>
    %c7_116 = arith.constant 7 : index
    %c0_117 = arith.constant 0 : index
    %c0_118 = arith.constant 0 : index
    %180 = vector.load %arg2[%c7_116, %c0_117, %c0_118] : memref<9x4x32xbf16, #tpu.memory_space<vmem>>, vector<1x4x32xbf16>
    %181 = vector.shape_cast %180 : vector<1x4x32xbf16> to vector<4x32xbf16>
    %cst_119 = arith.constant dense<0.000000e+00> : vector<256x32xf32>
    %182 = tpu.matmul %179, %181, %cst_119 {dimension_numbers = #tpu.dot_dimension_numbers<[1], [0], [0], [1], [0, 0, 1, 1], [], []>} : vector<256x4xbf16>, vector<4x32xbf16>, vector<256x32xf32> -> vector<256x32xf32>
    %183 = arith.addf %177, %182 : vector<256x32xf32>
    %c1_120 = arith.constant 1 : index
    %c34_121 = arith.constant 34 : index
    %c0_122 = arith.constant 0 : index
    %184 = vector.load %arg1[%c1_120, %c34_121, %c0_122] : memref<2x290x4xbf16, #tpu.memory_space<vmem>>, vector<1x256x4xbf16>
    %185 = vector.shape_cast %184 : vector<1x256x4xbf16> to vector<256x4xbf16>
    %c8_123 = arith.constant 8 : index
    %c0_124 = arith.constant 0 : index
    %c0_125 = arith.constant 0 : index
    %186 = vector.load %arg2[%c8_123, %c0_124, %c0_125] : memref<9x4x32xbf16, #tpu.memory_space<vmem>>, vector<1x4x32xbf16>
    %187 = vector.shape_cast %186 : vector<1x4x32xbf16> to vector<4x32xbf16>
    %cst_126 = arith.constant dense<0.000000e+00> : vector<256x32xf32>
    %188 = tpu.matmul %185, %187, %cst_126 {dimension_numbers = #tpu.dot_dimension_numbers<[1], [0], [0], [1], [0, 0, 1, 1], [], []>} : vector<256x4xbf16>, vector<4x32xbf16>, vector<256x32xf32> -> vector<256x32xf32>
    %189 = vector.broadcast %25 : vector<256x1xf32> to vector<256x32xf32>
    %190 = arith.mulf %188, %189 : vector<256x32xf32>
    %191 = arith.addf %183, %190 : vector<256x32xf32>
    %192 = vector.broadcast %0 : vector<1x32xf32> to vector<256x32xf32>
    %193 = arith.addf %191, %192 : vector<256x32xf32>
    %cst_127 = arith.constant 0.000000e+00 : f32
    %194 = vector.broadcast %cst_127 : f32 to vector<256x32xf32>
    %195 = arith.maximumf %193, %194 : vector<256x32xf32>
    %cst_128 = arith.constant 9.99999997E-7 : f32
    %196 = vector.broadcast %cst_128 : f32 to vector<256x32xf32>
    %197 = arith.maximumf %195, %196 : vector<256x32xf32>
    %198 = arith.mulf %197, %197 : vector<256x32xf32>
    %199 = arith.mulf %198, %197 : vector<256x32xf32>
    %cst_129 = arith.constant dense<0.000000e+00> : vector<32xf32>
    %200 = vector.multi_reduction <add>, %199, %cst_129 [0] : vector<256x32xf32> to vector<32xf32>
    %201 = vector.shape_cast %200 : vector<32xf32> to vector<1x32xf32>
    %cst_130 = arith.constant 2.560000e+02 : f32
    %202 = vector.broadcast %cst_130 : f32 to vector<1x32xf32>
    %203 = arith.divf %201, %202 : vector<1x32xf32>
    %cst_131 = arith.constant 0.333333343 : f32
    %204 = vector.broadcast %cst_131 : f32 to vector<1x32xf32>
    %205 = math.powf %203, %204 : vector<1x32xf32>
    %206 = arith.mulf %205, %205 : vector<1x32xf32>
    %cst_132 = arith.constant dense<0.000000e+00> : vector<1xf32>
    %207 = vector.multi_reduction <add>, %206, %cst_132 [1] : vector<1x32xf32> to vector<1xf32>
    %208 = vector.shape_cast %207 : vector<1xf32> to vector<1x1xf32>
    %209 = math.sqrt %208 : vector<1x1xf32>
    %cst_133 = arith.constant 9.99999996E-13 : f32
    %210 = vector.broadcast %cst_133 : f32 to vector<1x1xf32>
    %211 = arith.maximumf %209, %210 : vector<1x1xf32>
    %212 = vector.broadcast %211 : vector<1x1xf32> to vector<1x32xf32>
    %213 = arith.divf %205, %212 : vector<1x32xf32>
    %c1_i32_134 = arith.constant 1 : i32
    %214 = vector.broadcast %c1_i32_134 : i32 to vector<2x1xi32>
    %215 = arith.cmpi eq, %26, %214 : vector<2x1xi32>
    %216 = arith.extui %215 : vector<2x1xi1> to vector<2x1xi32>
    %217 = arith.sitofp %216 : vector<2x1xi32> to vector<2x1xf32>
    %218 = vector.broadcast %217 : vector<2x1xf32> to vector<2x32xf32>
    %219 = vector.broadcast %213 : vector<1x32xf32> to vector<2x32xf32>
    %220 = arith.mulf %218, %219 : vector<2x32xf32>
    %221 = arith.addf %124, %220 : vector<2x32xf32>
    %c0_135 = arith.constant 0 : index
    %c0_136 = arith.constant 0 : index
    %c0_137 = arith.constant 0 : index
    %222 = vector.load %arg4[%c0_135, %c0_136, %c0_137] : memref<1x2x32xf32, #tpu.memory_space<vmem>>, vector<1x2x32xf32>
    %223 = vector.shape_cast %222 : vector<1x2x32xf32> to vector<2x32xf32>
    %224 = vector.shape_cast %221 : vector<2x32xf32> to vector<1x2x32xf32>
    tpu.vector_store %arg4[%c0_135, %c0_136, %c0_137], %224 {strides = array<i32>} : memref<1x2x32xf32, #tpu.memory_space<vmem>>, vector<1x2x32xf32>,
    return
  }
  func.func @transform_0(%arg0: i32) -> (i32, i32, i32) {
    %c0_i32 = arith.constant 0 : i32
    %c0_i32_0 = arith.constant 0 : i32
    %c0_i32_1 = arith.constant 0 : i32
    return %arg0, %c0_i32, %c0_i32_0 : i32, i32, i32
  }
  func.func @transform_1(%arg0: i32) -> (i32, i32, i32) {
    %c0_i32 = arith.constant 0 : i32
    %c0_i32_0 = arith.constant 0 : i32
    %c0_i32_1 = arith.constant 0 : i32
    %c0_i32_2 = arith.constant 0 : i32
    return %c0_i32, %c0_i32_0, %c0_i32_1 : i32, i32, i32
  }
  func.func @transform_2(%arg0: i32) -> (i32, i32) {
    %c0_i32 = arith.constant 0 : i32
    %c0_i32_0 = arith.constant 0 : i32
    %c0_i32_1 = arith.constant 0 : i32
    return %c0_i32, %c0_i32_0 : i32, i32
  }
  func.func @transform_3(%arg0: i32) -> (i32, i32, i32) {
    %c0_i32 = arith.constant 0 : i32
    %c0_i32_0 = arith.constant 0 : i32
    %c0_i32_1 = arith.constant 0 : i32
    return %arg0, %c0_i32, %c0_i32_0 : i32, i32, i32
  }
}

</mosaic_0001>

<bundles_post_ra>
// kernel: siamese_forward.1
= control target key start
LH: loop header
LB: loop body
LE: loop exit
PB: predicated region body
PF: predicated region fallthrough
CT: control target
= control target key end

     0   :  { %s8876_s12 = smov 0   ;;  %s11033_s0 = inlined_call_operand.vmem [shape: bf16[4,290,4], index: 0, kind: input, shape index: {}]   ;;  %s11034_s1 = inlined_call_operand.vmem [shape: bf16[9,4,32], index: 1, kind: input, shape index: {}]   ;;  %s11035_s2 = inlined_call_operand.vmem [shape: f32[1,32], index: 2, kind: input, shape index: {}]   ;;  %s11036_s3 = inlined_call_operand.vmem [shape: f32[2,2,32], index: 3, kind: output, shape index: {}]  }
   0x1 LB: > { %s8882_s13 = sadd.s32 4294967295, %s8852_s12   ;;  %p7248_p0 = scmp.ge.s32.totalorder %s8852_s12, 1  ;;  %s8852_s12 = sphi %s8876_s12, %s13_s12  }
   0x2   : > { %p139_p1 = scmp.lt.s32.totalorder %s8852_s12, 3 }
   0x4   : > { %p140_p2 = pnand %p7248_p0, %p139_p1 }
   0x6   : > { %143 = sbr.rel (%p140_p2) target bundleno = 1543 (0x607), region = 32 }
   0xb   : > { %v817_v0 = vld [vmem:[%s11034_s1] sm:$0x3]  ;;  %vm947_vm0 = vcmask 1041408   ;;  %s7249_s16 = sshll.u32 %s8882_s13, 1  ;;  %v7441_v2 = vld [vmem:[%s11034_s1 + $0x4] sm:$0x3] }
   0xc   : > { %v949_v1 = vsel %vm947_vm0, %v817_v0, 0  ;;  %p164_p3 = scmp.lt.s32.totalorder %s7249_s16, 3  ;;  %v7364_v3 = vld [vmem:[%s11034_s1 + $0x2] sm:$0x3]  ;;  %v8898_v4 = vsel %vm947_vm0, %v7441_v2, 0  ;;  %vm898_vm1 = vcmask 31744  }
   0xd   : > { %8735 = vmatpush.bf16.msra.mxu2 %v949_v1  ;;  %958 = vmatpush.bf16.msra.mxu0 %v949_v1  ;;  %v8901_v5 = vsel %vm947_vm0, %v7364_v3, 0  ;;  %v7458_v6 = vld [vmem:[%s11034_s1 + $0x6] sm:$0x3]  ;;  %v7539_v8 = vld [vmem:[%s11034_s1 + $0x8] sm:$0x3]  ;;  %vm1533_vm3 = vcmask 1046528  }
   0xe   : > { %s11300_s16 = smov (!%p164_p3, %s7249_s16), 3  ;;  %1413 = vmatpush.bf16.msra.mxu1 %v8901_v5  ;;  %v8909_v7 = vsel %vm947_vm0, %v7458_v6, 0  ;;  %v7616_v9 = vld [vmem:[%s11034_s1 + $0xa] sm:$0x3]  ;;  %8736 = vmatpush.bf16.msra.mxu3 %v8901_v5  ;;  %v8919_v10 = vsel %vm947_vm0, %v7539_v8, 0  ;;  %p170_p4 = scmp.lt.s32.totalorder %s8882_s13, 1 }
   0xf   : > { %v8922_v11 = vsel %vm947_vm0, %v7616_v9, 0  ;;  %s8737_s27 = smul.u32 148, %s11300_s16  ;;  %vm1222_vm2 = vsmask.f32 7424 }
  0x10   : > { %s11302_s13 = smov (!%p170_p4, %s8882_s13), 1 }
  0x11   : > { %1625 = vmatpush.bf16.msrb.mxu2 %v8898_v4  ;;  %2397 = vmatpush.bf16.msrb.mxu0 %v8919_v10  ;;  %s8930_s30 = scalar_lea.vmem %s11033_s0, %s8737_s27  ;;  %s7251_s20 = sshll.u32 %s11302_s13, 1 }
  0x12   : > { %1943 = vmatpush.bf16.msrb.mxu3 %v8909_v7  ;;  %2608 = vmatpush.bf16.msrb.mxu1 %v8922_v11  ;;  %v8534_v12 = vld [vmem:[%s8930_s30 + $0x40] sm:$0xff]  ;;  %v8936_v15 = vld [vmem:[%s8930_s30 + $0x8] sm:$0xff]  ;;  %v8957_v32 = vld [vmem:[%s8930_s30 + $0x10] sm:$0xff]  ;;  %s173_s23 = scalar_lea.vmem %s11036_s3, %s7251_s20 }
  0x13   : > { %v8526_v13 = vld [vmem:[%s8930_s30] sm:$0xff]  ;;  %v8942_v19 = vld [vmem:[%s8930_s30 + $0x48] sm:$0xff]  ;;  %7356 = vmatmul.msk.bf16.vlgmr.msra.gmra.mxu2 %vm898_vm1, %v8534_v12  ;;  %v1231_v21 = vshll.u32 %v8936_v15, 16  ;;  %v8961_v33 = vld [vmem:[%s8930_s30 + $0x50] sm:$0xff]  ;;  %v1235_v34 = vshrl.u32 %v8936_v15, 16  ;;  %v1239_v35 = vshll.u32 %v8957_v32, 16 }
  0x14   : > { %v8713_v14 = vld [vmem:[%s8930_s30] sm:$0xff]   ;;  %7348 = vmatmul.msk.bf16.vlgmr.msra.gmra.mxu0 %vm898_vm1, %v8526_v13  ;;  %v1295_v24 = vshll.u32 %v8942_v19, 16  ;;  %v8535_v36 = vld [vmem:[%s8930_s30 + $0x48] sm:$0xff]  ;;  %v1299_v38 = vshrl.u32 %v8942_v19, 16  ;;  %v1303_v39 = vshll.u32 %v8961_v33, 16  ;;  %v8975_v46 = vld [vmem:[%s8930_s30 + $0x18] sm:$0xff] }
  0x15   : > { %v1224_v16 = vshrl.u32 %v8713_v14, 16  ;;  %v1226_v17 = vshll.u32 %v8713_v14, 16  ;;  %v8939_v18 = vld [vmem:[%s8930_s30 + $0x40] sm:$0xff]  ;;  %v1233_v26 = vrot.slane %v1231_v21, 1  ;;  %v8527_v37 = vld [vmem:[%s8930_s30 + $0x8] sm:$0xff]  ;;  %v1241_v41 = vrot.slane %v1239_v35, 1 }
  0x16   : > { %v1287_v22 = vshll.u32 %v8939_v18, 16  ;;  %v1291_v23 = vshrl.u32 %v8939_v18, 16  ;;  %v1297_v28 = vrot.slane %v1295_v24, 1  ;;  %v1305_v43 = vrot.slane %v1303_v39, 1  ;;  %v8979_v47 = vld [vmem:[%s8930_s30 + $0x58] sm:$0xff]  ;;  %v8536_v50 = vld [vmem:[%s8930_s30 + $0x50] sm:$0xff] }
  0x17   : > { %v1228_v20 = vrot.slane %v1226_v17, 1  ;;  %v1237_v40 = vor.u32 %v1235_v34, %v1233_v26  ;;  %v1243_v48 = vshrl.u32 %v8957_v32, 16  ;;  %v1247_v49 = vshll.u32 %v8975_v46, 16  ;;  %v8528_v51 = vld [vmem:[%s8930_s30 + $0x10] sm:$0xff]  ;;  %v8993_v60 = vld [vmem:[%s8930_s30 + $0x20] sm:$0xff]  ;;  %v8537_v0 = vld [vmem:[%s8930_s30 + $0x58] sm:$0xff] }
  0x18   : > { %v8950_v27 = vrot.slane %v1287_v22, 1  ;;  %v1301_v42 = vor.u32 %v1299_v38, %v1297_v28  ;;  %v1307_v52 = vshrl.u32 %v8961_v33, 16  ;;  %v1311_v53 = vshll.u32 %v8979_v47, 16  ;;  %v8553_v61 = vld [vmem:[%s8930_s30 + $0x60] sm:$0xff]  ;;  %v8554_v17 = vld [vmem:[%s8930_s30 + $0x68] sm:$0xff]  ;;  %v9022_v35 = vld [vmem:[%s8930_s30 + $0x30] sm:$0xff] }
  0x19   : > { %v1229_v25 = vor.u32 %v1228_v20, %v1224_v16  ;;  %v1242_v44 = vsel %vm1222_vm2, %v1237_v40, %v1241_v41  ;;  %v1245_v54 = vor.u32 %v1243_v48, %v1241_v41  ;;  %v1249_v55 = vrot.slane %v1247_v49, 1  ;;  %v9008_v16 = vld [vmem:[%s8930_s30 + $0x28] sm:$0xff]  ;;  %v8538_v22 = vld [vmem:[%s8930_s30 + $0x60] sm:$0xff] }
  0x1a   : > { %v1293_v30 = vor.u32 %v1291_v23, %v8950_v27  ;;  %v1306_v45 = vsel %vm1222_vm2, %v1301_v42, %v1305_v43  ;;  %v1309_v56 = vor.u32 %v1307_v52, %v1305_v43  ;;  %v1313_v57 = vrot.slane %v1311_v53, 1  ;;  %v8530_v23 = vld [vmem:[%s8930_s30 + $0x20] sm:$0xff]  ;;  %v8539_v39 = vld [vmem:[%s8930_s30 + $0x68] sm:$0xff]  ;;  %v8556_v52 = vld [vmem:[%s8930_s30 + $0x78] sm:$0xff] }
  0x1b   : > { %v1234_v29 = vsel %vm1222_vm2, %v1229_v25, %v1233_v26  ;;  %v1250_v58 = vsel %vm1222_vm2, %v1245_v54, %v1249_v55  ;;  %v1251_v62 = vshrl.u32 %v8975_v46, 16  ;;  %v1255_v63 = vshll.u32 %v8993_v60, 16  ;;  %v8531_v40 = vld [vmem:[%s8930_s30 + $0x28] sm:$0xff] }
  0x1c   : > { %7425 = vmatmul.msk.bf16.vlgmr.msra.gmra.mxu1 %vm898_vm1, %v1234_v29  ;;  %v1298_v31 = vsel %vm1222_vm2, %v1293_v30, %v1297_v28  ;;  %v1314_v59 = vsel %vm1222_vm2, %v1309_v56, %v1313_v57  ;;  %v1315_v2 = vshrl.u32 %v8979_v47, 16  ;;  %v1319_v3 = vshll.u32 %v8553_v61, 16  ;;  %v8532_v56 = vld [vmem:[%s8930_s30 + $0x30] sm:$0xff] }
  0x1d   : > { %4184 = vmatpush.bf16.msra.mxu1 %v949_v1  ;;  %7433 = vmatmul.msk.bf16.vlgmr.msra.gmra.mxu3 %vm898_vm1, %v1298_v31  ;;  %v8529_v1 = vld [vmem:[%s8930_s30 + $0x18] sm:$0xff]  ;;  %v1253_v6 = vor.u32 %v1251_v62, %v1249_v55  ;;  %v1257_v8 = vrot.slane %v1255_v63, 1  ;;  %v1259_v20 = vshrl.u32 %v8993_v60, 16  ;;  %v1263_v21 = vshll.u32 %v9008_v16, 16  ;;  %v8540_v55 = vld [vmem:[%s8930_s30 + $0x70] sm:$0xff] }
  0x1e   : > { %v1317_v9 = vor.u32 %v1315_v2, %v1313_v57  ;;  %v1321_v12 = vrot.slane %v1319_v3, 1  ;;  %v1323_v24 = vshrl.u32 %v8553_v61, 16  ;;  %v1327_v25 = vshll.u32 %v8554_v17, 16  ;;  %v7633_v3 = vld [vmem:[%s11034_s1 + $0xc] sm:$0x3] }
  0x1f   : > { %v1258_v13 = vsel %vm1222_vm2, %v1253_v6, %v1257_v8  ;;  %v1261_v26 = vor.u32 %v1259_v20, %v1257_v8  ;;  %v1265_v28 = vrot.slane %v1263_v21, 1  ;;  %v1271_v38 = vshll.u32 %v9022_v35, 16  ;;  %v8533_v20 = vld [vmem:[%s8930_s30 + $0x38] sm:$0xff] }
  0x20   : > { %v1322_v14 = vsel %vm1222_vm2, %v1317_v9, %v1321_v12  ;;  %v1325_v29 = vor.u32 %v1323_v24, %v1321_v12  ;;  %v1329_v30 = vrot.slane %v1327_v25, 1  ;;  %v1331_v41 = vshrl.u32 %v8554_v17, 16  ;;  %v7714_v12 = vld [vmem:[%s11034_s1 + $0xe] sm:$0x3]  ;;  %v8541_v17 = vld [vmem:[%s8930_s30 + $0x78] sm:$0xff] }
  0x21   : > { %v1266_v31 = vsel %vm1222_vm2, %v1261_v26, %v1265_v28  ;;  %v1275_v53 = vshrl.u32 %v9022_v35, 16  ;;  %v9053_v8 = vsel %vm947_vm0, %v7633_v3, 0  ;;  %v1347_v21 = vshrl.u32 %v8556_v52, 16  ;;  %v8727_v24 = vld [vmem:[%s8930_s30 + $0x8] sm:$0xff]  }
  0x22   : > { %v1330_v34 = vsel %vm1222_vm2, %v1325_v29, %v1329_v30  ;;  %2926 = vmatpush.bf16.msra.mxu2 %v9053_v8 }
  0x23   : > { %7357 = vmatmul.msk.bf16.gmra.mxu2 %vm898_vm1, %v8535_v36  ;;  %v8555_v36 = vld [vmem:[%s8930_s30 + $0x70] sm:$0xff] }
  0x24   : > { %7349 = vmatmul.msk.bf16.gmra.mxu0 %vm898_vm1, %v8527_v37  ;;  %v1267_v37 = vshrl.u32 %v9008_v16, 16  ;;  %v1335_v42 = vshll.u32 %v8555_v36, 16  ;;  %v1339_v57 = vshrl.u32 %v8555_v36, 16  ;;  %v8724_v36 = vld [vmem:[%s8930_s30] sm:$0xf0] }
  0x26   : > { %v1269_v43 = vor.u32 %v1267_v37, %v1265_v28  ;;  %v1337_v48 = vrot.slane %v1335_v42, 1  ;;  %v8725_v37 = vld [vmem:[%s8930_s30] sm:$0xe]  ;;  %v2208_v42 = vshrl.u32 %v8727_v24, 16 }
  0x28   : > { %v1341_v62 = vor.u32 %v1339_v57, %v1337_v48  ;;  %v11037_v57 = vmov 0.0  }
  0x2c   : > { %7426 = vmatmul.msk.bf16.gmra.mxu1 %vm898_vm1, %v1242_v44  ;;  %v1273_v44 = vrot.slane %v1271_v38, 1 }
  0x2d   : > { %7434 = vmatmul.msk.bf16.gmra.mxu3 %vm898_vm1, %v1306_v45  ;;  %v1333_v45 = vor.u32 %v1331_v41, %v1329_v30  ;;  %v176_v30 = vlaneseq  ;;  %v8726_v41 = vor.u32 %v8725_v37, %v8724_v36 }
  0x2e   : > { %v1274_v49 = vsel %vm1222_vm2, %v1269_v43, %v1273_v44 }
  0x33   : > { %7358 = vmatmul.msk.bf16.gmra.mxu2 %vm898_vm1, %v8536_v50  ;;  %v1338_v50 = vsel %vm1222_vm2, %v1333_v45, %v1337_v48  ;;  %v8728_v48 = vld [vmem:[%s8930_s30 + $0x8] sm:$0xf0] }
  0x34   : > { %7350 = vmatmul.msk.bf16.gmra.mxu0 %vm898_vm1, %v8528_v51  ;;  %v9036_v51 = vld [vmem:[%s8930_s30 + $0x38] sm:$0xff] }
  0x35   : > { %v1279_v54 = vshll.u32 %v9036_v51, 16 }
  0x37   : > { %v1281_v61 = vrot.slane %v1279_v54, 1 }
  0x3c   : > { %7427 = vmatmul.msk.bf16.gmra.mxu1 %vm898_vm1, %v1250_v58  ;;  %v1343_v58 = vshll.u32 %v8556_v52, 16 }
  0x3d   : > { %7435 = vmatmul.msk.bf16.gmra.mxu3 %vm898_vm1, %v1314_v59  ;;  %v1277_v59 = vor.u32 %v1275_v53, %v1273_v44 }
  0x3e   : > { %v1345_v63 = vrot.slane %v1343_v58, 1 }
  0x40   : > { %v1346_v6 = vsel %vm1222_vm2, %v1341_v62, %v1345_v63  ;;  %v1349_v28 = vor.u32 %v1347_v21, %v1345_v63 }
  0x43   : > { %7359 = vmatmul.msk.bf16.gmra.mxu2 %vm898_vm1, %v8537_v0  ;;  %v1136_v0 = vld [vmem:[%s8930_s30 + $0x80] sm:$0x1] }
  0x44   : > { %7351 = vmatmul.msk.bf16.gmra.mxu0 %vm898_vm1, %v8529_v1  ;;  %v1282_v1 = vsel %vm1222_vm2, %v1277_v59, %v1281_v61  ;;  %v1204_v2 = vunpack.c.l.b16 %v1136_v0 }
  0x46   : > { %v9058_v9 = vpack.c.b16 %v1204_v2, %v1204_v2 }
  0x4c   : > { %7428 = vmatmul.msk.bf16.gmra.mxu1 %vm898_vm1, %v1258_v13  ;;  %v9064_v13 = vsel %vm947_vm0, %v7714_v12, 0 }
  0x4d   : > { %7436 = vmatmul.msk.bf16.gmra.mxu3 %vm898_vm1, %v1322_v14  ;;  %v1283_v14 = vshrl.u32 %v9036_v51, 16 }
  0x4e   : > { %3380 = vmatpush.bf16.msra.mxu3 %v9064_v13 }
  0x4f   : > { %v1285_v26 = vor.u32 %v1283_v14, %v1281_v61 }
  0x51   : > { %v1290_v38 = vsel %vm1222_vm2, %v1285_v26, %v8950_v27  ;;  %v1535_v27 = vrot.slane %v8936_v15, 1 }
  0x53   : > { %7360 = vmatmul.msk.bf16.gmra.mxu2 %vm898_vm1, %v8538_v22  ;;  %v1351_v22 = vshll.u32 %v9058_v9, 16 }
  0x54   : > { %7352 = vmatmul.msk.bf16.gmra.mxu0 %vm898_vm1, %v8530_v23  ;;  %v7791_v23 = vld [vmem:[%s11034_s1 + $0x10] sm:$0x3] }
  0x55   : > { %v9076_v25 = vsel %vm947_vm0, %v7791_v23, 0  ;;  %v1353_v29 = vrot.slane %v1351_v22, 1  ;;  %v1537_v23 = vrot.slane %v8957_v32, 1 }
  0x56   : > { %3591 = vmatpush.bf16.msra.mxu0 %v9076_v25 }
  0x57   : > { %v1538_v37 = vsel %vm1533_vm3, %v1535_v27, %v1537_v23 }
  0x5c   : > { %7429 = vmatmul.msk.bf16.gmra.mxu1 %vm898_vm1, %v1266_v31  ;;  %v9082_v31 = vld [vmem:[%s8930_s30 + $0x10] sm:$0xff] }
  0x5d   : > { %7437 = vmatmul.msk.bf16.gmra.mxu3 %vm898_vm1, %v1330_v34  ;;  %v2210_v34 = vshll.u32 %v8727_v24, 16  ;;  %v2215_v44 = vshll.u32 %v9082_v31, 16  ;;  %v2518_v15 = vrot.slane %v9082_v31, 1  ;;  %v2219_v21 = vshrl.u32 %v9082_v31, 16 }
  0x5f   : > { %v2212_v43 = vrot.slane %v2210_v34, 1  ;;  %v2217_v53 = vrot.slane %v2215_v44, 1 }
  0x61   : > { %v2213_v52 = vor.u32 %v2212_v43, %v2208_v42  ;;  %v2221_v24 = vor.u32 %v2219_v21, %v2217_v53  ;;  %v9144_v43 = vld [vmem:[%s8930_s30 + $0x20] sm:$0xff] }
  0x63   : > { %7361 = vmatmul.msk.bf16.gmra.mxu2 %vm898_vm1, %v8539_v39  ;;  %v1354_v39 = vsel %vm1222_vm2, %v1349_v28, %v1353_v29  ;;  %v2218_v61 = vsel %vm1222_vm2, %v2213_v52, %v2217_v53  ;;  %v8558_v52 = vld [vmem:[%s8930_s30 + $0x10] sm:$0xff] }
  0x64   : > { %7353 = vmatmul.msk.bf16.gmra.mxu0 %vm898_vm1, %v8531_v40  ;;  %v9089_v40 = vshrl.u32 %v176_v30, 7 }
  0x66   : > { %11108 = vst [vmem:[#allocation2_spill] sm:$0xff] %v9089_v40  ;;  %v213_v45 = vand.u32 15, %v9089_v40  ;;  %v179_v12 = vadd.s32 16, %v9089_v40  ;;  %v195_v36 = vadd.s32 144, %v9089_v40 }
  0x68   : > { %vm593_vm4 = vcmp.ge.s32.totalorder %v213_v45, 1 }
  0x69   : > { %v9101_v58 = vsel %vm593_vm4, 1.0, %v11037_v57 }
  0x6a   : > { %11109 = vst [vmem:[#allocation3_spill] sm:$0xff] %v9101_v58 }
  0x6c   : > { %7430 = vmatmul.msk.bf16.gmra.mxu1 %vm898_vm1, %v1274_v49  ;;  %v8729_v49 = vld [vmem:[%s8930_s30 + $0x8] sm:$0xe] }
  0x6d   : > { %7438 = vmatmul.msk.bf16.gmra.mxu3 %vm898_vm1, %v1338_v50  ;;  %v1534_v50 = vrot.slane %v8726_v41, 1  ;;  %v8730_v54 = vor.u32 %v8729_v49, %v8728_v48  ;;  %v339_v41 = vand.u32 15, %v195_v36  ;;  %v181_v49 = vadd.s32 32, %v9089_v40 }
  0x6f   : > { %v2517_v62 = vrot.slane %v8730_v54, 1  ;;  %vm611_vm7 = vcmp.ge.s32.totalorder %v339_v41, 1 }
  0x73   : > { %7362 = vmatmul.msk.bf16.gmra.mxu2 %vm898_vm1, %v8540_v55  ;;  %v193_v55 = vadd.s32 128, %v9089_v40 }
  0x74   : > { %7354 = vmatmul.msk.bf16.gmra.mxu0 %vm898_vm1, %v8532_v56  ;;  %v1536_v56 = vsel %vm1533_vm3, %v1534_v50, %v1535_v27 }
  0x75   : > { %v325_v63 = vand.u32 15, %v193_v55 }
  0x77   : > { %vm609_vm5 = vcmp.ge.s32.totalorder %v325_v63, 1 }
  0x7c   : > { %7431 = vmatmul.msk.bf16.gmra.mxu1 %vm898_vm1, %v1282_v1  ;;  %v9109_v1 = vld [vmem:[%s8930_s30 + $0x18] sm:$0xff] }
  0x7d   : > { %7439 = vmatmul.msk.bf16.gmra.mxu3 %vm898_vm1, %v1346_v6  ;;  %v2519_v6 = vsel %vm1533_vm3, %v2517_v62, %v2518_v15  ;;  %v2223_v22 = vshll.u32 %v9109_v1, 16  ;;  %v2227_v55 = vshrl.u32 %v9109_v1, 16  ;;  %v1539_v62 = vrot.slane %v8975_v46, 1 }
  0x7f   : > { %v2225_v26 = vrot.slane %v2223_v22, 1 }
  0x83   : > { %7363 = vmatmul.msk.bf16.gmra.mxu2 %vm898_vm1, %v8541_v17  ;;  %v8557_v17 = vld [vmem:[%s8930_s30 + $0x8] sm:$0xff] }
  0x84   : > { %7355 = vmatmul.msk.bf16.gmra.mxu0 %vm898_vm1, %v8533_v20 }
  0x8c   : > { %7432 = vmatmul.msk.bf16.gmra.mxu1 %vm898_vm1, %v1290_v38  ;;  %v2226_v38 = vsel %vm1222_vm2, %v2221_v24, %v2225_v26 }
  0x8d   : > { %7440 = vmatmul.msk.bf16.gmra.mxu3 %vm898_vm1, %v1354_v39  ;;  %v2520_v39 = vrot.slane %v9109_v1, 1 }
  0x8f   : > { %v2521_v48 = vsel %vm1533_vm3, %v2518_v15, %v2520_v39  ;;  %v2229_v15 = vor.u32 %v2227_v55, %v2225_v26 }
  0x91   : > { %v960_v59 = vpop.f32.mrf.mxu0 }
  0x92   : > { %v1040_v0 = vmul.f32 %v9101_v58, %v960_v59  ;;  %v9157_v59 = vsel %vm611_vm7, 1.0, %v11037_v57 }
  0x93   : > { %7442 = vmatmul.msk.bf16.vlgmr.msrb.gmra.mxu2 %vm898_vm1, %v1536_v56  ;;  %v2231_v56 = vshll.u32 %v9144_v43, 16 }
  0x94   : > { %7600 = vmatmul.msk.bf16.vlgmr.msrb.gmra.mxu0 %vm898_vm1, %v2218_v61  ;;  %4633 = vmatpush.bf16.msrb.mxu2 %v8901_v5  ;;  %v9122_v5 = vsel %vm609_vm5, 1.0, %v11037_v57  ;;  %v241_v61 = vand.u32 15, %v181_v49 }
  0x95   : > { %5152 = vmatpush.bf16.msrb.mxu0 %v8909_v7  ;;  %v227_v7 = vand.u32 15, %v179_v12  ;;  %v2233_v63 = vrot.slane %v2231_v56, 1  ;;  %v197_v12 = vadd.s32 160, %v9089_v40 }
  0x96   : > { %v1000_v2 = vpop.f32.mrf.mxu2  ;;  %vm597_vm8 = vcmp.ge.s32.totalorder %v241_v61, 1  ;;  %v199_v61 = vadd.s32 176, %v9089_v40 }
  0x97   : > { %v1056_v28 = vmul.f32 %v9122_v5, %v1000_v2  ;;  %vm595_vm6 = vcmp.ge.s32.totalorder %v227_v7, 1  ;;  %v2234_v46 = vsel %vm1222_vm2, %v2229_v15, %v2233_v63  ;;  %v9170_v22 = vsel %vm597_vm8, 1.0, %v11037_v57 }
  0x98   : > { %11110 = vst [vmem:[#allocation4_spill] sm:$0xff] %v9170_v22  ;;  %v2522_v7 = vrot.slane %v9144_v43, 1  ;;  %v353_v24 = vand.u32 15, %v197_v12 }
  0x99   : > { %v1415_v3 = vpop.f32.mrf.mxu1  ;;  %v962_v20 = vpop.f32.mrf.mxu0 }
  0x9a   : > { %v9115_v14 = vadd.f32 %v1415_v3, %v1040_v0  ;;  %vm613_vm9 = vcmp.ge.s32.totalorder %v353_v24, 1  ;;  %v185_v24 = vadd.s32 64, %v9089_v40 }
  0x9c   : > { %7617 = vmatmul.msk.bf16.vlgmr.msrb.gmra.mxu1 %vm898_vm1, %v2519_v6 }
  0x9d   : > { %5601 = vmatpush.bf16.msrb.mxu1 %v8919_v10  ;;  %7523 = vmatmul.msk.bf16.vlgmr.msrb.gmra.mxu3 %vm898_vm1, %v8557_v17 }
  0x9e   : > { %4839 = vmatpush.bf16.msrb.mxu3 %v8898_v4  ;;  %v1002_v30 = vpop.f32.mrf.mxu2  ;;  %v9137_v4 = vsel %vm595_vm6, 1.0, %v11037_v57 }
  0xa0   : > { %v1455_v29 = vpop.f32.mrf.mxu3 }
  0xa1   : > { %v9129_v31 = vadd.f32 %v1455_v29, %v1056_v28  ;;  %v1417_v34 = vpop.f32.mrf.mxu1  ;;  %v965_v32 = vpop.f32.mrf.mxu0  ;;  %v9177_v28 = vld [vmem:[%s8930_s30 + $0x28] sm:$0xff] }
  0xa2   : > { %v9132_v10 = vadd.f32 %v1417_v34, %v962_v20  ;;  %v1042_v42 = vmul.f32 %v9137_v4, %v965_v32  ;;  %v1540_v20 = vsel %vm1533_vm3, %v1537_v23, %v1539_v62  ;;  %v183_v34 = vadd.s32 48, %v9089_v40  ;;  %v8559_v32 = vld [vmem:[%s8930_s30 + $0x18] sm:$0xff] }
  0xa3   : > { %7443 = vmatmul.msk.bf16.gmra.mxu2 %vm898_vm1, %v1538_v37 }
  0xa4   : > { %7601 = vmatmul.msk.bf16.gmra.mxu0 %vm898_vm1, %v2226_v38 }
  0xa6   : > { %v1005_v45 = vpop.f32.mrf.mxu2 }
  0xa7   : > { %v1058_v0 = vmul.f32 %v9157_v59, %v1005_v45  ;;  %v9190_v45 = vsel %vm613_vm9, 1.0, %v11037_v57 }
  0xa8   : > { %v1457_v44 = vpop.f32.mrf.mxu3  ;;  %11111 = vst [vmem:[#allocation5_spill] sm:$0xff] %v9190_v45 }
  0xa9   : > { %v9148_v50 = vadd.f32 %v1457_v44, %v1002_v30  ;;  %v1420_v27 = vpop.f32.mrf.mxu1  ;;  %v967_v54 = vpop.f32.mrf.mxu0  ;;  %v2523_v30 = vsel %vm1533_vm3, %v2520_v39, %v2522_v7  ;;  %v2239_v44 = vshll.u32 %v9177_v28, 16  ;;  %v255_v39 = vand.u32 15, %v183_v34 }
  0xaa   : > { %v9151_v53 = vadd.f32 %v1420_v27, %v1042_v42  ;;  %v2235_v42 = vshrl.u32 %v9144_v43, 16 }
  0xab   : > { %v2241_v27 = vrot.slane %v2239_v44, 1  ;;  %vm599_vm10 = vcmp.ge.s32.totalorder %v255_v39, 1 }
  0xac   : > { %7618 = vmatmul.msk.bf16.gmra.mxu1 %vm898_vm1, %v2521_v48  ;;  %v1541_v48 = vrot.slane %v8993_v60, 1  ;;  %v2237_v49 = vor.u32 %v2235_v42, %v2233_v63  ;;  %v9203_v63 = vsel %vm599_vm10, 1.0, %v11037_v57  ;;  %v1543_v42 = vrot.slane %v9008_v16, 1 }
  0xad   : > { %7524 = vmatmul.msk.bf16.gmra.mxu3 %vm898_vm1, %v8558_v52  ;;  %11112 = vst [vmem:[#allocation6_spill] sm:$0xff] %v9203_v63 }
  0xae   : > { %v1007_v3 = vpop.f32.mrf.mxu2  ;;  %v2242_v60 = vsel %vm1222_vm2, %v2237_v49, %v2241_v27 }
  0xb0   : > { %v1460_v2 = vpop.f32.mrf.mxu3 }
  0xb1   : > { %v9162_v1 = vadd.f32 %v1460_v2, %v1058_v0  ;;  %v1422_v6 = vpop.f32.mrf.mxu1  ;;  %v970_v21 = vpop.f32.mrf.mxu0  ;;  %v1542_v0 = vsel %vm1533_vm3, %v1539_v62, %v1541_v48 }
  0xb2   : > { %v9165_v17 = vadd.f32 %v1422_v6, %v967_v54  ;;  %v1044_v26 = vmul.f32 %v9170_v22, %v970_v21  ;;  %v367_v6 = vand.u32 15, %v199_v61 }
  0xb3   : > { %7444 = vmatmul.msk.bf16.gmra.mxu2 %vm898_vm1, %v1540_v20  ;;  %v9210_v20 = vld [vmem:[%s8930_s30 + $0x30] sm:$0xff] }
  0xb4   : > { %7602 = vmatmul.msk.bf16.gmra.mxu0 %vm898_vm1, %v2234_v46  ;;  %vm615_vm11 = vcmp.ge.s32.totalorder %v367_v6, 1 }
  0xb6   : > { %v1010_v23 = vpop.f32.mrf.mxu2 }
  0xb7   : > { %v1060_v52 = vmul.f32 %v9190_v45, %v1010_v23  ;;  %v8560_v23 = vld [vmem:[%s8930_s30 + $0x20] sm:$0xff] }
  0xb8   : > { %v1462_v29 = vpop.f32.mrf.mxu3 }
  0xb9   : > { %v9181_v36 = vadd.f32 %v1462_v29, %v1007_v3  ;;  %v1425_v37 = vpop.f32.mrf.mxu1  ;;  %v972_v41 = vpop.f32.mrf.mxu0  ;;  %v2524_v3 = vrot.slane %v9177_v28, 1 }
  0xba   : > { %v9184_v38 = vadd.f32 %v1425_v37, %v1044_v26  ;;  %v2243_v37 = vshrl.u32 %v9177_v28, 16 }
  0xbb   : > { %v2525_v46 = vsel %vm1533_vm3, %v2522_v7, %v2524_v3  ;;  %v269_v7 = vand.u32 15, %v185_v24  ;;  %v187_v24 = vadd.s32 80, %v9089_v40 }
  0xbc   : > { %7619 = vmatmul.msk.bf16.gmra.mxu1 %vm898_vm1, %v2523_v30  ;;  %v2245_v44 = vor.u32 %v2243_v37, %v2241_v27 }
  0xbd   : > { %7525 = vmatmul.msk.bf16.gmra.mxu3 %vm898_vm1, %v8559_v32  ;;  %v2247_v32 = vshll.u32 %v9210_v20, 16  ;;  %vm601_vm12 = vcmp.ge.s32.totalorder %v269_v7, 1  ;;  %v2251_v7 = vshrl.u32 %v9210_v20, 16 }
  0xbe   : > { %v1012_v55 = vpop.f32.mrf.mxu2  ;;  %v9236_v27 = vsel %vm601_vm12, 1.0, %v11037_v57 }
  0xbf   : > { %v2249_v39 = vrot.slane %v2247_v32, 1  ;;  %11116 = vst [vmem:[#allocation10_spill] sm:$0xff] %v9236_v27 }
  0xc0   : > { %v1465_v54 = vpop.f32.mrf.mxu3 }
  0xc1   : > { %v9195_v43 = vadd.f32 %v1465_v54, %v1060_v52  ;;  %v1427_v56 = vpop.f32.mrf.mxu1  ;;  %v975_v2 = vpop.f32.mrf.mxu0  ;;  %v2250_v16 = vsel %vm1222_vm2, %v2245_v44, %v2249_v39 }
  0xc2   : > { %v9198_v15 = vadd.f32 %v1427_v56, %v972_v41  ;;  %v1046_v12 = vmul.f32 %v9203_v63, %v975_v2  ;;  %v9223_v41 = vsel %vm615_vm11, 1.0, %v11037_v57  ;;  %v201_v56 = vadd.s32 192, %v9089_v40 }
  0xc3   : > { %7445 = vmatmul.msk.bf16.gmra.mxu2 %vm898_vm1, %v1542_v0  ;;  %11114 = vst [vmem:[#allocation8_spill] sm:$0xff] %v9223_v41  ;;  %v1544_v0 = vsel %vm1533_vm3, %v1541_v48, %v1543_v42 }
  0xc4   : > { %7603 = vmatmul.msk.bf16.gmra.mxu0 %vm898_vm1, %v2242_v60  ;;  %v2526_v60 = vrot.slane %v9210_v20, 1  ;;  %v381_v6 = vand.u32 15, %v201_v56 }
  0xc6   : > { %v1015_v62 = vpop.f32.mrf.mxu2  ;;  %vm617_vm13 = vcmp.ge.s32.totalorder %v381_v6, 1  ;;  %v203_v6 = vadd.s32 208, %v9089_v40 }
  0xc7   : > { %v1062_v49 = vmul.f32 %v9223_v41, %v1015_v62 }
  0xc8   : > { %v1467_v21 = vpop.f32.mrf.mxu3 }
  0xc9   : > { %v9214_v26 = vadd.f32 %v1467_v21, %v1012_v55  ;;  %v1430_v29 = vpop.f32.mrf.mxu1  ;;  %v977_v34 = vpop.f32.mrf.mxu0  ;;  %v9243_v21 = vld [vmem:[%s8930_s30 + $0x38] sm:$0xff] }
  0xca   : > { %v9217_v30 = vadd.f32 %v1430_v29, %v1046_v12  ;;  %v2255_v44 = vshll.u32 %v9243_v21, 16 }
  0xcb   : > { %11113 = vst [vmem:[#allocation7_spill] sm:$0xff] %v9214_v26 }
  0xcc   : > { %7620 = vmatmul.msk.bf16.gmra.mxu1 %vm898_vm1, %v2525_v46  ;;  %v2527_v46 = vsel %vm1533_vm3, %v2524_v3, %v2526_v60  ;;  %v283_v3 = vand.u32 15, %v187_v24  ;;  %v395_v24 = vand.u32 15, %v203_v6  ;;  %v2259_v6 = vshrl.u32 %v9243_v21, 16 }
  0xcd   : > { %7526 = vmatmul.msk.bf16.gmra.mxu3 %vm898_vm1, %v8560_v23 }
  0xce   : > { %v1017_v54 = vpop.f32.mrf.mxu2  ;;  %vm603_vm14 = vcmp.ge.s32.totalorder %v283_v3, 1  ;;  %vm619_vm15 = vcmp.ge.s32.totalorder %v395_v24, 1 }
  0xd0   : > { %v1470_v52 = vpop.f32.mrf.mxu3 }
  0xd1   : > { %v9228_v28 = vadd.f32 %v1470_v52, %v1062_v49  ;;  %v1432_v55 = vpop.f32.mrf.mxu1  ;;  %v980_v2 = vpop.f32.mrf.mxu0  ;;  %v9256_v49 = vsel %vm617_vm13, 1.0, %v11037_v57  ;;  %v1545_v52 = vrot.slane %v9022_v35, 1 }
  0xd2   : > { %v9231_v61 = vadd.f32 %v1432_v55, %v977_v34  ;;  %v1048_v12 = vmul.f32 %v9236_v27, %v980_v2  ;;  %v8561_v34 = vld [vmem:[%s8930_s30 + $0x28] sm:$0xff]  ;;  %11118 = vst [vmem:[#allocation12_spill] sm:$0xff] %v9256_v49  ;;  %v2257_v55 = vrot.slane %v2255_v44, 1  ;;  %v189_v44 = vadd.s32 96, %v9089_v40 }
  0xd3   : > { %11115 = vst [vmem:[#allocation9_spill] sm:$0xff] %v9228_v28  ;;  %7446 = vmatmul.msk.bf16.gmra.mxu2 %vm898_vm1, %v1544_v0 }
  0xd4   : > { %7604 = vmatmul.msk.bf16.gmra.mxu0 %vm898_vm1, %v2250_v16 }
  0xd6   : > { %v1020_v48 = vpop.f32.mrf.mxu2 }
  0xd7   : > { %v1064_v56 = vmul.f32 %v9256_v49, %v1020_v48  ;;  %v2528_v48 = vrot.slane %v9243_v21, 1 }
  0xd8   : > { %v1472_v62 = vpop.f32.mrf.mxu3 }
  0xd9   : > { %v9247_v29 = vadd.f32 %v1472_v62, %v1017_v54  ;;  %v1435_v23 = vpop.f32.mrf.mxu1  ;;  %v982_v32 = vpop.f32.mrf.mxu0  ;;  %v2253_v54 = vor.u32 %v2251_v7, %v2249_v39  ;;  %v1546_v62 = vsel %vm1533_vm3, %v1543_v42, %v1545_v52  ;;  %v9269_v39 = vsel %vm603_vm14, 1.0, %v11037_v57 }
  0xda   : > { %v9250_v37 = vadd.f32 %v1435_v23, %v1048_v12  ;;  %11120 = vst [vmem:[#allocation14_spill] sm:$0xff] %v9269_v39  ;;  %v2529_v7 = vsel %vm1533_vm3, %v2526_v60, %v2528_v48  ;;  %v297_v60 = vand.u32 15, %v189_v44 }
  0xdb   : > { %11117 = vst [vmem:[#allocation11_spill] sm:$0xff] %v9247_v29  ;;  %v2258_v35 = vsel %vm1222_vm2, %v2253_v54, %v2257_v55 }
  0xdc   : > { %7621 = vmatmul.msk.bf16.gmra.mxu1 %vm898_vm1, %v2527_v46  ;;  %vm605_vm0 = vcmp.ge.s32.totalorder %v297_v60, 1 }
  0xdd   : > { %7527 = vmatmul.msk.bf16.gmra.mxu3 %vm898_vm1, %v8561_v34  ;;  %v9276_v34 = vld [vmem:[%s8930_s30 + $0x40] sm:$0xff] }
  0xde   : > { %v1022_v2 = vpop.f32.mrf.mxu2 }
  0xe0   : > { %v1475_v0 = vpop.f32.mrf.mxu3 }
  0xe1   : > { %v9261_v20 = vadd.f32 %v1475_v0, %v1064_v56  ;;  %v1437_v16 = vpop.f32.mrf.mxu1  ;;  %v985_v46 = vpop.f32.mrf.mxu0  ;;  %v8562_v56 = vld [vmem:[%s8930_s30 + $0x30] sm:$0xff] }
  0xe2   : > { %v9264_v12 = vadd.f32 %v1437_v16, %v982_v32  ;;  %v1050_v23 = vmul.f32 %v9269_v39, %v985_v46  ;;  %v9289_v46 = vsel %vm619_vm15, 1.0, %v11037_v57 }
  0xe3   : > { %11119 = vst [vmem:[#allocation13_spill] sm:$0xff] %v9261_v20  ;;  %7447 = vmatmul.msk.bf16.gmra.mxu2 %vm898_vm1, %v1546_v62  ;;  %v2263_v62 = vshll.u32 %v9276_v34, 16 }
  0xe4   : > { %7605 = vmatmul.msk.bf16.gmra.mxu0 %vm898_vm1, %v2258_v35  ;;  %11122 = vst [vmem:[#allocation16_spill] sm:$0xff] %v9289_v46  ;;  %v2261_v35 = vor.u32 %v2259_v6, %v2257_v55  ;;  %v11124_v55 = vmov 0.0  }
  0xe5   : > { %v2265_v24 = vrot.slane %v2263_v62, 1  ;;  %v9302_v6 = vsel %vm605_vm0, 1.0, %v11124_v55 }
  0xe6   : > { %v1025_v42 = vpop.f32.mrf.mxu2  ;;  %11125 = vst [vmem:[#allocation18_spill] sm:$0xff] %v9302_v6 }
  0xe8   : > { %v1477_v32 = vpop.f32.mrf.mxu3 }
  0xe9   : > { %v9280_v3 = vadd.f32 %v1477_v32, %v1022_v2  ;;  %v1440_v54 = vpop.f32.mrf.mxu1  ;;  %v987_v16 = vpop.f32.mrf.mxu0  ;;  %v1547_v2 = vrot.slane %v9036_v51, 1  ;;  %v2266_v51 = vsel %vm1222_vm2, %v2261_v35, %v2265_v24  ;;  %v191_v35 = vadd.s32 112, %v9089_v40 }
  0xea   : > { %v9283_v0 = vadd.f32 %v1440_v54, %v1050_v23  ;;  %v1066_v23 = vmul.f32 %v9289_v46, %v1025_v42  ;;  %v2530_v42 = vrot.slane %v9276_v34, 1 }
  0xeb   : > { %11121 = vst [vmem:[#allocation15_spill] sm:$0xff] %v9280_v3  ;;  %v1548_v44 = vsel %vm1533_vm3, %v1545_v52, %v1547_v2 }
  0xec   : > { %7622 = vmatmul.msk.bf16.gmra.mxu1 %vm898_vm1, %v2529_v7  ;;  %v205_v7 = vadd.s32 224, %v9089_v40 }
  0xed   : > { %7528 = vmatmul.msk.bf16.gmra.mxu3 %vm898_vm1, %v8562_v56 }
  0xee   : > { %v1027_v54 = vpop.f32.mrf.mxu2  ;;  %v409_v62 = vand.u32 15, %v205_v7 }
  0xf0   : > { %v1480_v32 = vpop.f32.mrf.mxu3  ;;  %vm621_vm4 = vcmp.ge.s32.totalorder %v409_v62, 1 }
  0xf1   : > { %v9294_v21 = vadd.f32 %v1480_v32, %v1066_v23  ;;  %v1442_v3 = vpop.f32.mrf.mxu1  ;;  %v990_v56 = vpop.f32.mrf.mxu0  ;;  %v2531_v23 = vsel %vm1533_vm3, %v2528_v48, %v2530_v42  ;;  %v311_v48 = vand.u32 15, %v191_v35 }
  0xf2   : > { %v9297_v57 = vadd.f32 %v1442_v3, %v987_v16  ;;  %v1052_v60 = vmul.f32 %v9302_v6, %v990_v56  ;;  %v9309_v3 = vld [vmem:[%s8930_s30 + $0x48] sm:$0xff] }
  0xf3   : > { %11123 = vst [vmem:[#allocation17_spill] sm:$0xff] %v9294_v21  ;;  %7448 = vmatmul.msk.bf16.gmra.mxu2 %vm898_vm1, %v1548_v44  ;;  %v8563_v21 = vld [vmem:[%s8930_s30 + $0x38] sm:$0xff]  ;;  %v2267_v44 = vshrl.u32 %v9276_v34, 16  ;;  %v2271_v56 = vshll.u32 %v9309_v3, 16  ;;  %vm607_vm5 = vcmp.ge.s32.totalorder %v311_v48, 1 }
  0xf4   : > { %7606 = vmatmul.msk.bf16.gmra.mxu0 %vm898_vm1, %v2266_v51  ;;  %v9322_v51 = vsel %vm621_vm4, 1.0, %v11124_v55 }
  0xf5   : > { %11127 = vst [vmem:[#allocation20_spill] sm:$0xff] %v9322_v51  ;;  %v2269_v62 = vor.u32 %v2267_v44, %v2265_v24  ;;  %v9335_v24 = vsel %vm607_vm5, 1.0, %v11124_v55 }
  0xf6   : > { %v1030_v52 = vpop.f32.mrf.mxu2 }
  0xf8   : > { %v1482_v16 = vpop.f32.mrf.mxu3 }
  0xf9   : > { %v9313_v32 = vadd.f32 %v1482_v16, %v1027_v54  ;;  %v1445_v46 = vpop.f32.mrf.mxu1  ;;  %v992_v7 = vpop.f32.mrf.mxu0  ;;  %v1549_v54 = vrot.slane %v8939_v18, 1  ;;  %v2273_v16 = vrot.slane %v2271_v56, 1 }
  0xfa   : > { %v9316_v49 = vadd.f32 %v1445_v46, %v1052_v60  ;;  %v1068_v46 = vmul.f32 %v9322_v51, %v1030_v52  ;;  %v2532_v52 = vrot.slane %v9309_v3, 1 }
  0xfb   : > { %11126 = vst [vmem:[#allocation19_spill] sm:$0xff] %v9313_v32  ;;  %v1550_v35 = vsel %vm1533_vm3, %v1547_v2, %v1549_v54  ;;  %v2274_v18 = vsel %vm1222_vm2, %v2269_v62, %v2273_v16 }
  0xfc   : > { %7623 = vmatmul.msk.bf16.gmra.mxu1 %vm898_vm1, %v2531_v23  ;;  %v207_v23 = vadd.s32 240, %v9089_v40  ;;  %v2533_v48 = vsel %vm1533_vm3, %v2530_v42, %v2532_v52  ;;  %v1551_v42 = vrot.slane %v8942_v19, 1  ;;  %v178_v19 = vadd.s32 8, %v9089_v40 }
  0xfd   : > { %7529 = vmatmul.msk.bf16.gmra.mxu3 %vm898_vm1, %v8563_v21 }
  0xfe   : > { %v1032_v32 = vpop.f32.mrf.mxu2  ;;  %v423_v44 = vand.u32 15, %v207_v23  ;;  %v2275_v23 = vshrl.u32 %v9309_v3, 16 }
 0x100   : > { %v1485_v60 = vpop.f32.mrf.mxu3  ;;  %vm623_vm6 = vcmp.ge.s32.totalorder %v423_v44, 1 }
 0x101   : > { %v9327_v34 = vadd.f32 %v1485_v60, %v1068_v46  ;;  %v1447_v20 = vpop.f32.mrf.mxu1  ;;  %v995_v21 = vpop.f32.mrf.mxu0  ;;  %v8564_v60 = vld [vmem:[%s8930_s30 + $0x40] sm:$0xff] }
 0x102   : > { %v9330_v29 = vadd.f32 %v1447_v20, %v992_v7  ;;  %v1054_v56 = vmul.f32 %v9335_v24, %v995_v21  ;;  %v9342_v20 = vld [vmem:[%s8930_s30 + $0x50] sm:$0xff]  ;;  %v9354_v21 = vsel %vm623_vm6, 1.0, %v11124_v55 }
 0x103   : > { %11128 = vst [vmem:[#allocation21_spill] sm:$0xff] %v9327_v34  ;;  %7449 = vmatmul.msk.bf16.gmra.mxu2 %vm898_vm1, %v1550_v35  ;;  %v2279_v35 = vshll.u32 %v9342_v20, 16 }
 0x104   : > { %7607 = vmatmul.msk.bf16.gmra.mxu0 %vm898_vm1, %v2274_v18  ;;  %11130 = vst [vmem:[#allocation23_spill] sm:$0xff] %v9354_v21 }
 0x105   : > { %v2281_v18 = vrot.slane %v2279_v35, 1 }
 0x106   : > { %v1035_v2 = vpop.f32.mrf.mxu2 }
 0x107   : > { %v1070_v44 = vmul.f32 %v9354_v21, %v1035_v2  ;;  %v9370_v2 = vld [vmem:[%s8930_s30 + $0x58] sm:$0xff] }
 0x108   : > { %v1487_v7 = vpop.f32.mrf.mxu3 }
 0x109   : > { %v9345_v46 = vadd.f32 %v1487_v7, %v1032_v32  ;;  %v1450_v62 = vpop.f32.mrf.mxu1  ;;  %v997_v34 = vpop.f32.mrf.mxu0  ;;  %v2277_v32 = vor.u32 %v2275_v23, %v2273_v16  ;;  %v2534_v16 = vrot.slane %v9342_v20, 1  ;;  %v220_v23 = vand.u32 15, %v178_v19 }
 0x10a   : > { %v9348_v51 = vadd.f32 %v1450_v62, %v1054_v56 }
 0x10b   : > { %11129 = vst [vmem:[#allocation22_spill] sm:$0xff] %v9345_v46  ;;  %vm690_vm7 = vcmp.le.s32.totalorder %v220_v23, 14 }
 0x10c   : > { %7624 = vmatmul.msk.bf16.gmra.mxu1 %vm898_vm1, %v2533_v48  ;;  %v1552_v48 = vsel %vm1533_vm3, %v1549_v54, %v1551_v42 }
 0x10d   : > { %7530 = vmatmul.msk.bf16.gmra.mxu3 %vm898_vm1, %v8564_v60  ;;  %v2282_v60 = vsel %vm1222_vm2, %v2277_v32, %v2281_v18 }
 0x10e   : > { %v1037_v7 = vpop.f32.mrf.mxu2 }
 0x110   : > { %v1490_v56 = vpop.f32.mrf.mxu3 }
 0x111   : > { %v9359_v62 = vadd.f32 %v1490_v56, %v1070_v44  ;;  %v1452_v3 = vpop.f32.mrf.mxu1  ;;  %v2399_v41 = vpop.f32.mrf.mxu0  ;;  %v2535_v44 = vsel %vm1533_vm3, %v2532_v52, %v2534_v16  ;;  %v1553_v52 = vrot.slane %v8961_v33, 1  ;;  %v180_v33 = vadd.s32 24, %v9089_v40 }
 0x112   : > { %v9361_v46 = vadd.f32 %v1452_v3, %v997_v34  ;;  %v8565_v3 = vld [vmem:[%s8930_s30 + $0x48] sm:$0xff] }
 0x113   : > { %11131 = vst [vmem:[#allocation24_spill] sm:$0xff] %v9359_v62  ;;  %7450 = vmatmul.msk.bf16.gmra.mxu2 %vm898_vm1, %v1552_v48  ;;  %v2283_v62 = vshrl.u32 %v9342_v20, 16  ;;  %v2287_v48 = vshll.u32 %v9370_v2, 16 }
 0x114   : > { %7608 = vmatmul.msk.bf16.gmra.mxu0 %vm898_vm1, %v2282_v60  ;;  %v9382_v60 = vsel %vm690_vm7, 1.0, %v11124_v55 }
 0x115   : > { %11133 = vst [vmem:[#allocation26_spill] sm:$0xff] %v9382_v60  ;;  %v2289_v19 = vrot.slane %v2287_v48, 1  ;;  %v9395_v48 = vld [vmem:[%s8930_s30 + $0x60] sm:$0xff] }
 0x116   : > { %v1627_v34 = vpop.f32.mrf.mxu2 }
 0x117   : > { %v1739_v54 = vadd.f32 %v1627_v34, %v9115_v14 }
 0x118   : > { %v1492_v35 = vpop.f32.mrf.mxu3 }
 0x119   : > { %v9373_v56 = vadd.f32 %v1492_v35, %v1037_v7  ;;  %v2610_v32 = vpop.f32.mrf.mxu1  ;;  %v2401_v21 = vpop.f32.mrf.mxu0  ;;  %v2285_v7 = vor.u32 %v2283_v62, %v2281_v18  ;;  %v2536_v18 = vrot.slane %v9370_v2, 1 }
 0x11b   : > { %11132 = vst [vmem:[#allocation25_spill] sm:$0xff] %v9373_v56 }
 0x11c   : > { %7625 = vmatmul.msk.bf16.gmra.mxu1 %vm898_vm1, %v2535_v44  ;;  %v1554_v44 = vsel %vm1533_vm3, %v1551_v42, %v1553_v52 }
 0x11d   : > { %7531 = vmatmul.msk.bf16.gmra.mxu3 %vm898_vm1, %v8565_v3  ;;  %v2290_v3 = vsel %vm1222_vm2, %v2285_v7, %v2289_v19 }
 0x11e   : > { %v1629_v35 = vpop.f32.mrf.mxu2 }
 0x11f   : > { %v1708_v20 = vmul.f32 %v9382_v60, %v1629_v35 }
 0x120   : > { %v1945_v14 = vpop.f32.mrf.mxu3 }
 0x121   : > { %v2025_v34 = vmul.f32 %v9101_v58, %v1945_v14  ;;  %v2612_v56 = vpop.f32.mrf.mxu1  ;;  %v2404_v23 = vpop.f32.mrf.mxu0  ;;  %v1740_v26 = vadd.f32 %v1708_v20, %v9132_v10  ;;  %v234_v14 = vand.u32 15, %v180_v33  ;;  %v8566_v58 = vld [vmem:[%s8930_s30 + $0x50] sm:$0xff] }
 0x123   : > { %v2057_v28 = vadd.f32 %v2025_v34, %v1739_v54  ;;  %7451 = vmatmul.msk.bf16.gmra.mxu2 %vm898_vm1, %v1554_v44  ;;  %v2537_v54 = vsel %vm1533_vm3, %v2534_v16, %v2536_v18  ;;  %v2691_v44 = vmul.f32 %v9382_v60, %v2612_v56  ;;  %vm692_vm8 = vcmp.le.s32.totalorder %v234_v14, 14 }
 0x124   : > { %7609 = vmatmul.msk.bf16.gmra.mxu0 %vm898_vm1, %v2290_v3 }
 0x125   : > { %v2479_v62 = vadd.f32 %v2399_v41, %v2057_v28  ;;  %v2291_v41 = vshrl.u32 %v9370_v2, 16  ;;  %v2295_v28 = vshll.u32 %v9395_v48, 16 }
 0x126   : > { %v1632_v7 = vpop.f32.mrf.mxu2 }
 0x127   : > { %v9397_v42 = vadd.f32 %v2610_v32, %v2479_v62  ;;  %v1741_v10 = vadd.f32 %v1632_v7, %v9151_v53  ;;  %v1555_v53 = vrot.slane %v8979_v47, 1  ;;  %v2293_v16 = vor.u32 %v2291_v41, %v2289_v19 }
 0x128   : > { %v1947_v35 = vpop.f32.mrf.mxu3  ;;  %v2297_v33 = vrot.slane %v2295_v28, 1  ;;  %v182_v47 = vadd.s32 40, %v9089_v40  ;;  %v2538_v19 = vrot.slane %v9395_v48, 1  ;;  %v9423_v28 = vld [vmem:[%s8930_s30 + $0x68] sm:$0xff] }
 0x129   : > { %v2058_v34 = vadd.f32 %v1947_v35, %v1740_v26  ;;  %v2615_v20 = vpop.f32.mrf.mxu1  ;;  %v2406_v45 = vpop.f32.mrf.mxu0  ;;  %v9410_v26 = vsel %vm692_vm8, 1.0, %v11124_v55  ;;  %v1556_v14 = vsel %vm1533_vm3, %v1553_v52, %v1555_v53 }
 0x12a   : > { %v2298_v7 = vsel %vm1222_vm2, %v2293_v16, %v2297_v33 }
 0x12b   : > { %v2480_v3 = vadd.f32 %v2401_v21, %v2058_v34 }
 0x12c   : > { %7626 = vmatmul.msk.bf16.gmra.mxu1 %vm898_vm1, %v2537_v54 }
 0x12d   : > { %7532 = vmatmul.msk.bf16.gmra.mxu3 %vm898_vm1, %v8566_v58  ;;  %v9407_v32 = vadd.f32 %v2691_v44, %v2480_v3  ;;  %v248_v44 = vand.u32 15, %v182_v47 }
 0x12e   : > { %v1634_v62 = vpop.f32.mrf.mxu2 }
 0x12f   : > { %v1710_v21 = vmul.f32 %v9410_v26, %v1634_v62  ;;  %vm694_vm9 = vcmp.le.s32.totalorder %v248_v44, 14 }
 0x130   : > { %v1950_v2 = vpop.f32.mrf.mxu3 }
 0x131   : > { %v2027_v56 = vmul.f32 %v9137_v4, %v1950_v2  ;;  %v2617_v35 = vpop.f32.mrf.mxu1  ;;  %v2409_v58 = vpop.f32.mrf.mxu0  ;;  %v1742_v34 = vadd.f32 %v1710_v21, %v9165_v17  ;;  %v2299_v21 = vshrl.u32 %v9395_v48, 16 }
 0x133   : > { %v2059_v54 = vadd.f32 %v2027_v56, %v1741_v10  ;;  %7452 = vmatmul.msk.bf16.gmra.mxu2 %vm898_vm1, %v1556_v14  ;;  %v2539_v10 = vsel %vm1533_vm3, %v2536_v18, %v2538_v19  ;;  %v8567_v56 = vld [vmem:[%s8930_s30 + $0x58] sm:$0xff]  ;;  %v2303_v14 = vshll.u32 %v9423_v28, 16  ;;  %v9438_v18 = vsel %vm694_vm9, 1.0, %v11124_v55 }
 0x134   : > { %7610 = vmatmul.msk.bf16.gmra.mxu0 %vm898_vm1, %v2298_v7  ;;  %v2693_v7 = vmul.f32 %v9410_v26, %v2617_v35  ;;  %11134 = vst [vmem:[#allocation27_spill] sm:$0xff] %v9438_v18  ;;  %v2301_v47 = vor.u32 %v2299_v21, %v2297_v33  ;;  %v184_v33 = vadd.s32 56, %v9089_v40  ;;  %v2540_v21 = vrot.slane %v9423_v28, 1 }
 0x135   : > { %v2481_v41 = vadd.f32 %v2404_v23, %v2059_v54 }
 0x136   : > { %v1637_v16 = vpop.f32.mrf.mxu2 }
 0x137   : > { %v9425_v52 = vadd.f32 %v2615_v20, %v2481_v41  ;;  %v1743_v2 = vadd.f32 %v1637_v16, %v9184_v38  ;;  %v8815_v38 = vld [vmem:[%s8930_s30 + $0x60] sm:$0xff]  ;;  %v2305_v41 = vrot.slane %v2303_v14, 1 }
 0x138   : > { %v1952_v3 = vpop.f32.mrf.mxu3 }
 0x139   : > { %v2060_v17 = vadd.f32 %v1952_v3, %v1742_v34  ;;  %v2620_v62 = vpop.f32.mrf.mxu1  ;;  %v2411_v23 = vpop.f32.mrf.mxu0  ;;  %v1557_v34 = vrot.slane %v8815_v38, 1  ;;  %v262_v38 = vand.u32 15, %v184_v33 }
 0x13b   : > { %v2482_v54 = vadd.f32 %v2406_v45, %v2060_v17  ;;  %v1558_v44 = vsel %vm1533_vm3, %v1555_v53, %v1557_v34  ;;  %v2306_v17 = vsel %vm1222_vm2, %v2301_v47, %v2305_v41  ;;  %vm696_vm10 = vcmp.le.s32.totalorder %v262_v38, 14 }
 0x13c   : > { %7627 = vmatmul.msk.bf16.gmra.mxu1 %vm898_vm1, %v2539_v10 }
 0x13d   : > { %7533 = vmatmul.msk.bf16.gmra.mxu3 %vm898_vm1, %v8567_v56  ;;  %v9435_v20 = vadd.f32 %v2693_v7, %v2482_v54  ;;  %v9451_v54 = vld [vmem:[%s8930_s30 + $0x70] sm:$0xff] }
 0x13e   : > { %v1639_v3 = vpop.f32.mrf.mxu2 }
 0x13f   : > { %v1712_v45 = vmul.f32 %v9438_v18, %v1639_v3 }
 0x140   : > { %v1955_v48 = vpop.f32.mrf.mxu3 }
 0x141   : > { %v2029_v35 = vmul.f32 %v9170_v22, %v1955_v48  ;;  %v2622_v16 = vpop.f32.mrf.mxu1  ;;  %v2414_v10 = vpop.f32.mrf.mxu0  ;;  %v1744_v7 = vadd.f32 %v1712_v45, %v9198_v15  ;;  %v8568_v45 = vld [vmem:[%s8930_s30 + $0x60] sm:$0xff] }
 0x143   : > { %v2061_v56 = vadd.f32 %v2029_v35, %v1743_v2  ;;  %7453 = vmatmul.msk.bf16.gmra.mxu2 %vm898_vm1, %v1558_v44  ;;  %v2541_v2 = vsel %vm1533_vm3, %v2538_v19, %v2540_v21  ;;  %v2307_v44 = vshrl.u32 %v9423_v28, 16  ;;  %v9466_v19 = vsel %vm696_vm10, 1.0, %v11124_v55 }
 0x144   : > { %7611 = vmatmul.msk.bf16.gmra.mxu0 %vm898_vm1, %v2306_v17  ;;  %v2311_v17 = vshll.u32 %v9451_v54, 16  ;;  %11135 = vst [vmem:[#allocation28_spill] sm:$0xff] %v9466_v19  ;;  %vm3900_vm10 = vcmask 261120  }
 0x145   : > { %v2483_v14 = vadd.f32 %v2409_v58, %v2061_v56  ;;  %v2695_v56 = vmul.f32 %v9438_v18, %v2622_v16 }
 0x146   : > { %v1642_v47 = vpop.f32.mrf.mxu2 }
 0x147   : > { %v9453_v53 = vadd.f32 %v2620_v62, %v2483_v14  ;;  %v1745_v3 = vadd.f32 %v1642_v47, %v9217_v30  ;;  %v8816_v30 = vld [vmem:[%s8930_s30 + $0x68] sm:$0xff]  ;;  %v2309_v14 = vor.u32 %v2307_v44, %v2305_v41  ;;  %v186_v41 = vadd.s32 72, %v9089_v40 }
 0x148   : > { %v1957_v48 = vpop.f32.mrf.mxu3  ;;  %v2542_v44 = vrot.slane %v9451_v54, 1 }
 0x149   : > { %v2062_v15 = vadd.f32 %v1957_v48, %v1744_v7  ;;  %v2625_v35 = vpop.f32.mrf.mxu1  ;;  %v2416_v58 = vpop.f32.mrf.mxu0  ;;  %v1559_v7 = vrot.slane %v8816_v30, 1  ;;  %v2313_v48 = vrot.slane %v2311_v17, 1  ;;  %v9479_v30 = vld [vmem:[%s8930_s30 + $0x78] sm:$0xff] }
 0x14b   : > { %v2484_v33 = vadd.f32 %v2411_v23, %v2062_v15  ;;  %v1560_v38 = vsel %vm1533_vm3, %v1557_v34, %v1559_v7 }
 0x14c   : > { %7628 = vmatmul.msk.bf16.gmra.mxu1 %vm898_vm1, %v2541_v2 }
 0x14d   : > { %7534 = vmatmul.msk.bf16.gmra.mxu3 %vm898_vm1, %v8568_v45  ;;  %v9463_v62 = vadd.f32 %v2695_v56, %v2484_v33  ;;  %v2314_v45 = vsel %vm1222_vm2, %v2309_v14, %v2313_v48 }
 0x14e   : > { %v1644_v47 = vpop.f32.mrf.mxu2 }
 0x14f   : > { %v1714_v23 = vmul.f32 %v9466_v19, %v1644_v47 }
 0x150   : > { %v1960_v28 = vpop.f32.mrf.mxu3 }
 0x151   : > { %v2031_v16 = vmul.f32 %v9203_v63, %v1960_v28  ;;  %v2627_v2 = vpop.f32.mrf.mxu1  ;;  %v2419_v15 = vpop.f32.mrf.mxu0  ;;  %v1746_v33 = vadd.f32 %v1714_v23, %v9231_v61  ;;  %v276_v28 = vand.u32 15, %v186_v41  ;;  %v8569_v63 = vld [vmem:[%s8930_s30 + $0x68] sm:$0xff] }
 0x153   : > { %v2063_v56 = vadd.f32 %v2031_v16, %v1745_v3  ;;  %7454 = vmatmul.msk.bf16.gmra.mxu2 %vm898_vm1, %v1560_v38  ;;  %v2543_v3 = vsel %vm1533_vm3, %v2540_v21, %v2542_v44  ;;  %v2315_v38 = vshrl.u32 %v9451_v54, 16  ;;  %vm698_vm11 = vcmp.le.s32.totalorder %v276_v28, 14 }
 0x154   : > { %7612 = vmatmul.msk.bf16.gmra.mxu0 %vm898_vm1, %v2314_v45  ;;  %v2319_v45 = vshll.u32 %v9479_v30, 16  ;;  %v9494_v21 = vsel %vm698_vm11, 1.0, %v11124_v55 }
 0x155   : > { %v2485_v17 = vadd.f32 %v2414_v10, %v2063_v56  ;;  %v2697_v56 = vmul.f32 %v9466_v19, %v2627_v2  ;;  %11136 = vst [vmem:[#allocation29_spill] sm:$0xff] %v9494_v21 }
 0x156   : > { %v1647_v14 = vpop.f32.mrf.mxu2 }
 0x157   : > { %v9481_v34 = vadd.f32 %v2625_v35, %v2485_v17  ;;  %v1747_v16 = vadd.f32 %v1647_v14, %v9250_v37  ;;  %v8817_v37 = vld [vmem:[%s8930_s30 + $0x70] sm:$0xff]  ;;  %v2317_v17 = vor.u32 %v2315_v38, %v2313_v48  ;;  %v188_v48 = vadd.s32 88, %v9089_v40 }
 0x158   : > { %v1962_v47 = vpop.f32.mrf.mxu3  ;;  %v2544_v38 = vrot.slane %v9479_v30, 1 }
 0x159   : > { %v2064_v61 = vadd.f32 %v1962_v47, %v1746_v33  ;;  %v2630_v23 = vpop.f32.mrf.mxu1  ;;  %v2421_v10 = vpop.f32.mrf.mxu0  ;;  %v1561_v33 = vrot.slane %v8817_v37, 1  ;;  %v2321_v47 = vrot.slane %v2319_v45, 1  ;;  %v9507_v37 = vld [vmem:[%s8930_s30 + $0x80] sm:$0xff] }
 0x15b   : > { %v2486_v41 = vadd.f32 %v2416_v58, %v2064_v61  ;;  %v1562_v28 = vsel %vm1533_vm3, %v1559_v7, %v1561_v33  ;;  %v2322_v61 = vsel %vm1222_vm2, %v2317_v17, %v2321_v47 }
 0x15c   : > { %7629 = vmatmul.msk.bf16.gmra.mxu1 %vm898_vm1, %v2543_v3 }
 0x15d   : > { %7535 = vmatmul.msk.bf16.gmra.mxu3 %vm898_vm1, %v8569_v63  ;;  %v9491_v35 = vadd.f32 %v2697_v56, %v2486_v41 }
 0x15e   : > { %v1649_v14 = vpop.f32.mrf.mxu2 }
 0x15f   : > { %v1716_v58 = vmul.f32 %v9494_v21, %v1649_v14 }
 0x160   : > { %v1965_v54 = vpop.f32.mrf.mxu3 }
 0x161   : > { %v2033_v2 = vmul.f32 %v9236_v27, %v1965_v54  ;;  %v2632_v3 = vpop.f32.mrf.mxu1  ;;  %v2424_v63 = vpop.f32.mrf.mxu0  ;;  %v1748_v41 = vadd.f32 %v1716_v58, %v9264_v12  ;;  %v290_v54 = vand.u32 15, %v188_v48 }
 0x162   : > { %v2699_v48 = vmul.f32 %v9494_v21, %v2632_v3 }
 0x163   : > { %v2065_v56 = vadd.f32 %v2033_v2, %v1747_v16  ;;  %7455 = vmatmul.msk.bf16.gmra.mxu2 %vm898_vm1, %v1562_v28  ;;  %v2545_v16 = vsel %vm1533_vm3, %v2542_v44, %v2544_v38  ;;  %v2323_v28 = vshrl.u32 %v9479_v30, 16  ;;  %vm700_vm12 = vcmp.le.s32.totalorder %v290_v54, 14  ;;  %v2121_v30 = vld [vmem:[%s8930_s30 + $0x88] sm:$0x1] }
 0x164   : > { %7613 = vmatmul.msk.bf16.gmra.mxu0 %vm898_vm1, %v2322_v61  ;;  %v2327_v61 = vshll.u32 %v9507_v37, 16 }
 0x165   : > { %v2487_v45 = vadd.f32 %v2419_v15, %v2065_v56  ;;  %v8570_v15 = vld [vmem:[%s8930_s30 + $0x70] sm:$0xff] }
 0x166   : > { %v1652_v17 = vpop.f32.mrf.mxu2 }
 0x167   : > { %v9509_v7 = vadd.f32 %v2630_v23, %v2487_v45  ;;  %v1749_v2 = vadd.f32 %v1652_v17, %v9283_v0  ;;  %v9522_v0 = vsel %vm700_vm12, 1.0, %v11124_v55  ;;  %v2329_v17 = vrot.slane %v2327_v61, 1 }
 0x168   : > { %v1967_v14 = vpop.f32.mrf.mxu3  ;;  %11138 = vst [vmem:[#allocation31_spill] sm:$0xff] %v9522_v0 }
 0x169   : > { %11137 = vst [vmem:[#allocation30_spill] sm:$0xff] %v9509_v7  ;;  %v2066_v12 = vadd.f32 %v1967_v14, %v1748_v41  ;;  %v2635_v58 = vpop.f32.mrf.mxu1  ;;  %v2426_v56 = vpop.f32.mrf.mxu0  ;;  %v8818_v41 = vld [vmem:[%s8930_s30 + $0x78] sm:$0xff]  ;;  %v2325_v14 = vor.u32 %v2323_v28, %v2321_v47  ;;  %v190_v47 = vadd.s32 104, %v9089_v40  ;;  %v2546_v28 = vrot.slane %v9507_v37, 1 }
 0x16a   : > { %v1563_v45 = vrot.slane %v8818_v41, 1 }
 0x16b   : > { %v2488_v23 = vadd.f32 %v2421_v10, %v2066_v12 }
 0x16c   : > { %7630 = vmatmul.msk.bf16.gmra.mxu1 %vm898_vm1, %v2545_v16  ;;  %v1564_v54 = vsel %vm1533_vm3, %v1561_v33, %v1563_v45 }
 0x16d   : > { %7536 = vmatmul.msk.bf16.gmra.mxu3 %vm898_vm1, %v8570_v15  ;;  %v9519_v44 = vadd.f32 %v2699_v48, %v2488_v23  ;;  %v2330_v15 = vsel %vm1222_vm2, %v2325_v14, %v2329_v17  ;;  %v2189_v48 = vunpack.c.l.b16 %v2121_v30 }
 0x16e   : > { %v1654_v27 = vpop.f32.mrf.mxu2 }
 0x16f   : > { %v1718_v10 = vmul.f32 %v9522_v0, %v1654_v27  ;;  %v2206_v27 = vpack.c.b16 %v2189_v48, %v2189_v48 }
 0x170   : > { %v1970_v7 = vpop.f32.mrf.mxu3 }
 0x171   : > { %v2035_v3 = vmul.f32 %v9269_v39, %v1970_v7  ;;  %v2637_v16 = vpop.f32.mrf.mxu1  ;;  %v2429_v12 = vpop.f32.mrf.mxu0  ;;  %v1750_v41 = vadd.f32 %v1718_v10, %v9297_v57  ;;  %v304_v7 = vand.u32 15, %v190_v47  ;;  %v8571_v10 = vld [vmem:[%s8930_s30 + $0x78] sm:$0xff] }
 0x173   : > { %v2067_v23 = vadd.f32 %v2035_v3, %v1749_v2  ;;  %7456 = vmatmul.msk.bf16.gmra.mxu2 %vm898_vm1, %v1564_v54  ;;  %v2547_v2 = vsel %vm1533_vm3, %v2544_v38, %v2546_v28  ;;  %v2701_v54 = vmul.f32 %v9522_v0, %v2637_v16  ;;  %vm702_vm13 = vcmp.le.s32.totalorder %v304_v7, 14 }
 0x174   : > { %7614 = vmatmul.msk.bf16.gmra.mxu0 %vm898_vm1, %v2330_v15 }
 0x175   : > { %v2489_v61 = vadd.f32 %v2424_v63, %v2067_v23  ;;  %v2331_v63 = vshrl.u32 %v9507_v37, 16  ;;  %v2335_v23 = vshll.u32 %v2206_v27, 16 }
 0x176   : > { %v1657_v14 = vpop.f32.mrf.mxu2 }
 0x177   : > { %v9535_v33 = vadd.f32 %v2635_v58, %v2489_v61  ;;  %v1751_v57 = vadd.f32 %v1657_v14, %v9316_v49  ;;  %v1565_v49 = vrot.slane %v9058_v9, 1  ;;  %v2333_v38 = vor.u32 %v2331_v63, %v2329_v17 }
 0x178   : > { %v1972_v39 = vpop.f32.mrf.mxu3  ;;  %v2337_v48 = vrot.slane %v2335_v23, 1  ;;  %v192_v9 = vadd.s32 120, %v9089_v40  ;;  %v2548_v17 = vrot.slane %v2206_v27, 1  ;;  %v8732_v23 = vld [vmem:[%s8930_s30 + $0x10] sm:$0xf0] }
 0x179   : > { %v2068_v30 = vadd.f32 %v1972_v39, %v1750_v41  ;;  %v2640_v3 = vpop.f32.mrf.mxu1  ;;  %v2431_v21 = vpop.f32.mrf.mxu0  ;;  %v9547_v39 = vsel %vm702_vm13, 1.0, %v11124_v55  ;;  %v1566_v61 = vsel %vm1533_vm3, %v1563_v45, %v1565_v49 }
 0x17a   : > { %11139 = vst [vmem:[#allocation32_spill] sm:$0xff] %v9547_v39  ;;  %v2338_v14 = vsel %vm1222_vm2, %v2333_v38, %v2337_v48  ;;  %v318_v63 = vand.u32 15, %v192_v9 }
 0x17b   : > { %v2490_v15 = vadd.f32 %v2426_v56, %v2068_v30 }
 0x17c   : > { %7631 = vmatmul.msk.bf16.gmra.mxu1 %vm898_vm1, %v2547_v2  ;;  %vm704_vm14 = vcmp.le.s32.totalorder %v318_v63, 14 }
 0x17d   : > { %7537 = vmatmul.msk.bf16.gmra.mxu3 %vm898_vm1, %v8571_v10  ;;  %v9544_v58 = vadd.f32 %v2701_v54, %v2490_v15  ;;  %v8733_v54 = vld [vmem:[%s8930_s30 + $0x10] sm:$0xe] }
 0x17e   : > { %v1659_v37 = vpop.f32.mrf.mxu2 }
 0x17f   : > { %v1720_v16 = vmul.f32 %v9547_v39, %v1659_v37 }
 0x180   : > { %v1975_v41 = vpop.f32.mrf.mxu3 }
 0x181   : > { %v2037_v56 = vmul.f32 %v9302_v6, %v1975_v41  ;;  %v2642_v47 = vpop.f32.mrf.mxu1  ;;  %v2434_v7 = vpop.f32.mrf.mxu0  ;;  %v1752_v30 = vadd.f32 %v1720_v16, %v9330_v29  ;;  %v2549_v29 = vsel %vm1533_vm3, %v2546_v28, %v2548_v17  ;;  %v8734_v41 = vor.u32 %v8733_v54, %v8732_v23  ;;  %v9569_v16 = vld [vmem:[%s8930_s30 + $0x18] sm:$0xff] }
 0x182   : > { %v2703_v37 = vmul.f32 %v9547_v39, %v2642_v47 }
 0x183   : > { %v2069_v2 = vadd.f32 %v2037_v56, %v1751_v57  ;;  %7457 = vmatmul.msk.bf16.gmra.mxu2 %vm898_vm1, %v1566_v61 }
 0x184   : > { %7615 = vmatmul.msk.bf16.gmra.mxu0 %vm898_vm1, %v2338_v14  ;;  %v3500_v14 = vrot.slane %v8734_v41, 1 }
 0x185   : > { %v2491_v10 = vadd.f32 %v2429_v12, %v2069_v2  ;;  %v8572_v12 = vld [vmem:[%s8930_s30 + $0x80] sm:$0xff]  ;;  %v3501_v2 = vrot.slane %v9569_v16, 1 }
 0x186   : > { %v1662_v57 = vpop.f32.mrf.mxu2 }
 0x187   : > { %v9560_v45 = vadd.f32 %v2640_v3, %v2491_v10  ;;  %v1753_v38 = vadd.f32 %v1662_v57, %v9348_v51  ;;  %v8731_v3 = vld [vmem:[%s8930_s30 + $0x10] sm:$0xff]   ;;  %v9575_v51 = vsel %vm704_vm14, 1.0, %v11124_v55  ;;  %v3502_v57 = vsel %vm1533_vm3, %v3500_v14, %v3501_v2 }
 0x188   : > { %v1977_v15 = vpop.f32.mrf.mxu3  ;;  %v3193_v61 = vshll.u32 %v8731_v3, 16  ;;  %v8588_v10 = vld [vmem:[%s8930_s30 + $0x10] sm:$0xff]  ;;  %v3191_v23 = vshrl.u32 %v8731_v3, 16 }
 0x189   : > { %v2070_v49 = vadd.f32 %v1977_v15, %v1752_v30  ;;  %v2645_v27 = vpop.f32.mrf.mxu1  ;;  %v2436_v48 = vpop.f32.mrf.mxu0  ;;  %v3198_v15 = vshll.u32 %v9569_v16, 16  ;;  %v8619_v3 = vld [vmem:[%s8930_s30 + $0x94] sm:$0xff] }
 0x18a   : > { %v3195_v54 = vrot.slane %v3193_v61, 1 }
 0x18b   : > { %v2492_v56 = vadd.f32 %v2431_v21, %v2070_v49 }
 0x18c   : > { %7632 = vmatmul.msk.bf16.gmra.mxu1 %vm898_vm1, %v2549_v29 }
 0x18d   : > { %7538 = vmatmul.msk.bf16.gmra.mxu3 %vm898_vm1, %v8572_v12  ;;  %v9572_v28 = vadd.f32 %v2703_v37, %v2492_v56  ;;  %v194_v12 = vadd.s32 136, %v9089_v40  ;;  %v3196_v37 = vor.u32 %v3195_v54, %v3191_v23  ;;  %v3200_v56 = vrot.slane %v3198_v15, 1 }
 0x18e   : > { %v1664_v21 = vpop.f32.mrf.mxu2 }
 0x18f   : > { %v1722_v9 = vmul.f32 %v9575_v51, %v1664_v21  ;;  %v332_v61 = vand.u32 15, %v194_v12 }
 0x190   : > { %v1980_v47 = vpop.f32.mrf.mxu3 }
 0x191   : > { %v2039_v30 = vmul.f32 %v9335_v24, %v1980_v47  ;;  %v2647_v17 = vpop.f32.mrf.mxu1  ;;  %v2439_v63 = vpop.f32.mrf.mxu0  ;;  %v1754_v49 = vadd.f32 %v1722_v9, %v9361_v46  ;;  %vm706_vm15 = vcmp.le.s32.totalorder %v332_v61, 14 }
 0x193   : > { %v2071_v29 = vadd.f32 %v2039_v30, %v1753_v38  ;;  %7698 = vmatmul.msk.bf16.vlgmr.msra.gmra.mxu2 %vm898_vm1, %v8588_v10  ;;  %v3201_v30 = vsel %vm1222_vm2, %v3196_v37, %v3200_v56  ;;  %v2705_v10 = vmul.f32 %v9575_v51, %v2647_v17 }
 0x194   : > { %7792 = vmatmul.msk.bf16.vlgmr.msra.gmra.mxu0 %vm898_vm1, %v3502_v57  ;;  %5807 = vmatpush.bf16.msra.mxu2 %v8922_v11 }
 0x195   : > { %v2493_v41 = vadd.f32 %v2434_v7, %v2071_v29  ;;  %6569 = vmatpush.bf16.msra.mxu0 %v9064_v13  ;;  %v8605_v13 = vld [vmem:[%s8930_s30 + $0x20] sm:$0xff]  ;;  %v8589_v29 = vld [vmem:[%s8930_s30 + $0x18] sm:$0xff] }
 0x196   : > { %v1667_v46 = vpop.f32.mrf.mxu2  ;;  %v3503_v23 = vrot.slane %v8605_v13, 1  ;;  %v3206_v12 = vshll.u32 %v8605_v13, 16 }
 0x197   : > { %v9590_v14 = vadd.f32 %v2645_v27, %v2493_v41  ;;  %v1755_v7 = vadd.f32 %v1667_v46, %v9129_v31  ;;  %v9602_v31 = vsel %vm706_vm15, 1.0, %v11124_v55 }
 0x198   : > { %v1982_v38 = vpop.f32.mrf.mxu3  ;;  %v3504_v41 = vsel %vm1533_vm3, %v3501_v2, %v3503_v23  ;;  %v3208_v46 = vrot.slane %v3206_v12, 1 }
 0x199   : > { %v2072_v47 = vadd.f32 %v1982_v38, %v1754_v49  ;;  %v2650_v21 = vpop.f32.mrf.mxu1  ;;  %v2441_v9 = vpop.f32.mrf.mxu0  ;;  %v3202_v49 = vshrl.u32 %v9569_v16, 16 }
 0x19b   : > { %v2494_v11 = vadd.f32 %v2436_v48, %v2072_v47  ;;  %v3204_v38 = vor.u32 %v3202_v49, %v3200_v56  ;;  %v8620_v47 = vld [vmem:[%s8930_s30 + $0x9c] sm:$0xff]  ;;  %v8606_v56 = vld [vmem:[%s8930_s30 + $0x28] sm:$0xff] }
 0x19c   : > { %7905 = vmatmul.msk.bf16.vlgmr.msra.gmra.mxu1 %vm898_vm1, %v8619_v3 }
 0x19d   : > { %6775 = vmatpush.bf16.msra.mxu1 %v9076_v25  ;;  %7775 = vmatmul.msk.bf16.vlgmr.msra.gmra.mxu3 %vm898_vm1, %v3201_v30  ;;  %v9599_v27 = vadd.f32 %v2705_v10, %v2494_v11 }
 0x19e   : > { %6120 = vmatpush.bf16.msra.mxu3 %v9053_v8  ;;  %v1669_v17 = vpop.f32.mrf.mxu2  ;;  %v196_v8 = vadd.s32 152, %v9089_v40 }
 0x19f   : > { %v1724_v15 = vmul.f32 %v9602_v31, %v1669_v17 }
 0x1a0   : > { %v1985_v54 = vpop.f32.mrf.mxu3  ;;  %v346_v30 = vand.u32 15, %v196_v8  ;;  %v3214_v8 = vshll.u32 %v8606_v56, 16 }
 0x1a1   : > { %v2041_v48 = vmul.f32 %v9122_v5, %v1985_v54  ;;  %v2652_v57 = vpop.f32.mrf.mxu1  ;;  %v2444_v25 = vpop.f32.mrf.mxu0  ;;  %v1756_v3 = vadd.f32 %v1724_v15, %v9148_v50  ;;  %v3209_v54 = vsel %vm1222_vm2, %v3204_v38, %v3208_v46 }
 0x1a2   : > { %v2707_v17 = vmul.f32 %v9602_v31, %v2652_v57  ;;  %vm708_vm0 = vcmp.le.s32.totalorder %v346_v30, 14  ;;  %v198_v30 = vadd.s32 168, %v9089_v40 }
 0x1a3   : > { %v2073_v37 = vadd.f32 %v2041_v48, %v1755_v7  ;;  %7699 = vmatmul.msk.bf16.gmra.mxu2 %vm898_vm1, %v8589_v29  ;;  %v9626_v15 = vsel %vm708_vm0, 1.0, %v11124_v55 }
 0x1a4   : > { %7793 = vmatmul.msk.bf16.gmra.mxu0 %vm898_vm1, %v3504_v41  ;;  %11140 = vst [vmem:[#allocation33_spill] sm:$0xff] %v9626_v15  ;;  %v8590_v41 = vld [vmem:[%s8930_s30 + $0x20] sm:$0xff] }
 0x1a5   : > { %v2495_v61 = vadd.f32 %v2439_v63, %v2073_v37 }
 0x1a6   : > { %v1672_v11 = vpop.f32.mrf.mxu2 }
 0x1a7   : > { %v9615_v10 = vadd.f32 %v2650_v21, %v2495_v61  ;;  %v1757_v7 = vadd.f32 %v1672_v11, %v9162_v1  ;;  %v3505_v1 = vrot.slane %v8606_v56, 1 }
 0x1a8   : > { %v1987_v16 = vpop.f32.mrf.mxu3 }
 0x1a9   : > { %v2074_v2 = vadd.f32 %v1987_v16, %v1756_v3  ;;  %v2655_v50 = vpop.f32.mrf.mxu1  ;;  %v2446_v63 = vpop.f32.mrf.mxu0  ;;  %v3210_v3 = vshrl.u32 %v8605_v13, 16  ;;  %v3506_v61 = vsel %vm1533_vm3, %v3503_v23, %v3505_v1 }
 0x1ab   : > { %v2496_v48 = vadd.f32 %v2441_v9, %v2074_v2  ;;  %v3212_v11 = vor.u32 %v3210_v3, %v3208_v46  ;;  %v3216_v2 = vrot.slane %v3214_v8, 1  ;;  %v8607_v46 = vld [vmem:[%s8930_s30 + $0x30] sm:$0xff] }
 0x1ac   : > { %7906 = vmatmul.msk.bf16.gmra.mxu1 %vm898_vm1, %v8620_v47 }
 0x1ad   : > { %7776 = vmatmul.msk.bf16.gmra.mxu3 %vm898_vm1, %v3209_v54  ;;  %v9623_v21 = vadd.f32 %v2707_v17, %v2496_v48  ;;  %v8621_v54 = vld [vmem:[%s8930_s30 + $0xa4] sm:$0xff]  ;;  %v360_v17 = vand.u32 15, %v198_v30 }
 0x1ae   : > { %v1674_v49 = vpop.f32.mrf.mxu2 }
 0x1af   : > { %v1726_v57 = vmul.f32 %v9626_v15, %v1674_v49  ;;  %v3217_v49 = vsel %vm1222_vm2, %v3212_v11, %v3216_v2  ;;  %vm710_vm4 = vcmp.le.s32.totalorder %v360_v17, 14  ;;  %v3222_v11 = vshll.u32 %v8607_v46, 16 }
 0x1b0   : > { %v1990_v29 = vpop.f32.mrf.mxu3 }
 0x1b1   : > { %v2043_v12 = vmul.f32 %v9157_v59, %v1990_v29  ;;  %v2657_v9 = vpop.f32.mrf.mxu1  ;;  %v2449_v37 = vpop.f32.mrf.mxu0  ;;  %v1758_v47 = vadd.f32 %v1726_v57, %v9181_v36 }
 0x1b3   : > { %v2075_v38 = vadd.f32 %v2043_v12, %v1757_v7  ;;  %7700 = vmatmul.msk.bf16.gmra.mxu2 %vm898_vm1, %v8590_v41  ;;  %v2709_v12 = vmul.f32 %v9626_v15, %v2657_v9  ;;  %v9648_v41 = vsel %vm710_vm4, 1.0, %v11124_v55 }
 0x1b4   : > { %7794 = vmatmul.msk.bf16.gmra.mxu0 %vm898_vm1, %v3506_v61  ;;  %11141 = vst [vmem:[#allocation34_spill] sm:$0xff] %v9648_v41  ;;  %v11142_v61 = vld [vmem:[#allocation5_spill] sm:$0xff] }
 0x1b5   : > { %v2497_v16 = vadd.f32 %v2444_v25, %v2075_v38 }
 0x1b6   : > { %v1677_v29 = vpop.f32.mrf.mxu2 }
 0x1b7   : > { %v9637_v48 = vadd.f32 %v2655_v50, %v2497_v16  ;;  %v1759_v7 = vadd.f32 %v1677_v29, %v9195_v43  ;;  %v3507_v43 = vrot.slane %v8607_v46, 1  ;;  %v3218_v16 = vshrl.u32 %v8606_v56, 16 }
 0x1b8   : > { %v1992_v13 = vpop.f32.mrf.mxu3 }
 0x1b9   : > { %v2076_v23 = vadd.f32 %v1992_v13, %v1758_v47  ;;  %v2660_v36 = vpop.f32.mrf.mxu1  ;;  %v2451_v25 = vpop.f32.mrf.mxu0  ;;  %v8591_v47 = vld [vmem:[%s8930_s30 + $0x28] sm:$0xff] }
 0x1ba   : > { %v11143_v13 = vld [vmem:[#allocation7_spill] sm:$0xff] }
 0x1bb   : > { %v2498_v57 = vadd.f32 %v2446_v63, %v2076_v23  ;;  %v200_v23 = vadd.s32 184, %v9089_v40 }
 0x1bc   : > { %7907 = vmatmul.msk.bf16.gmra.mxu1 %vm898_vm1, %v8621_v54  ;;  %v3508_v54 = vsel %vm1533_vm3, %v3505_v1, %v3507_v43 }
 0x1bd   : > { %7777 = vmatmul.msk.bf16.gmra.mxu3 %vm898_vm1, %v3217_v49  ;;  %v9645_v50 = vadd.f32 %v2709_v12, %v2498_v57  ;;  %v3220_v12 = vor.u32 %v3218_v16, %v3216_v2  ;;  %v3224_v57 = vrot.slane %v3222_v11, 1  ;;  %v8608_v2 = vld [vmem:[%s8930_s30 + $0x38] sm:$0xff] }
 0x1be   : > { %v1679_v8 = vpop.f32.mrf.mxu2 }
 0x1bf   : > { %v1728_v9 = vmul.f32 %v9648_v41, %v1679_v8  ;;  %v374_v8 = vand.u32 15, %v200_v23 }
 0x1c0   : > { %v1995_v3 = vpop.f32.mrf.mxu3 }
 0x1c1   : > { %v2045_v38 = vmul.f32 %v11142_v61, %v1995_v3  ;;  %v2662_v63 = vpop.f32.mrf.mxu1  ;;  %v2454_v30 = vpop.f32.mrf.mxu0  ;;  %v1760_v29 = vadd.f32 %v1728_v9, %v11143_v13  ;;  %v8622_v3 = vld [vmem:[%s8930_s30 + $0xac] sm:$0xff]  ;;  %v3225_v13 = vsel %vm1222_vm2, %v3220_v12, %v3224_v57  ;;  %vm712_vm5 = vcmp.le.s32.totalorder %v374_v8, 14 }
 0x1c2   : > { %v9670_v16 = vsel %vm712_vm5, 1.0, %v11124_v55  ;;  %v3230_v8 = vshll.u32 %v8608_v2, 16 }
 0x1c3   : > { %v2077_v17 = vadd.f32 %v2045_v38, %v1759_v7  ;;  %7701 = vmatmul.msk.bf16.gmra.mxu2 %vm898_vm1, %v8591_v47  ;;  %v11145_v7 = vld [vmem:[#allocation9_spill] sm:$0xff]  ;;  %v2711_v47 = vmul.f32 %v9648_v41, %v2662_v63  ;;  %11147 = vst [vmem:[#allocation35_spill] sm:$0xff] %v9670_v16 }
 0x1c4   : > { %7795 = vmatmul.msk.bf16.gmra.mxu0 %vm898_vm1, %v3508_v54 }
 0x1c5   : > { %v2499_v49 = vadd.f32 %v2449_v37, %v2077_v17 }
 0x1c6   : > { %v1682_v15 = vpop.f32.mrf.mxu2 }
 0x1c7   : > { %v9659_v61 = vadd.f32 %v2660_v36, %v2499_v49  ;;  %v1761_v38 = vadd.f32 %v1682_v15, %v11145_v7  ;;  %v3509_v15 = vrot.slane %v8608_v2, 1  ;;  %v8592_v49 = vld [vmem:[%s8930_s30 + $0x30] sm:$0xff]  ;;  %v11149_v7 = vld [vmem:[#allocation11_spill] sm:$0xff] }
 0x1c8   : > { %v1997_v56 = vpop.f32.mrf.mxu3 }
 0x1c9   : > { %11144 = vst [vmem:[#allocation7_spill] sm:$0xff] %v9659_v61  ;;  %v2078_v1 = vadd.f32 %v1997_v56, %v1760_v29  ;;  %v2665_v9 = vpop.f32.mrf.mxu1  ;;  %v2456_v37 = vpop.f32.mrf.mxu0  ;;  %v11148_v29 = vld [vmem:[#allocation8_spill] sm:$0xff]  ;;  %v3510_v56 = vsel %vm1533_vm3, %v3507_v43, %v3509_v15 }
 0x1cb   : > { %v2500_v54 = vadd.f32 %v2451_v25, %v2078_v1 }
 0x1cc   : > { %7908 = vmatmul.msk.bf16.gmra.mxu1 %vm898_vm1, %v8622_v3  ;;  %v3226_v3 = vshrl.u32 %v8607_v46, 16 }
 0x1cd   : > { %7778 = vmatmul.msk.bf16.gmra.mxu3 %vm898_vm1, %v3225_v13  ;;  %v9667_v36 = vadd.f32 %v2711_v47, %v2500_v54  ;;  %v202_v47 = vadd.s32 200, %v9089_v40 }
 0x1ce   : > { %v1684_v17 = vpop.f32.mrf.mxu2 }
 0x1cf   : > { %11146 = vst [vmem:[#allocation9_spill] sm:$0xff] %v9667_v36  ;;  %v1730_v63 = vmul.f32 %v9670_v16, %v1684_v17  ;;  %v3232_v17 = vrot.slane %v3230_v8, 1  ;;  %v388_v41 = vand.u32 15, %v202_v47 }
 0x1d0   : > { %v2000_v11 = vpop.f32.mrf.mxu3 }
 0x1d1   : > { %v2047_v23 = vmul.f32 %v11148_v29, %v2000_v11  ;;  %v2667_v25 = vpop.f32.mrf.mxu1  ;;  %v2459_v12 = vpop.f32.mrf.mxu0  ;;  %v1762_v13 = vadd.f32 %v1730_v63, %v11149_v7  ;;  %v3228_v11 = vor.u32 %v3226_v3, %v3224_v57  ;;  %v8623_v29 = vld [vmem:[%s8930_s30 + $0xb4] sm:$0xff]  ;;  %vm714_vm6 = vcmp.le.s32.totalorder %v388_v41, 14  ;;  %v8609_v57 = vld [vmem:[%s8930_s30 + $0x40] sm:$0xff] }
 0x1d2   : > { %v9692_v3 = vsel %vm714_vm6, 1.0, %v11124_v55  ;;  %v3234_v41 = vshrl.u32 %v8608_v2, 16 }
 0x1d3   : > { %v2079_v1 = vadd.f32 %v2047_v23, %v1761_v38  ;;  %7702 = vmatmul.msk.bf16.gmra.mxu2 %vm898_vm1, %v8592_v49  ;;  %v11151_v38 = vld [vmem:[#allocation13_spill] sm:$0xff]  ;;  %v3233_v7 = vsel %vm1222_vm2, %v3228_v11, %v3232_v17  ;;  %v2713_v49 = vmul.f32 %v9670_v16, %v2667_v25  ;;  %11153 = vst [vmem:[#allocation36_spill] sm:$0xff] %v9692_v3  ;;  %v3238_v11 = vshll.u32 %v8609_v57, 16 }
 0x1d4   : > { %7796 = vmatmul.msk.bf16.gmra.mxu0 %vm898_vm1, %v3510_v56 }
 0x1d5   : > { %v2501_v54 = vadd.f32 %v2454_v30, %v2079_v1 }
 0x1d6   : > { %v1687_v61 = vpop.f32.mrf.mxu2 }
 0x1d7   : > { %v9681_v36 = vadd.f32 %v2665_v9, %v2501_v54  ;;  %v1763_v23 = vadd.f32 %v1687_v61, %v11151_v38  ;;  %v3511_v61 = vrot.slane %v8609_v57, 1  ;;  %v8593_v54 = vld [vmem:[%s8930_s30 + $0x38] sm:$0xff]  ;;  %v11155_v38 = vld [vmem:[#allocation15_spill] sm:$0xff] }
 0x1d8   : > { %v2002_v46 = vpop.f32.mrf.mxu3 }
 0x1d9   : > { %11150 = vst [vmem:[#allocation11_spill] sm:$0xff] %v9681_v36  ;;  %v2080_v43 = vadd.f32 %v2002_v46, %v1762_v13  ;;  %v2670_v63 = vpop.f32.mrf.mxu1  ;;  %v2461_v30 = vpop.f32.mrf.mxu0  ;;  %v11154_v13 = vld [vmem:[#allocation12_spill] sm:$0xff]  ;;  %v3512_v46 = vsel %vm1533_vm3, %v3509_v15, %v3511_v61 }
 0x1db   : > { %v2502_v56 = vadd.f32 %v2456_v37, %v2080_v43 }
 0x1dc   : > { %7909 = vmatmul.msk.bf16.gmra.mxu1 %vm898_vm1, %v8623_v29 }
 0x1dd   : > { %7779 = vmatmul.msk.bf16.gmra.mxu3 %vm898_vm1, %v3233_v7  ;;  %v9689_v9 = vadd.f32 %v2713_v49, %v2502_v56  ;;  %v204_v49 = vadd.s32 216, %v9089_v40 }
 0x1de   : > { %v1689_v1 = vpop.f32.mrf.mxu2 }
 0x1df   : > { %11152 = vst [vmem:[#allocation13_spill] sm:$0xff] %v9689_v9  ;;  %v1732_v25 = vmul.f32 %v9692_v3, %v1689_v1  ;;  %v3240_v1 = vrot.slane %v3238_v11, 1  ;;  %v402_v16 = vand.u32 15, %v204_v49 }
 0x1e0   : > { %v2005_v8 = vpop.f32.mrf.mxu3 }
 0x1e1   : > { %v2049_v47 = vmul.f32 %v11154_v13, %v2005_v8  ;;  %v2672_v37 = vpop.f32.mrf.mxu1  ;;  %v2464_v29 = vpop.f32.mrf.mxu0  ;;  %v1764_v7 = vadd.f32 %v1732_v25, %v11155_v38  ;;  %v3236_v8 = vor.u32 %v3234_v41, %v3232_v17  ;;  %v8624_v13 = vld [vmem:[%s8930_s30 + $0xbc] sm:$0xff]  ;;  %vm716_vm7 = vcmp.le.s32.totalorder %v402_v16, 14  ;;  %v8610_v17 = vld [vmem:[%s8930_s30 + $0x48] sm:$0xff] }
 0x1e2   : > { %v9714_v41 = vsel %vm716_vm7, 1.0, %v11124_v55  ;;  %v3242_v16 = vshrl.u32 %v8609_v57, 16 }
 0x1e3   : > { %v2081_v43 = vadd.f32 %v2049_v47, %v1763_v23  ;;  %7703 = vmatmul.msk.bf16.gmra.mxu2 %vm898_vm1, %v8593_v54  ;;  %v11157_v23 = vld [vmem:[#allocation17_spill] sm:$0xff]  ;;  %v3241_v38 = vsel %vm1222_vm2, %v3236_v8, %v3240_v1  ;;  %v2715_v54 = vmul.f32 %v9692_v3, %v2672_v37  ;;  %11159 = vst [vmem:[#allocation37_spill] sm:$0xff] %v9714_v41  ;;  %v3246_v8 = vshll.u32 %v8610_v17, 16 }
 0x1e4   : > { %7797 = vmatmul.msk.bf16.gmra.mxu0 %vm898_vm1, %v3512_v46 }
 0x1e5   : > { %v2503_v56 = vadd.f32 %v2459_v12, %v2081_v43 }
 0x1e6   : > { %v1692_v36 = vpop.f32.mrf.mxu2 }
 0x1e7   : > { %v9703_v9 = vadd.f32 %v2670_v63, %v2503_v56  ;;  %v1765_v47 = vadd.f32 %v1692_v36, %v11157_v23  ;;  %v3513_v36 = vrot.slane %v8610_v17, 1  ;;  %v8594_v56 = vld [vmem:[%s8930_s30 + $0x40] sm:$0xff]  ;;  %v11161_v23 = vld [vmem:[#allocation19_spill] sm:$0xff] }
 0x1e8   : > { %v2007_v2 = vpop.f32.mrf.mxu3 }
 0x1e9   : > { %11156 = vst [vmem:[#allocation15_spill] sm:$0xff] %v9703_v9  ;;  %v2082_v15 = vadd.f32 %v2007_v2, %v1764_v7  ;;  %v2675_v25 = vpop.f32.mrf.mxu1  ;;  %v2466_v12 = vpop.f32.mrf.mxu0  ;;  %v11160_v7 = vld [vmem:[#allocation16_spill] sm:$0xff]  ;;  %v3514_v2 = vsel %vm1533_vm3, %v3511_v61, %v3513_v36 }
 0x1eb   : > { %v2504_v46 = vadd.f32 %v2461_v30, %v2082_v15 }
 0x1ec   : > { %7910 = vmatmul.msk.bf16.gmra.mxu1 %vm898_vm1, %v8624_v13 }
 0x1ed   : > { %7780 = vmatmul.msk.bf16.gmra.mxu3 %vm898_vm1, %v3241_v38  ;;  %v9711_v63 = vadd.f32 %v2715_v54, %v2504_v46  ;;  %v206_v54 = vadd.s32 232, %v9089_v40 }
 0x1ee   : > { %v1694_v43 = vpop.f32.mrf.mxu2 }
 0x1ef   : > { %11158 = vst [vmem:[#allocation17_spill] sm:$0xff] %v9711_v63  ;;  %v1734_v37 = vmul.f32 %v9714_v41, %v1694_v43  ;;  %v3248_v43 = vrot.slane %v3246_v8, 1  ;;  %v416_v3 = vand.u32 15, %v206_v54 }
 0x1f0   : > { %v2010_v11 = vpop.f32.mrf.mxu3 }
 0x1f1   : > { %v2051_v49 = vmul.f32 %v11160_v7, %v2010_v11  ;;  %v2677_v30 = vpop.f32.mrf.mxu1  ;;  %v2469_v13 = vpop.f32.mrf.mxu0  ;;  %v1766_v38 = vadd.f32 %v1734_v37, %v11161_v23  ;;  %v3244_v11 = vor.u32 %v3242_v16, %v3240_v1  ;;  %v8625_v7 = vld [vmem:[%s8930_s30 + $0xc4] sm:$0xff]  ;;  %vm718_vm8 = vcmp.le.s32.totalorder %v416_v3, 14  ;;  %v8611_v1 = vld [vmem:[%s8930_s30 + $0x50] sm:$0xff] }
 0x1f2   : > { %v9736_v16 = vsel %vm718_vm8, 1.0, %v11124_v55  ;;  %v3250_v3 = vshrl.u32 %v8610_v17, 16 }
 0x1f3   : > { %v2083_v15 = vadd.f32 %v2051_v49, %v1765_v47  ;;  %7704 = vmatmul.msk.bf16.gmra.mxu2 %vm898_vm1, %v8594_v56  ;;  %v11163_v47 = vld [vmem:[#allocation21_spill] sm:$0xff]  ;;  %v3249_v23 = vsel %vm1222_vm2, %v3244_v11, %v3248_v43  ;;  %v2717_v56 = vmul.f32 %v9714_v41, %v2677_v30  ;;  %11165 = vst [vmem:[#allocation38_spill] sm:$0xff] %v9736_v16  ;;  %v3254_v11 = vshll.u32 %v8611_v1, 16 }
 0x1f4   : > { %7798 = vmatmul.msk.bf16.gmra.mxu0 %vm898_vm1, %v3514_v2 }
 0x1f5   : > { %v2505_v46 = vadd.f32 %v2464_v29, %v2083_v15 }
 0x1f6   : > { %v1697_v9 = vpop.f32.mrf.mxu2 }
 0x1f7   : > { %v9725_v63 = vadd.f32 %v2675_v25, %v2505_v46  ;;  %v1767_v49 = vadd.f32 %v1697_v9, %v11163_v47  ;;  %v3515_v9 = vrot.slane %v8611_v1, 1  ;;  %v8595_v46 = vld [vmem:[%s8930_s30 + $0x48] sm:$0xff]  ;;  %v11167_v47 = vld [vmem:[#allocation22_spill] sm:$0xff] }
 0x1f8   : > { %v2012_v57 = vpop.f32.mrf.mxu3 }
 0x1f9   : > { %11162 = vst [vmem:[#allocation19_spill] sm:$0xff] %v9725_v63  ;;  %v2084_v61 = vadd.f32 %v2012_v57, %v1766_v38  ;;  %v2680_v37 = vpop.f32.mrf.mxu1  ;;  %v2471_v29 = vpop.f32.mrf.mxu0  ;;  %v11166_v38 = vld [vmem:[#allocation20_spill] sm:$0xff]  ;;  %v3516_v57 = vsel %vm1533_vm3, %v3513_v36, %v3515_v9 }
 0x1fb   : > { %v2506_v2 = vadd.f32 %v2466_v12, %v2084_v61 }
 0x1fc   : > { %7911 = vmatmul.msk.bf16.gmra.mxu1 %vm898_vm1, %v8625_v7 }
 0x1fd   : > { %7781 = vmatmul.msk.bf16.gmra.mxu3 %vm898_vm1, %v3249_v23  ;;  %v9733_v25 = vadd.f32 %v2717_v56, %v2506_v2  ;;  %v208_v56 = vadd.s32 248, %v9089_v40 }
 0x1fe   : > { %v1699_v15 = vpop.f32.mrf.mxu2 }
 0x1ff   : > { %11164 = vst [vmem:[#allocation21_spill] sm:$0xff] %v9733_v25  ;;  %v1736_v30 = vmul.f32 %v9736_v16, %v1699_v15  ;;  %v3256_v15 = vrot.slane %v3254_v11, 1  ;;  %v430_v41 = vand.u32 15, %v208_v56 }
 0x200   : > { %v2015_v8 = vpop.f32.mrf.mxu3 }
 0x201   : > { %v2053_v54 = vmul.f32 %v11166_v38, %v2015_v8  ;;  %v2682_v12 = vpop.f32.mrf.mxu1  ;;  %v2474_v7 = vpop.f32.mrf.mxu0  ;;  %v1768_v23 = vadd.f32 %v1736_v30, %v11167_v47  ;;  %v3252_v8 = vor.u32 %v3250_v3, %v3248_v43  ;;  %v8626_v38 = vld [vmem:[%s8930_s30 + $0xcc] sm:$0xff]  ;;  %vm720_vm9 = vcmp.le.s32.totalorder %v430_v41, 14  ;;  %v8612_v43 = vld [vmem:[%s8930_s30 + $0x58] sm:$0xff] }
 0x202   : > { %v9758_v3 = vsel %vm720_vm9, 1.0, %v11124_v55  ;;  %v3258_v41 = vshrl.u32 %v8611_v1, 16  ;;  %v8627_v55 = vld [vmem:[%s8930_s30 + $0xd4] sm:$0xff] }
 0x203   : > { %v2085_v61 = vadd.f32 %v2053_v54, %v1767_v49  ;;  %7705 = vmatmul.msk.bf16.gmra.mxu2 %vm898_vm1, %v8595_v46  ;;  %v11168_v49 = vld [vmem:[#allocation24_spill] sm:$0xff]  ;;  %v3257_v47 = vsel %vm1222_vm2, %v3252_v8, %v3256_v15  ;;  %v2719_v46 = vmul.f32 %v9736_v16, %v2682_v12  ;;  %v3262_v8 = vshll.u32 %v8612_v43, 16  ;;  %v11173_v16 = vld [vmem:[#allocation3_spill] sm:$0xff] }
 0x204   : > { %7799 = vmatmul.msk.bf16.gmra.mxu0 %vm898_vm1, %v3516_v57  ;;  %11170 = vst [vmem:[#allocation24_spill] sm:$0xff] %v9758_v3 }
 0x205   : > { %v2507_v2 = vadd.f32 %v2469_v13, %v2085_v61 }
 0x206   : > { %v1702_v63 = vpop.f32.mrf.mxu2 }
 0x207   : > { %v9747_v25 = vadd.f32 %v2680_v37, %v2507_v2  ;;  %v1769_v54 = vadd.f32 %v1702_v63, %v11168_v49  ;;  %v3517_v63 = vrot.slane %v8612_v43, 1  ;;  %v8596_v2 = vld [vmem:[%s8930_s30 + $0x50] sm:$0xff]  ;;  %v11172_v49 = vld [vmem:[#allocation25_spill] sm:$0xff] }
 0x208   : > { %v2017_v17 = vpop.f32.mrf.mxu3 }
 0x209   : > { %v2086_v36 = vadd.f32 %v2017_v17, %v1768_v23  ;;  %v2685_v30 = vpop.f32.mrf.mxu1  ;;  %v2476_v13 = vpop.f32.mrf.mxu0  ;;  %v11171_v23 = vld [vmem:[#allocation23_spill] sm:$0xff]  ;;  %v3518_v17 = vsel %vm1533_vm3, %v3515_v9, %v3517_v63 }
 0x20b   : > { %v2508_v57 = vadd.f32 %v2471_v29, %v2086_v36 }
 0x20c   : > { %7912 = vmatmul.msk.bf16.gmra.mxu1 %vm898_vm1, %v8626_v38 }
 0x20d   : > { %7782 = vmatmul.msk.bf16.gmra.mxu3 %vm898_vm1, %v3257_v47  ;;  %v9755_v37 = vadd.f32 %v2719_v46, %v2508_v57  ;;  %v3260_v57 = vor.u32 %v3258_v41, %v3256_v15 }
 0x20e   : > { %v1704_v61 = vpop.f32.mrf.mxu2 }
 0x20f   : > { %11169 = vst [vmem:[#allocation22_spill] sm:$0xff] %v9755_v37  ;;  %v1738_v12 = vmul.f32 %v9758_v3, %v1704_v61 }
 0x210   : > { %v2020_v11 = vpop.f32.mrf.mxu3 }
 0x211   : > { %v2055_v56 = vmul.f32 %v11171_v23, %v2020_v11  ;;  %v2687_v29 = vpop.f32.mrf.mxu1  ;;  %v3593_v38 = vpop.f32.mrf.mxu0  ;;  %v1770_v47 = vadd.f32 %v1738_v12, %v11172_v49  ;;  %v3264_v11 = vrot.slane %v3262_v8, 1 }
 0x213   : > { %v2087_v36 = vadd.f32 %v2055_v56, %v1769_v54  ;;  %7706 = vmatmul.msk.bf16.gmra.mxu2 %vm898_vm1, %v8596_v2  ;;  %v3265_v54 = vsel %vm1222_vm2, %v3260_v57, %v3264_v11  ;;  %v2721_v56 = vmul.f32 %v9758_v3, %v2687_v29  ;;  %v3266_v29 = vshrl.u32 %v8612_v43, 16 }
 0x214   : > { %7800 = vmatmul.msk.bf16.gmra.mxu0 %vm898_vm1, %v3518_v17  ;;  %v9784_v17 = vld [vmem:[%s11035_s2] ss:$0 sm:$0xff] }
 0x215   : > { %v2509_v46 = vadd.f32 %v2474_v7, %v2087_v36  ;;  %v3268_v57 = vor.u32 %v3266_v29, %v3264_v11  ;;  %v9803_v29 = vld [vmem:[%s8930_s30 + $0x68] sm:$0xff] }
 0x216   : > { %v2928_v23 = vpop.f32.mrf.mxu2 }
 0x217   : > { %v9768_v61 = vadd.f32 %v2685_v30, %v2509_v46  ;;  %v3008_v37 = vmul.f32 %v11173_v16, %v2928_v23  ;;  %v8613_v30 = vld [vmem:[%s8930_s30 + $0x60] sm:$0xff] }
 0x218   : > { %v2022_v40 = vpop.f32.mrf.mxu3  ;;  %v3270_v36 = vshll.u32 %v8613_v30, 16 }
 0x219   : > { %v2088_v1 = vadd.f32 %v2022_v40, %v1770_v47  ;;  %v9771_v9 = vpop.f32.mrf.mxu1  ;;  %v3595_v7 = vpop.f32.mrf.mxu0  ;;  %v3040_v15 = vadd.f32 %v3008_v37, %v9397_v42  ;;  %v3519_v40 = vrot.slane %v8613_v30, 1  ;;  %v8597_v42 = vld [vmem:[%s8930_s30 + $0x58] sm:$0xff] }
 0x21b   : > { %v2510_v12 = vadd.f32 %v2476_v13, %v2088_v1  ;;  %v3520_v49 = vsel %vm1533_vm3, %v3517_v63, %v3519_v40  ;;  %v3272_v1 = vrot.slane %v3270_v36, 1 }
 0x21c   : > { %7913 = vmatmul.msk.bf16.gmra.mxu1 %vm898_vm1, %v8627_v55 }
 0x21d   : > { %7783 = vmatmul.msk.bf16.gmra.mxu3 %vm898_vm1, %v3265_v54  ;;  %v9779_v2 = vadd.f32 %v2721_v56, %v2510_v12 }
 0x21e   : > { %v2930_v41 = vpop.f32.mrf.mxu2 }
 0x21f   : > { %v3041_v13 = vadd.f32 %v2930_v41, %v9407_v32  ;;  %v8628_v32 = vld [vmem:[%s8930_s30 + $0xdc] sm:$0xff] }
 0x220   : > { %v3382_v23 = vpop.f32.mrf.mxu3 }
 0x221   : > { %v3462_v8 = vadd.f32 %v3382_v23, %v3040_v15  ;;  %v9787_v55 = vpop.f32.mrf.mxu1  ;;  %v3598_v37 = vpop.f32.mrf.mxu0  ;;  %v3674_v15 = vmul.f32 %v9382_v60, %v3595_v7  ;;  %v3521_v7 = vrot.slane %v9803_v29, 1 }
 0x223   : > { %v3705_v47 = vadd.f32 %v3593_v38, %v3462_v8  ;;  %7707 = vmatmul.msk.bf16.gmra.mxu2 %vm898_vm1, %v8597_v42  ;;  %v3273_v38 = vsel %vm1222_vm2, %v3268_v57, %v3272_v1 }
 0x224   : > { %7801 = vmatmul.msk.bf16.gmra.mxu0 %vm898_vm1, %v3520_v49 }
 0x225   : > { %v3740_v46 = vadd.f32 %v9784_v17, %v3705_v47 }
 0x226   : > { %v2933_v12 = vpop.f32.mrf.mxu2 }
 0x227   : > { %v3772_v54 = vmax.f32 %v3740_v46, 0.0  ;;  %v3010_v23 = vmul.f32 %v9137_v4, %v2933_v12 }
 0x228   : > { %v3384_v56 = vpop.f32.mrf.mxu3 }
 0x229   : > { %v3463_v43 = vadd.f32 %v3384_v56, %v3041_v13  ;;  %v9797_v63 = vpop.f32.mrf.mxu1  ;;  %v3600_v41 = vpop.f32.mrf.mxu0  ;;  %v3804_v8 = vmax.f32 %v3772_v54, 1e-06  ;;  %v3042_v11 = vadd.f32 %v3010_v23, %v9425_v52  ;;  %v3522_v23 = vsel %vm1533_vm3, %v3519_v40, %v3521_v7  ;;  %v8629_v40 = vld [vmem:[%s8930_s30 + $0xe4] sm:$0xff] }
 0x22b   : > { %v3706_v42 = vadd.f32 %v3674_v15, %v3463_v43  ;;  %v3836_v13 = vmul.f32 %v3804_v8, %v3804_v8  ;;  %v3274_v15 = vshrl.u32 %v8613_v30, 16  ;;  %v3278_v43 = vshll.u32 %v9803_v29, 16 }
 0x22c   : > { %7914 = vmatmul.msk.bf16.gmra.mxu1 %vm898_vm1, %v8628_v32  ;;  %v8598_v32 = vld [vmem:[%s8930_s30 + $0x60] sm:$0xff] }
 0x22d   : > { %v3741_v36 = vadd.f32 %v9784_v17, %v3706_v42  ;;  %7784 = vmatmul.msk.bf16.gmra.mxu3 %vm898_vm1, %v3273_v38  ;;  %v3868_v38 = vmul.f32 %v3836_v13, %v3804_v8 }
 0x22e   : > { %v2935_v46 = vpop.f32.mrf.mxu2 }
 0x22f   : > { %v3773_v49 = vmax.f32 %v3741_v36, 0.0  ;;  %v3043_v56 = vadd.f32 %v2935_v46, %v9435_v20  ;;  %v3276_v20 = vor.u32 %v3274_v15, %v3272_v1  ;;  %v3901_v30 = vsel %vm3900_vm10, %v3868_v38, 0.0 }
 0x230   : > { %v3387_v47 = vpop.f32.mrf.mxu3 }
 0x231   : > { %v3805_v57 = vmax.f32 %v3773_v49, 1e-06  ;;  %v3464_v54 = vadd.f32 %v3387_v47, %v3042_v11  ;;  %v9809_v12 = vpop.f32.mrf.mxu1  ;;  %v3603_v52 = vpop.f32.mrf.mxu0  ;;  %v3280_v11 = vrot.slane %v3278_v43, 1 }
 0x233   : > { %v3837_v42 = vmul.f32 %v3805_v57, %v3805_v57  ;;  %v3707_v60 = vadd.f32 %v3598_v37, %v3464_v54  ;;  %7708 = vmatmul.msk.bf16.gmra.mxu2 %vm898_vm1, %v8598_v32  ;;  %v3281_v1 = vsel %vm1222_vm2, %v3276_v20, %v3280_v11 }
 0x234   : > { %7802 = vmatmul.msk.bf16.gmra.mxu0 %vm898_vm1, %v3522_v23 }
 0x235   : > { %v3869_v36 = vmul.f32 %v3837_v42, %v3805_v57  ;;  %v3742_v49 = vadd.f32 %v9784_v17, %v3707_v60  ;;  %v3676_v57 = vmul.f32 %v9410_v26, %v3600_v41 }
 0x236   : > { %v2938_v37 = vpop.f32.mrf.mxu2 }
 0x237   : > { %v3902_v47 = vsel %vm3900_vm10, %v3869_v36, 0.0  ;;  %v3774_v46 = vmax.f32 %v3742_v49, 0.0  ;;  %v3012_v32 = vmul.f32 %v9170_v22, %v2938_v37  ;;  %v9828_v36 = vld [vmem:[%s8930_s30 + $0x70] sm:$0xff] }
 0x238   : > { %v3903_v8 = vadd.f32 %v3902_v47, %v3901_v30  ;;  %v3389_v13 = vpop.f32.mrf.mxu3 }
 0x239   : > { %v3806_v54 = vmax.f32 %v3774_v46, 1e-06  ;;  %v3465_v60 = vadd.f32 %v3389_v13, %v3043_v56  ;;  %v9822_v42 = vpop.f32.mrf.mxu1  ;;  %v3605_v15 = vpop.f32.mrf.mxu0  ;;  %v3044_v38 = vadd.f32 %v3012_v32, %v9453_v53  ;;  %v3523_v56 = vrot.slane %v9828_v36, 1 }
 0x23a   : > { %v3282_v32 = vshrl.u32 %v9803_v29, 16  ;;  %v8630_v29 = vld [vmem:[%s8930_s30 + $0xec] sm:$0xff] }
 0x23b   : > { %v3838_v43 = vmul.f32 %v3806_v54, %v3806_v54  ;;  %v3708_v23 = vadd.f32 %v3676_v57, %v3465_v60 }
 0x23c   : > { %7915 = vmatmul.msk.bf16.gmra.mxu1 %vm898_vm1, %v8629_v40 }
 0x23d   : > { %v3870_v49 = vmul.f32 %v3838_v43, %v3806_v54  ;;  %v3743_v41 = vadd.f32 %v9784_v17, %v3708_v23  ;;  %7785 = vmatmul.msk.bf16.gmra.mxu3 %vm898_vm1, %v3281_v1  ;;  %v8599_v54 = vld [vmem:[%s8930_s30 + $0x68] sm:$0xff]  ;;  %v3286_v1 = vshll.u32 %v9828_v36, 16  ;;  %v3524_v43 = vsel %vm1533_vm3, %v3521_v7, %v3523_v56 }
 0x23e   : > { %v2940_v13 = vpop.f32.mrf.mxu2 }
 0x23f   : > { %v3904_v30 = vsel %vm3900_vm10, %v3870_v49, 0.0  ;;  %v3775_v20 = vmax.f32 %v3743_v41, 0.0  ;;  %v3045_v57 = vadd.f32 %v2940_v13, %v9463_v62  ;;  %v3284_v62 = vor.u32 %v3282_v32, %v3280_v11 }
 0x240   : > { %v3905_v47 = vadd.f32 %v3904_v30, %v3903_v8  ;;  %v3392_v46 = vpop.f32.mrf.mxu3 }
 0x241   : > { %v3807_v37 = vmax.f32 %v3775_v20, 1e-06  ;;  %v3466_v40 = vadd.f32 %v3392_v46, %v3044_v38  ;;  %v9835_v53 = vpop.f32.mrf.mxu1  ;;  %v3608_v60 = vpop.f32.mrf.mxu0  ;;  %v3288_v38 = vrot.slane %v3286_v1, 1 }
 0x242   : > { %11174 = vst [vmem:[#allocation25_spill] sm:$0xff] %v9835_v53 }
 0x243   : > { %v3839_v23 = vmul.f32 %v3807_v37, %v3807_v37  ;;  %v3709_v49 = vadd.f32 %v3603_v52, %v3466_v40  ;;  %7709 = vmatmul.msk.bf16.gmra.mxu2 %vm898_vm1, %v8599_v54  ;;  %v3678_v52 = vmul.f32 %v9438_v18, %v3605_v15  ;;  %v11175_v40 = vld [vmem:[#allocation6_spill] sm:$0xff]  ;;  %v3289_v54 = vsel %vm1222_vm2, %v3284_v62, %v3288_v38 }
 0x244   : > { %7803 = vmatmul.msk.bf16.gmra.mxu0 %vm898_vm1, %v3524_v43  ;;  %v9854_v43 = vld [vmem:[%s8930_s30 + $0x78] sm:$0xff] }
 0x245   : > { %v3871_v8 = vmul.f32 %v3839_v23, %v3807_v37  ;;  %v3744_v41 = vadd.f32 %v9784_v17, %v3709_v49 }
 0x246   : > { %v2943_v53 = vpop.f32.mrf.mxu2 }
 0x247   : > { %v3906_v30 = vsel %vm3900_vm10, %v3871_v8, 0.0  ;;  %v3776_v20 = vmax.f32 %v3744_v41, 0.0  ;;  %v3014_v23 = vmul.f32 %v11175_v40, %v2943_v53 }
 0x248   : > { %v3907_v46 = vadd.f32 %v3906_v30, %v3905_v47  ;;  %v3394_v13 = vpop.f32.mrf.mxu3 }
 0x249   : > { %v3808_v7 = vmax.f32 %v3776_v20, 1e-06  ;;  %v3467_v37 = vadd.f32 %v3394_v13, %v3045_v57  ;;  %v9848_v49 = vpop.f32.mrf.mxu1  ;;  %v3610_v11 = vpop.f32.mrf.mxu0  ;;  %v3046_v47 = vadd.f32 %v3014_v23, %v9481_v34  ;;  %v3525_v57 = vrot.slane %v9854_v43, 1 }
 0x24a   : > { %v3290_v23 = vshrl.u32 %v9828_v36, 16  ;;  %v8631_v36 = vld [vmem:[%s8930_s30 + $0xf4] sm:$0xff] }
 0x24b   : > { %v3840_v32 = vmul.f32 %v3808_v7, %v3808_v7  ;;  %v3710_v1 = vadd.f32 %v3678_v52, %v3467_v37 }
 0x24c   : > { %7916 = vmatmul.msk.bf16.gmra.mxu1 %vm898_vm1, %v8630_v29 }
 0x24d   : > { %v3872_v8 = vmul.f32 %v3840_v32, %v3808_v7  ;;  %v3745_v15 = vadd.f32 %v9784_v17, %v3710_v1  ;;  %7786 = vmatmul.msk.bf16.gmra.mxu3 %vm898_vm1, %v3289_v54  ;;  %v8600_v7 = vld [vmem:[%s8930_s30 + $0x70] sm:$0xff]  ;;  %v3294_v54 = vshll.u32 %v9854_v43, 16  ;;  %v3526_v32 = vsel %vm1533_vm3, %v3523_v56, %v3525_v57 }
 0x24e   : > { %v2945_v20 = vpop.f32.mrf.mxu2 }
 0x24f   : > { %v3908_v53 = vsel %vm3900_vm10, %v3872_v8, 0.0  ;;  %v3777_v41 = vmax.f32 %v3745_v15, 0.0  ;;  %v3047_v52 = vadd.f32 %v2945_v20, %v9491_v35  ;;  %v3292_v35 = vor.u32 %v3290_v23, %v3288_v38 }
 0x250   : > { %v3909_v62 = vadd.f32 %v3908_v53, %v3907_v46  ;;  %v3397_v30 = vpop.f32.mrf.mxu3 }
 0x251   : > { %v3809_v13 = vmax.f32 %v3777_v41, 1e-06  ;;  %v3468_v29 = vadd.f32 %v3397_v30, %v3046_v47  ;;  %v9861_v34 = vpop.f32.mrf.mxu1  ;;  %v3613_v37 = vpop.f32.mrf.mxu0  ;;  %v3296_v47 = vrot.slane %v3294_v54, 1 }
 0x252   : > { %11176 = vst [vmem:[#allocation3_spill] sm:$0xff] %v9861_v34 }
 0x253   : > { %v3841_v1 = vmul.f32 %v3809_v13, %v3809_v13  ;;  %v3711_v8 = vadd.f32 %v3608_v60, %v3468_v29  ;;  %7710 = vmatmul.msk.bf16.gmra.mxu2 %vm898_vm1, %v8600_v7  ;;  %v3680_v60 = vmul.f32 %v9466_v19, %v3610_v11  ;;  %v11177_v29 = vld [vmem:[#allocation10_spill] sm:$0xff]  ;;  %v3297_v7 = vsel %vm1222_vm2, %v3292_v35, %v3296_v47 }
 0x254   : > { %7804 = vmatmul.msk.bf16.gmra.mxu0 %vm898_vm1, %v3526_v32  ;;  %v11178_v32 = vld [vmem:[#allocation30_spill] sm:$0xff] }
 0x255   : > { %v3873_v46 = vmul.f32 %v3841_v1, %v3809_v13  ;;  %v3746_v15 = vadd.f32 %v9784_v17, %v3711_v8 }
 0x256   : > { %v2948_v34 = vpop.f32.mrf.mxu2 }
 0x257   : > { %v3910_v53 = vsel %vm3900_vm10, %v3873_v46, 0.0  ;;  %v3778_v41 = vmax.f32 %v3746_v15, 0.0  ;;  %v3016_v1 = vmul.f32 %v11177_v29, %v2948_v34  ;;  %v9880_v46 = vld [vmem:[%s8930_s30 + $0x80] sm:$0xff]  ;;  %v11180_v29 = vld [vmem:[#allocation29_spill] sm:$0xff] }
 0x258   : > { %v3911_v30 = vadd.f32 %v3910_v53, %v3909_v62  ;;  %v3399_v20 = vpop.f32.mrf.mxu3 }
 0x259   : > { %v3810_v56 = vmax.f32 %v3778_v41, 1e-06  ;;  %v3469_v13 = vadd.f32 %v3399_v20, %v3047_v52  ;;  %v9874_v8 = vpop.f32.mrf.mxu1  ;;  %v3615_v38 = vpop.f32.mrf.mxu0  ;;  %v3048_v62 = vadd.f32 %v3016_v1, %v11178_v32  ;;  %v3527_v52 = vrot.slane %v9880_v46, 1 }
 0x25b   : > { %v3842_v23 = vmul.f32 %v3810_v56, %v3810_v56  ;;  %v3712_v54 = vadd.f32 %v3680_v60, %v3469_v13  ;;  %v3528_v32 = vsel %vm1533_vm3, %v3525_v57, %v3527_v52 }
 0x25c   : > { %7917 = vmatmul.msk.bf16.gmra.mxu1 %vm898_vm1, %v8631_v36 }
 0x25d   : > { %v3874_v15 = vmul.f32 %v3842_v23, %v3810_v56  ;;  %v3747_v11 = vadd.f32 %v9784_v17, %v3712_v54  ;;  %7787 = vmatmul.msk.bf16.gmra.mxu3 %vm898_vm1, %v3297_v7  ;;  %v8601_v56 = vld [vmem:[%s8930_s30 + $0x78] sm:$0xff]  ;;  %v3298_v54 = vshrl.u32 %v9854_v43, 16  ;;  %v3302_v7 = vshll.u32 %v9880_v46, 16 }
 0x25e   : > { %v2950_v20 = vpop.f32.mrf.mxu2  ;;  %v8632_v43 = vld [vmem:[%s8930_s30 + $0xfc] sm:$0xff] }
 0x25f   : > { %v3912_v34 = vsel %vm3900_vm10, %v3874_v15, 0.0  ;;  %v3779_v35 = vmax.f32 %v3747_v11, 0.0  ;;  %v3049_v13 = vadd.f32 %v2950_v20, %v9519_v44  ;;  %v3300_v44 = vor.u32 %v3298_v54, %v3296_v47 }
 0x260   : > { %v3913_v53 = vadd.f32 %v3912_v34, %v3911_v30  ;;  %v3402_v41 = vpop.f32.mrf.mxu3 }
 0x261   : > { %v3811_v60 = vmax.f32 %v3779_v35, 1e-06  ;;  %v3470_v36 = vadd.f32 %v3402_v41, %v3048_v62  ;;  %v9887_v1 = vpop.f32.mrf.mxu1  ;;  %v3618_v23 = vpop.f32.mrf.mxu0  ;;  %v3304_v62 = vrot.slane %v3302_v7, 1 }
 0x262   : > { %11179 = vst [vmem:[#allocation30_spill] sm:$0xff] %v9887_v1 }
 0x263   : > { %v3843_v15 = vmul.f32 %v3811_v60, %v3811_v60  ;;  %v3713_v11 = vadd.f32 %v3613_v37, %v3470_v36  ;;  %7711 = vmatmul.msk.bf16.gmra.mxu2 %vm898_vm1, %v8601_v56  ;;  %v3682_v37 = vmul.f32 %v11180_v29, %v3615_v38  ;;  %v11181_v36 = vld [vmem:[#allocation14_spill] sm:$0xff]  ;;  %v3305_v56 = vsel %vm1222_vm2, %v3300_v44, %v3304_v62 }
 0x264   : > { %7805 = vmatmul.msk.bf16.gmra.mxu0 %vm898_vm1, %v3528_v32  ;;  %v9906_v32 = vld [vmem:[%s8930_s30 + $0x88] sm:$0xff] }
 0x265   : > { %v3875_v30 = vmul.f32 %v3843_v15, %v3811_v60  ;;  %v3748_v34 = vadd.f32 %v9784_v17, %v3713_v11 }
 0x266   : > { %v2953_v19 = vpop.f32.mrf.mxu2 }
 0x267   : > { %v3914_v35 = vsel %vm3900_vm10, %v3875_v30, 0.0  ;;  %v3780_v41 = vmax.f32 %v3748_v34, 0.0  ;;  %v3018_v15 = vmul.f32 %v11181_v36, %v2953_v19  ;;  %v11080_v19 = vrot.slane %v9906_v32, 1 }
 0x268   : > { %v3915_v20 = vadd.f32 %v3914_v35, %v3913_v53  ;;  %v3404_v1 = vpop.f32.mrf.mxu3 }
 0x269   : > { %v3812_v57 = vmax.f32 %v3780_v41, 1e-06  ;;  %v3471_v60 = vadd.f32 %v3404_v1, %v3049_v13  ;;  %v9900_v11 = vpop.f32.mrf.mxu1  ;;  %v3620_v47 = vpop.f32.mrf.mxu0  ;;  %v3050_v53 = vadd.f32 %v3018_v15, %v9535_v33  ;;  %v3306_v15 = vshrl.u32 %v9880_v46, 16 }
 0x26b   : > { %v3844_v54 = vmul.f32 %v3812_v57, %v3812_v57  ;;  %v3714_v7 = vadd.f32 %v3682_v37, %v3471_v60 }
 0x26c   : > { %7918 = vmatmul.msk.bf16.gmra.mxu1 %vm898_vm1, %v8632_v43 }
 0x26d   : > { %v3876_v30 = vmul.f32 %v3844_v54, %v3812_v57  ;;  %v3749_v38 = vadd.f32 %v9784_v17, %v3714_v7  ;;  %7788 = vmatmul.msk.bf16.gmra.mxu3 %vm898_vm1, %v3305_v56  ;;  %v8602_v57 = vld [vmem:[%s8930_s30 + $0x80] sm:$0xff]  ;;  %v3310_v56 = vshll.u32 %v9906_v32, 16 }
 0x26e   : > { %v2955_v35 = vpop.f32.mrf.mxu2 }
 0x26f   : > { %v3916_v13 = vsel %vm3900_vm10, %v3876_v30, 0.0  ;;  %v3781_v1 = vmax.f32 %v3749_v38, 0.0  ;;  %v3051_v33 = vadd.f32 %v2955_v35, %v9544_v58  ;;  %v3104_v58 = vld [vmem:[%s8930_s30 + $0x90] sm:$0x1]  ;;  %v3308_v38 = vor.u32 %v3306_v15, %v3304_v62 }
 0x270   : > { %v3917_v34 = vadd.f32 %v3916_v13, %v3915_v20  ;;  %v3407_v44 = vpop.f32.mrf.mxu3  ;;  %v3530_v20 = vsel %vm1533_vm3, %v3527_v52, %v11080_v19  ;;  %v3312_v13 = vrot.slane %v3310_v56, 1 }
 0x271   : > { %v3813_v41 = vmax.f32 %v3781_v1, 1e-06  ;;  %v3472_v43 = vadd.f32 %v3407_v44, %v3050_v53  ;;  %v9913_v37 = vpop.f32.mrf.mxu1  ;;  %v3623_v60 = vpop.f32.mrf.mxu0  ;;  %v8633_v44 = vld [vmem:[%s8930_s30 + $0x104] sm:$0xff] }
 0x272   : > { %11182 = vst [vmem:[#allocation29_spill] sm:$0xff] %v9913_v37  ;;  %v3313_v62 = vsel %vm1222_vm2, %v3308_v38, %v3312_v13 }
 0x273   : > { %v3845_v54 = vmul.f32 %v3813_v41, %v3813_v41  ;;  %v3715_v7 = vadd.f32 %v3618_v23, %v3472_v43  ;;  %7712 = vmatmul.msk.bf16.gmra.mxu2 %vm898_vm1, %v8602_v57  ;;  %v3172_v23 = vunpack.c.l.b16 %v3104_v58  ;;  %v3684_v43 = vmul.f32 %v9522_v0, %v3620_v47 }
 0x274   : > { %7806 = vmatmul.msk.bf16.gmra.mxu0 %vm898_vm1, %v3530_v20 }
 0x275   : > { %v3877_v30 = vmul.f32 %v3845_v54, %v3813_v41  ;;  %v3750_v53 = vadd.f32 %v9784_v17, %v3715_v7  ;;  %v3189_v47 = vpack.c.b16 %v3172_v23, %v3172_v23  ;;  %v8603_v23 = vld [vmem:[%s8930_s30 + $0x88] sm:$0xff] }
 0x276   : > { %v2958_v19 = vpop.f32.mrf.mxu2 }
 0x277   : > { %v3918_v46 = vsel %vm3900_vm10, %v3877_v30, 0.0  ;;  %v3782_v1 = vmax.f32 %v3750_v53, 0.0  ;;  %v3020_v57 = vmul.f32 %v9302_v6, %v2958_v19  ;;  %v7921_v30 = vld [vmem:[%s8930_s30 + $0x94] sm:$0xff]   ;;  %v3531_v58 = vrot.slane %v3189_v47, 1 }
 0x278   : > { %v3919_v35 = vadd.f32 %v3918_v46, %v3917_v34  ;;  %v3409_v52 = vpop.f32.mrf.mxu3  ;;  %v9936_v53 = vld [vmem:[%s8930_s30 + $0x94] sm:$0xf0] }
 0x279   : > { %v3814_v41 = vmax.f32 %v3782_v1, 1e-06  ;;  %v3473_v54 = vadd.f32 %v3409_v52, %v3051_v33  ;;  %v9929_v20 = vpop.f32.mrf.mxu1  ;;  %v3625_v15 = vpop.f32.mrf.mxu0  ;;  %v3052_v34 = vadd.f32 %v3020_v57, %v9560_v45 }
 0x27b   : > { %v3846_v56 = vmul.f32 %v3814_v41, %v3814_v41  ;;  %v3716_v7 = vadd.f32 %v3684_v43, %v3473_v54 }
 0x27c   : > { %7919 = vmatmul.msk.bf16.gmra.mxu1 %vm898_vm1, %v8633_v44 }
 0x27d   : > { %v3878_v33 = vmul.f32 %v3846_v56, %v3814_v41  ;;  %v3751_v19 = vadd.f32 %v9784_v17, %v3716_v7  ;;  %7789 = vmatmul.msk.bf16.gmra.mxu3 %vm898_vm1, %v3313_v62  ;;  %v9946_v41 = vld [vmem:[%s8930_s30 + $0x9c] sm:$0xff]   ;;  %v3314_v7 = vshrl.u32 %v9906_v32, 16 }
 0x27e   : > { %v2960_v52 = vpop.f32.mrf.mxu2  ;;  %v9949_v56 = vld [vmem:[%s8930_s30 + $0x9c] sm:$0xf0] }
 0x27f   : > { %v3920_v38 = vsel %vm3900_vm10, %v3878_v33, 0.0  ;;  %v3783_v46 = vmax.f32 %v3751_v19, 0.0  ;;  %v3053_v54 = vadd.f32 %v2960_v52, %v9572_v28  ;;  %11184 = vst [vmem:[#allocation40_spill] sm:$0xff] %v9949_v56  ;;  %v3318_v33 = vshll.u32 %v3189_v47, 16  ;;  %v9959_v56 = vld [vmem:[%s8930_s30 + $0x9c] sm:$0xff] }
 0x280   : > { %v3921_v1 = vadd.f32 %v3920_v38, %v3919_v35  ;;  %v3412_v44 = vpop.f32.mrf.mxu3  ;;  %v11185_v35 = vrot.slane %v9906_v32, 1  ;;  %v8634_v32 = vld [vmem:[%s8930_s30 + $0x10c] sm:$0xff] }
 0x281   : > { %v3815_v45 = vmax.f32 %v3783_v46, 1e-06  ;;  %v3474_v43 = vadd.f32 %v3412_v44, %v3052_v34  ;;  %v9942_v57 = vpop.f32.mrf.mxu1  ;;  %v3628_v62 = vpop.f32.mrf.mxu0  ;;  %v3316_v44 = vor.u32 %v3314_v7, %v3312_v13  ;;  %v3320_v52 = vrot.slane %v3318_v33, 1 }
 0x282   : > { %11183 = vst [vmem:[#allocation39_spill] sm:$0xff] %v9942_v57  ;;  %v3532_v19 = vsel %vm1533_vm3, %v11185_v35, %v3531_v58  ;;  %v4449_v57 = vshll.u32 %v7921_v30, 16 }
 0x283   : > { %v3847_v34 = vmul.f32 %v3815_v45, %v3815_v45  ;;  %v3717_v38 = vadd.f32 %v3623_v60, %v3474_v43  ;;  %7713 = vmatmul.msk.bf16.gmra.mxu2 %vm898_vm1, %v8603_v23  ;;  %v3686_v43 = vmul.f32 %v9547_v39, %v3625_v15  ;;  %v3321_v7 = vsel %vm1222_vm2, %v3316_v44, %v3320_v52  ;;  %v9973_v15 = vld [vmem:[%s8930_s30 + $0xa4] sm:$0xff] }
 0x284   : > { %7807 = vmatmul.msk.bf16.gmra.mxu0 %vm898_vm1, %v3532_v19  ;;  %v4447_v19 = vshrl.u32 %v7921_v30, 16 }
 0x285   : > { %v3879_v28 = vmul.f32 %v3847_v34, %v3815_v45  ;;  %v3752_v46 = vadd.f32 %v9784_v17, %v3717_v38  ;;  %v4451_v34 = vrot.slane %v4449_v57, 1  ;;  %v4454_v38 = vshll.u32 %v9959_v56, 16 }
 0x286   : > { %v2963_v60 = vpop.f32.mrf.mxu2 }
 0x287   : > { %v3922_v47 = vsel %vm3900_vm10, %v3879_v28, 0.0  ;;  %v3784_v0 = vmax.f32 %v3752_v46, 0.0  ;;  %v3022_v35 = vmul.f32 %v9335_v24, %v2963_v60  ;;  %v8838_v46 = vld [vmem:[%s8930_s30 + $0x94] sm:$0xe]  ;;  %v4452_v30 = vor.u32 %v4451_v34, %v4447_v19 }
 0x288   : > { %v3923_v37 = vadd.f32 %v3922_v47, %v3921_v1  ;;  %v3414_v58 = vpop.f32.mrf.mxu3  ;;  %v4456_v57 = vrot.slane %v4454_v38, 1 }
 0x289   : > { %v3816_v45 = vmax.f32 %v3784_v0, 1e-06  ;;  %v3475_v23 = vadd.f32 %v3414_v58, %v3053_v54  ;;  %v9965_v13 = vpop.f32.mrf.mxu1  ;;  %v3630_v33 = vpop.f32.mrf.mxu0  ;;  %v3054_v0 = vadd.f32 %v3022_v35, %v9590_v14  ;;  %v5417_v54 = vshll.u32 %v9946_v41, 16 }
 0x28a   : > { %v5415_v14 = vshrl.u32 %v9946_v41, 16  ;;  %v5422_v35 = vshll.u32 %v9973_v15, 16  ;;  %v4457_v19 = vsel %vm1222_vm2, %v4452_v30, %v4456_v57 }
 0x28b   : > { %v3848_v1 = vmul.f32 %v3816_v45, %v3816_v45  ;;  %v3718_v28 = vadd.f32 %v3686_v43, %v3475_v23  ;;  %v5419_v23 = vrot.slane %v5417_v54, 1 }
 0x28c   : > { %7920 = vmatmul.msk.bf16.gmra.mxu1 %vm898_vm1, %v8634_v32  ;;  %v5424_v41 = vrot.slane %v5422_v35, 1 }
 0x28d   : > { %v3880_v47 = vmul.f32 %v3848_v1, %v3816_v45  ;;  %v3753_v58 = vadd.f32 %v9784_v17, %v3718_v28  ;;  %7790 = vmatmul.msk.bf16.gmra.mxu3 %vm898_vm1, %v3321_v7  ;;  %v8650_v7 = vld [vmem:[%s8930_s30 + $0x9c] sm:$0xff] }
 0x28e   : > { %v2965_v43 = vpop.f32.mrf.mxu2 }
 0x28f   : > { %v3924_v44 = vsel %vm3900_vm10, %v3880_v47, 0.0  ;;  %v3785_v52 = vmax.f32 %v3753_v58, 0.0  ;;  %v3055_v1 = vadd.f32 %v2965_v43, %v9599_v27  ;;  %v5420_v58 = vor.u32 %v5419_v23, %v5415_v14 }
 0x290   : > { %v3925_v60 = vadd.f32 %v3924_v44, %v3923_v37  ;;  %v3417_v32 = vpop.f32.mrf.mxu3  ;;  %v8839_v37 = vor.u32 %v8838_v46, %v9936_v53  ;;  %v3688_v14 = vmul.f32 %v9575_v51, %v3630_v33 }
 0x291   : > { %v3817_v39 = vmax.f32 %v3785_v52, 1e-06  ;;  %v3476_v45 = vadd.f32 %v3417_v32, %v3054_v0  ;;  %v9982_v28 = vpop.f32.mrf.mxu1  ;;  %v3633_v34 = vpop.f32.mrf.mxu0  ;;  %v4752_v0 = vrot.slane %v9959_v56, 1  ;;  %v9992_v52 = vld [vmem:[%s8930_s30 + $0xa4] sm:$0xff] }
 0x292   : > { %v4751_v27 = vrot.slane %v8839_v37, 1  ;;  %v4462_v37 = vshll.u32 %v9992_v52, 16 }
 0x293   : > { %v3849_v38 = vmul.f32 %v3817_v39, %v3817_v39  ;;  %v3719_v47 = vadd.f32 %v3628_v62, %v3476_v45  ;;  %8014 = vmatmul.msk.bf16.vlgmr.msrb.gmra.mxu2 %vm898_vm1, %v4457_v19 }
 0x294   : > { %8143 = vmatmul.msk.bf16.vlgmr.msrb.gmra.mxu0 %vm898_vm1, %v8650_v7  ;;  %v4753_v7 = vsel %vm1533_vm3, %v4751_v27, %v4752_v0  ;;  %v4464_v27 = vrot.slane %v4462_v37, 1 }
 0x295   : > { %v3881_v54 = vmul.f32 %v3849_v38, %v3817_v39  ;;  %v3754_v44 = vadd.f32 %v9784_v17, %v3719_v47  ;;  %v5425_v39 = vsel %vm1222_vm2, %v5420_v58, %v5424_v41 }
 0x296   : > { %v2968_v62 = vpop.f32.mrf.mxu2 }
 0x297   : > { %v3926_v30 = vsel %vm3900_vm10, %v3881_v54, 0.0  ;;  %v3786_v32 = vmax.f32 %v3754_v44, 0.0  ;;  %v3024_v35 = vmul.f32 %v9122_v5, %v2968_v62 }
 0x298   : > { %v3927_v53 = vadd.f32 %v3926_v30, %v3925_v60  ;;  %v3419_v46 = vpop.f32.mrf.mxu3  ;;  %v4458_v60 = vshrl.u32 %v9959_v56, 16 }
 0x299   : > { %v3818_v43 = vmax.f32 %v3786_v32, 1e-06  ;;  %v3477_v23 = vadd.f32 %v3419_v46, %v3055_v1  ;;  %v9998_v45 = vpop.f32.mrf.mxu1  ;;  %v3635_v19 = vpop.f32.mrf.mxu0  ;;  %v3056_v33 = vadd.f32 %v3024_v35, %v9615_v10  ;;  %v10008_v1 = vld [vmem:[%s8930_s30 + $0xac] sm:$0xff] }
 0x29a   : > { %v4460_v44 = vor.u32 %v4458_v60, %v4456_v57  ;;  %v5430_v10 = vshll.u32 %v10008_v1, 16 }
 0x29b   : > { %v3850_v38 = vmul.f32 %v3818_v43, %v3818_v43  ;;  %v3720_v47 = vadd.f32 %v3688_v14, %v3477_v23 }
 0x29c   : > { %8252 = vmatmul.msk.bf16.vlgmr.msrb.gmra.mxu1 %vm898_vm1, %v5425_v39  ;;  %v5426_v39 = vshrl.u32 %v9973_v15, 16  ;;  %v4465_v57 = vsel %vm1222_vm2, %v4460_v44, %v4464_v27 }
 0x29d   : > { %v3882_v58 = vmul.f32 %v3850_v38, %v3818_v43  ;;  %v3755_v54 = vadd.f32 %v9784_v17, %v3720_v47  ;;  %8031 = vmatmul.msk.bf16.vlgmr.msrb.gmra.mxu3 %vm898_vm1, %v4753_v7  ;;  %v8651_v7 = vld [vmem:[%s8930_s30 + $0xa4] sm:$0xff] }
 0x29e   : > { %v2970_v14 = vpop.f32.mrf.mxu2 }
 0x29f   : > { %v3928_v30 = vsel %vm3900_vm10, %v3882_v58, 0.0  ;;  %v3787_v32 = vmax.f32 %v3755_v54, 0.0  ;;  %v3057_v35 = vadd.f32 %v2970_v14, %v9623_v21  ;;  %v5432_v58 = vrot.slane %v5430_v10, 1  ;;  %v10025_v21 = vld [vmem:[%s8930_s30 + $0xac] sm:$0xff] }
 0x2a0   : > { %v3929_v46 = vadd.f32 %v3928_v30, %v3927_v53  ;;  %v3422_v62 = vpop.f32.mrf.mxu3  ;;  %v5428_v53 = vor.u32 %v5426_v39, %v5424_v41  ;;  %v3690_v39 = vmul.f32 %v9602_v31, %v3635_v19 }
 0x2a1   : > { %v3819_v23 = vmax.f32 %v3787_v32, 1e-06  ;;  %v3478_v43 = vadd.f32 %v3422_v62, %v3056_v33  ;;  %v10016_v38 = vpop.f32.mrf.mxu1  ;;  %v3638_v60 = vpop.f32.mrf.mxu0  ;;  %v4754_v33 = vrot.slane %v9992_v52, 1 }
 0x2a2   : > { %v5433_v41 = vsel %vm1222_vm2, %v5428_v53, %v5432_v58 }
 0x2a3   : > { %v3851_v37 = vmul.f32 %v3819_v23, %v3819_v23  ;;  %v3721_v47 = vadd.f32 %v3633_v34, %v3478_v43  ;;  %8015 = vmatmul.msk.bf16.gmra.mxu2 %vm898_vm1, %v4465_v57  ;;  %v4466_v57 = vshrl.u32 %v9992_v52, 16 }
 0x2a4   : > { %8144 = vmatmul.msk.bf16.gmra.mxu0 %vm898_vm1, %v8651_v7  ;;  %v4755_v7 = vsel %vm1533_vm3, %v4752_v0, %v4754_v33 }
 0x2a5   : > { %v3883_v54 = vmul.f32 %v3851_v37, %v3819_v23  ;;  %v3756_v15 = vadd.f32 %v9784_v17, %v3721_v47  ;;  %v4470_v37 = vshll.u32 %v10025_v21, 16  ;;  %v4468_v56 = vor.u32 %v4466_v57, %v4464_v27 }
 0x2a6   : > { %v2973_v34 = vpop.f32.mrf.mxu2 }
 0x2a7   : > { %v3930_v30 = vsel %vm3900_vm10, %v3883_v54, 0.0  ;;  %v3788_v32 = vmax.f32 %v3756_v15, 0.0  ;;  %v3026_v23 = vmul.f32 %v9157_v59, %v2973_v34  ;;  %v4472_v0 = vrot.slane %v4470_v37, 1 }
 0x2a8   : > { %v3931_v44 = vadd.f32 %v3930_v30, %v3929_v46  ;;  %v3424_v62 = vpop.f32.mrf.mxu3 }
 0x2a9   : > { %v3820_v14 = vmax.f32 %v3788_v32, 1e-06  ;;  %v3479_v10 = vadd.f32 %v3424_v62, %v3057_v35  ;;  %v10031_v43 = vpop.f32.mrf.mxu1  ;;  %v3640_v46 = vpop.f32.mrf.mxu0  ;;  %v3058_v19 = vadd.f32 %v3026_v23, %v9637_v48  ;;  %v10043_v35 = vld [vmem:[%s8930_s30 + $0xb4] sm:$0xff]  ;;  %v4473_v27 = vsel %vm1222_vm2, %v4468_v56, %v4472_v0 }
 0x2aa   : > { %v5438_v48 = vshll.u32 %v10043_v35, 16 }
 0x2ab   : > { %v3852_v47 = vmul.f32 %v3820_v14, %v3820_v14  ;;  %v3722_v53 = vadd.f32 %v3690_v39, %v3479_v10 }
 0x2ac   : > { %8253 = vmatmul.msk.bf16.gmra.mxu1 %vm898_vm1, %v5433_v41  ;;  %v5434_v41 = vshrl.u32 %v10008_v1, 16 }
 0x2ad   : > { %v3884_v54 = vmul.f32 %v3852_v47, %v3820_v14  ;;  %v3757_v15 = vadd.f32 %v9784_v17, %v3722_v53  ;;  %8032 = vmatmul.msk.bf16.gmra.mxu3 %vm898_vm1, %v4755_v7  ;;  %v8652_v7 = vld [vmem:[%s8930_s30 + $0xac] sm:$0xff] }
 0x2ae   : > { %v2975_v39 = vpop.f32.mrf.mxu2 }
 0x2af   : > { %v3932_v30 = vsel %vm3900_vm10, %v3884_v54, 0.0  ;;  %v3789_v32 = vmax.f32 %v3757_v15, 0.0  ;;  %v3059_v23 = vadd.f32 %v2975_v39, %v9645_v50  ;;  %v5440_v54 = vrot.slane %v5438_v48, 1  ;;  %v10060_v50 = vld [vmem:[%s8930_s30 + $0xb4] sm:$0xff] }
 0x2b0   : > { %v3933_v62 = vadd.f32 %v3932_v30, %v3931_v44  ;;  %v3427_v34 = vpop.f32.mrf.mxu3  ;;  %v5436_v44 = vor.u32 %v5434_v41, %v5432_v58  ;;  %v11187_v41 = vld [vmem:[#allocation33_spill] sm:$0xff] }
 0x2b1   : > { %v3821_v10 = vmax.f32 %v3789_v32, 1e-06  ;;  %v3480_v14 = vadd.f32 %v3427_v34, %v3058_v19  ;;  %v10051_v47 = vpop.f32.mrf.mxu1  ;;  %v3643_v57 = vpop.f32.mrf.mxu0  ;;  %v4756_v19 = vrot.slane %v10025_v21, 1  ;;  %v3692_v48 = vmul.f32 %v11187_v41, %v3640_v46 }
 0x2b2   : > { %11186 = vst [vmem:[#allocation41_spill] sm:$0xff] %v10051_v47  ;;  %v5441_v58 = vsel %vm1222_vm2, %v5436_v44, %v5440_v54  ;;  %v11189_v44 = vld [vmem:[#allocation7_spill] sm:$0xff] }
 0x2b3   : > { %v3853_v37 = vmul.f32 %v3821_v10, %v3821_v10  ;;  %v3723_v53 = vadd.f32 %v3638_v60, %v3480_v14  ;;  %8016 = vmatmul.msk.bf16.gmra.mxu2 %vm898_vm1, %v4473_v27  ;;  %v11188_v14 = vld [vmem:[#allocation5_spill] sm:$0xff] }
 0x2b4   : > { %8145 = vmatmul.msk.bf16.gmra.mxu0 %vm898_vm1, %v8652_v7 }
 0x2b5   : > { %v3885_v15 = vmul.f32 %v3853_v37, %v3821_v10  ;;  %v3758_v1 = vadd.f32 %v9784_v17, %v3723_v53  ;;  %v4757_v37 = vsel %vm1533_vm3, %v4754_v33, %v4756_v19 }
 0x2b6   : > { %v2978_v60 = vpop.f32.mrf.mxu2 }
 0x2b7   : > { %v3934_v30 = vsel %vm3900_vm10, %v3885_v15, 0.0  ;;  %v3790_v32 = vmax.f32 %v3758_v1, 0.0  ;;  %v3028_v27 = vmul.f32 %v11188_v14, %v2978_v60  ;;  %v4478_v15 = vshll.u32 %v10060_v50, 16 }
 0x2b8   : > { %v3935_v56 = vadd.f32 %v3934_v30, %v3933_v62  ;;  %v3429_v34 = vpop.f32.mrf.mxu3  ;;  %v4474_v62 = vshrl.u32 %v10025_v21, 16 }
 0x2b9   : > { %v3822_v39 = vmax.f32 %v3790_v32, 1e-06  ;;  %v3481_v10 = vadd.f32 %v3429_v34, %v3059_v23  ;;  %v10066_v7 = vpop.f32.mrf.mxu1  ;;  %v3645_v53 = vpop.f32.mrf.mxu0  ;;  %v3060_v46 = vadd.f32 %v3028_v27, %v11189_v44  ;;  %v10076_v23 = vld [vmem:[%s8930_s30 + $0xbc] sm:$0xff]  ;;  %v4480_v33 = vrot.slane %v4478_v15, 1 }
 0x2ba   : > { %v4476_v52 = vor.u32 %v4474_v62, %v4472_v0 }
 0x2bb   : > { %v3854_v1 = vmul.f32 %v3822_v39, %v3822_v39  ;;  %v3724_v30 = vadd.f32 %v3692_v48, %v3481_v10  ;;  %v5446_v10 = vshll.u32 %v10076_v23, 16 }
 0x2bc   : > { %8254 = vmatmul.msk.bf16.gmra.mxu1 %vm898_vm1, %v5441_v58  ;;  %v5442_v58 = vshrl.u32 %v10043_v35, 16  ;;  %v11085_v35 = vrot.slane %v10060_v50, 1 }
 0x2bd   : > { %v3886_v32 = vmul.f32 %v3854_v1, %v3822_v39  ;;  %v3759_v34 = vadd.f32 %v9784_v17, %v3724_v30  ;;  %8033 = vmatmul.msk.bf16.gmra.mxu3 %vm898_vm1, %v4757_v37  ;;  %v8653_v1 = vld [vmem:[%s8930_s30 + $0xb4] sm:$0xff]  ;;  %v4481_v37 = vsel %vm1222_vm2, %v4476_v52, %v4480_v33 }
 0x2be   : > { %v2980_v48 = vpop.f32.mrf.mxu2  ;;  %v5444_v30 = vor.u32 %v5442_v58, %v5440_v54  ;;  %v11191_v52 = vld [vmem:[#allocation9_spill] sm:$0xff] }
 0x2bf   : > { %v3936_v21 = vsel %vm3900_vm10, %v3886_v32, 0.0  ;;  %v3791_v60 = vmax.f32 %v3759_v34, 0.0  ;;  %v5448_v32 = vrot.slane %v5446_v10, 1 }
 0x2c0   : > { %v3937_v41 = vadd.f32 %v3936_v21, %v3935_v56  ;;  %v3432_v47 = vpop.f32.mrf.mxu3 }
 0x2c1   : > { %v3823_v27 = vmax.f32 %v3791_v60, 1e-06  ;;  %v3482_v44 = vadd.f32 %v3432_v47, %v3060_v46  ;;  %v10083_v39 = vpop.f32.mrf.mxu1  ;;  %v3648_v0 = vpop.f32.mrf.mxu0  ;;  %v10092_v47 = vld [vmem:[%s8930_s30 + $0xbc] sm:$0xff]  ;;  %v3061_v60 = vadd.f32 %v2980_v48, %v11191_v52  ;;  %v5449_v58 = vsel %vm1222_vm2, %v5444_v30, %v5448_v32  ;;  %v10108_v30 = vld [vmem:[%s8930_s30 + $0xc4] sm:$0xff] }
 0x2c2   : > { %11190 = vst [vmem:[#allocation7_spill] sm:$0xff] %v10083_v39 }
 0x2c3   : > { %v3855_v62 = vmul.f32 %v3823_v27, %v3823_v27  ;;  %v3725_v15 = vadd.f32 %v3643_v57, %v3482_v44  ;;  %8017 = vmatmul.msk.bf16.gmra.mxu2 %vm898_vm1, %v4481_v37 }
 0x2c4   : > { %8146 = vmatmul.msk.bf16.gmra.mxu0 %vm898_vm1, %v8653_v1 }
 0x2c5   : > { %v3887_v56 = vmul.f32 %v3855_v62, %v3823_v27  ;;  %v3760_v34 = vadd.f32 %v9784_v17, %v3725_v15  ;;  %v11192_v27 = vld [vmem:[#allocation34_spill] sm:$0xff]  ;;  %v4759_v62 = vsel %vm1533_vm3, %v4756_v19, %v11085_v35 }
 0x2c6   : > { %v2983_v54 = vpop.f32.mrf.mxu2  ;;  %v3694_v44 = vmul.f32 %v11192_v27, %v3645_v53  ;;  %v11195_v27 = vld [vmem:[#allocation11_spill] sm:$0xff] }
 0x2c7   : > { %v3938_v46 = vsel %vm3900_vm10, %v3887_v56, 0.0  ;;  %v3792_v21 = vmax.f32 %v3760_v34, 0.0  ;;  %v4482_v56 = vshrl.u32 %v10060_v50, 16 }
 0x2c8   : > { %v3939_v39 = vadd.f32 %v3938_v46, %v3937_v41  ;;  %v3434_v57 = vpop.f32.mrf.mxu3  ;;  %v4486_v41 = vshll.u32 %v10092_v47, 16  ;;  %v11194_v46 = vld [vmem:[#allocation8_spill] sm:$0xff] }
 0x2c9   : > { %v3824_v10 = vmax.f32 %v3792_v21, 1e-06  ;;  %v3483_v37 = vadd.f32 %v3434_v57, %v3061_v60  ;;  %v10098_v1 = vpop.f32.mrf.mxu1  ;;  %v3650_v15 = vpop.f32.mrf.mxu0  ;;  %v3030_v52 = vmul.f32 %v11194_v46, %v2983_v54  ;;  %v4484_v19 = vor.u32 %v4482_v56, %v4480_v33 }
 0x2ca   : > { %11193 = vst [vmem:[#allocation9_spill] sm:$0xff] %v10098_v1  ;;  %v4488_v60 = vrot.slane %v4486_v41, 1  ;;  %v5454_v46 = vshll.u32 %v10108_v30, 16 }
 0x2cb   : > { %v3856_v48 = vmul.f32 %v3824_v10, %v3824_v10  ;;  %v3726_v34 = vadd.f32 %v3694_v44, %v3483_v37  ;;  %v3062_v1 = vadd.f32 %v3030_v52, %v11195_v27  ;;  %v10130_v52 = vld [vmem:[%s8930_s30 + $0xc4] sm:$0xff] }
 0x2cc   : > { %8255 = vmatmul.msk.bf16.gmra.mxu1 %vm898_vm1, %v5449_v58  ;;  %v5450_v58 = vshrl.u32 %v10076_v23, 16  ;;  %v4489_v33 = vsel %vm1222_vm2, %v4484_v19, %v4488_v60  ;;  %v5456_v27 = vrot.slane %v5454_v46, 1  ;;  %v10123_v23 = vld [vmem:[%s11035_s2] ss:$0 sm:$0xff]  ;;  %v11197_v46 = vld [vmem:[#allocation13_spill] sm:$0xff] }
 0x2cd   : > { %v3888_v53 = vmul.f32 %v3856_v48, %v3824_v10  ;;  %v3761_v21 = vadd.f32 %v9784_v17, %v3726_v34  ;;  %8034 = vmatmul.msk.bf16.gmra.mxu3 %vm898_vm1, %v4759_v62  ;;  %v8654_v62 = vld [vmem:[%s8930_s30 + $0xbc] sm:$0xff] }
 0x2ce   : > { %v2985_v54 = vpop.f32.mrf.mxu2 }
 0x2cf   : > { %v3940_v57 = vsel %vm3900_vm10, %v3888_v53, 0.0  ;;  %v3793_v35 = vmax.f32 %v3761_v21, 0.0  ;;  %v5452_v53 = vor.u32 %v5450_v58, %v5448_v32  ;;  %v3063_v21 = vadd.f32 %v2985_v54, %v11197_v46 }
 0x2d0   : > { %v3941_v44 = vadd.f32 %v3940_v57, %v3939_v39  ;;  %v3437_v37 = vpop.f32.mrf.mxu3  ;;  %v4494_v54 = vshll.u32 %v10130_v52, 16 }
 0x2d1   : > { %v3825_v10 = vmax.f32 %v3793_v35, 1e-06  ;;  %v3484_v48 = vadd.f32 %v3437_v37, %v3062_v1  ;;  %v10116_v17 = vpop.f32.mrf.mxu1  ;;  %v3653_v56 = vpop.f32.mrf.mxu0  ;;  %v11086_v1 = vrot.slane %v10092_v47, 1  ;;  %v5457_v58 = vsel %vm1222_vm2, %v5452_v53, %v5456_v27  ;;  %v11201_v53 = vld [vmem:[#allocation12_spill] sm:$0xff] }
 0x2d2   : > { %11196 = vst [vmem:[#allocation11_spill] sm:$0xff] %v10116_v17  ;;  %v11202_v17 = vld [vmem:[#allocation15_spill] sm:$0xff] }
 0x2d3   : > { %v3857_v41 = vmul.f32 %v3825_v10, %v3825_v10  ;;  %v3727_v34 = vadd.f32 %v3648_v0, %v3484_v48  ;;  %8018 = vmatmul.msk.bf16.gmra.mxu2 %vm898_vm1, %v4489_v33  ;;  %v11198_v48 = vld [vmem:[#allocation35_spill] sm:$0xff] }
 0x2d4   : > { %8147 = vmatmul.msk.bf16.gmra.mxu0 %vm898_vm1, %v8654_v62  ;;  %v3696_v33 = vmul.f32 %v11198_v48, %v3650_v15  ;;  %v10148_v15 = vld [vmem:[%s8930_s30 + $0xcc] sm:$0xff] }
 0x2d5   : > { %v3889_v39 = vmul.f32 %v3857_v41, %v3825_v10  ;;  %v3762_v35 = vadd.f32 %v10123_v23, %v3727_v34  ;;  %v11200_v34 = vrot.slane %v10060_v50, 1 }
 0x2d6   : > { %v2988_v37 = vpop.f32.mrf.mxu2 }
 0x2d7   : > { %v3942_v0 = vsel %vm3900_vm10, %v3889_v39, 0.0  ;;  %v3794_v32 = vmax.f32 %v3762_v35, 0.0  ;;  %v4761_v39 = vsel %vm1533_vm3, %v11200_v34, %v11086_v1  ;;  %v4496_v34 = vrot.slane %v4494_v54, 1 }
 0x2d8   : > { %v3943_v19 = vadd.f32 %v3942_v0, %v3941_v44  ;;  %v3439_v57 = vpop.f32.mrf.mxu3  ;;  %v4490_v44 = vshrl.u32 %v10092_v47, 16 }
 0x2d9   : > { %v3826_v10 = vmax.f32 %v3794_v32, 1e-06  ;;  %v3485_v41 = vadd.f32 %v3439_v57, %v3063_v21  ;;  %v10136_v62 = vpop.f32.mrf.mxu1  ;;  %v3655_v35 = vpop.f32.mrf.mxu0  ;;  %v3032_v32 = vmul.f32 %v11201_v53, %v2988_v37  ;;  %v5462_v53 = vshll.u32 %v10148_v15, 16 }
 0x2da   : > { %11199 = vst [vmem:[#allocation13_spill] sm:$0xff] %v10136_v62  ;;  %v4492_v50 = vor.u32 %v4490_v44, %v4488_v60 }
 0x2db   : > { %v3858_v0 = vmul.f32 %v3826_v10, %v3826_v10  ;;  %v3728_v46 = vadd.f32 %v3696_v33, %v3485_v41  ;;  %v3064_v62 = vadd.f32 %v3032_v32, %v11202_v17  ;;  %v5464_v17 = vrot.slane %v5462_v53, 1 }
 0x2dc   : > { %8256 = vmatmul.msk.bf16.gmra.mxu1 %vm898_vm1, %v5457_v58  ;;  %v5458_v58 = vshrl.u32 %v10108_v30, 16  ;;  %v4497_v60 = vsel %vm1222_vm2, %v4492_v50, %v4496_v34  ;;  %v11087_v30 = vrot.slane %v10130_v52, 1  ;;  %v11204_v50 = vld [vmem:[#allocation17_spill] sm:$0xff] }
 0x2dd   : > { %v3890_v21 = vmul.f32 %v3858_v0, %v3826_v10  ;;  %v3763_v57 = vadd.f32 %v10123_v23, %v3728_v46  ;;  %8035 = vmatmul.msk.bf16.gmra.mxu3 %vm898_vm1, %v4761_v39  ;;  %v8655_v39 = vld [vmem:[%s8930_s30 + $0xc4] sm:$0xff] }
 0x2de   : > { %v2990_v37 = vpop.f32.mrf.mxu2 }
 0x2df   : > { %v3944_v1 = vsel %vm3900_vm10, %v3890_v21, 0.0  ;;  %v3795_v48 = vmax.f32 %v3763_v57, 0.0  ;;  %v5460_v57 = vor.u32 %v5458_v58, %v5456_v27 }
 0x2e0   : > { %v3945_v33 = vadd.f32 %v3944_v1, %v3943_v19  ;;  %v3442_v41 = vpop.f32.mrf.mxu3 }
 0x2e1   : > { %v3827_v10 = vmax.f32 %v3795_v48, 1e-06  ;;  %v3486_v0 = vadd.f32 %v3442_v41, %v3064_v62  ;;  %v10156_v46 = vpop.f32.mrf.mxu1  ;;  %v3658_v44 = vpop.f32.mrf.mxu0  ;;  %v10165_v48 = vld [vmem:[%s8930_s30 + $0xcc] sm:$0xff]  ;;  %v3065_v41 = vadd.f32 %v2990_v37, %v11204_v50  ;;  %v5465_v53 = vsel %vm1222_vm2, %v5460_v57, %v5464_v17 }
 0x2e2   : > { %11203 = vst [vmem:[#allocation15_spill] sm:$0xff] %v10156_v46  ;;  %v4502_v37 = vshll.u32 %v10165_v48, 16  ;;  %v11208_v57 = vld [vmem:[#allocation16_spill] sm:$0xff] }
 0x2e3   : > { %v3859_v54 = vmul.f32 %v3827_v10, %v3827_v10  ;;  %v3729_v21 = vadd.f32 %v3653_v56, %v3486_v0  ;;  %8019 = vmatmul.msk.bf16.gmra.mxu2 %vm898_vm1, %v4497_v60 }
 0x2e4   : > { %8148 = vmatmul.msk.bf16.gmra.mxu0 %vm898_vm1, %v8655_v39 }
 0x2e5   : > { %v3891_v1 = vmul.f32 %v3859_v54, %v3827_v10  ;;  %v3764_v19 = vadd.f32 %v10123_v23, %v3729_v21  ;;  %v11205_v10 = vld [vmem:[#allocation36_spill] sm:$0xff]  ;;  %v11207_v54 = vrot.slane %v10092_v47, 1 }
 0x2e6   : > { %v2993_v27 = vpop.f32.mrf.mxu2  ;;  %v3698_v0 = vmul.f32 %v11205_v10, %v3655_v35  ;;  %v10183_v35 = vld [vmem:[%s8930_s30 + $0xd4] sm:$0xff]  ;;  %v11209_v10 = vld [vmem:[#allocation19_spill] sm:$0xff] }
 0x2e7   : > { %v3946_v62 = vsel %vm3900_vm10, %v3891_v1, 0.0  ;;  %v3796_v32 = vmax.f32 %v3764_v19, 0.0  ;;  %v4763_v21 = vsel %vm1533_vm3, %v11207_v54, %v11087_v30 }
 0x2e8   : > { %v3947_v46 = vadd.f32 %v3946_v62, %v3945_v33  ;;  %v3444_v56 = vpop.f32.mrf.mxu3  ;;  %v4498_v33 = vshrl.u32 %v10130_v52, 16 }
 0x2e9   : > { %v3828_v58 = vmax.f32 %v3796_v32, 1e-06  ;;  %v3487_v60 = vadd.f32 %v3444_v56, %v3065_v41  ;;  %v10171_v39 = vpop.f32.mrf.mxu1  ;;  %v3660_v1 = vpop.f32.mrf.mxu0  ;;  %v3034_v32 = vmul.f32 %v11208_v57, %v2993_v27  ;;  %v4504_v56 = vrot.slane %v4502_v37, 1 }
 0x2ea   : > { %11206 = vst [vmem:[#allocation17_spill] sm:$0xff] %v10171_v39  ;;  %v4500_v47 = vor.u32 %v4498_v33, %v4496_v34  ;;  %v5470_v57 = vshll.u32 %v10183_v35, 16 }
 0x2eb   : > { %v3860_v19 = vmul.f32 %v3828_v58, %v3828_v58  ;;  %v3730_v62 = vadd.f32 %v3698_v0, %v3487_v60  ;;  %v3066_v39 = vadd.f32 %v3034_v32, %v11209_v10 }
 0x2ec   : > { %8257 = vmatmul.msk.bf16.gmra.mxu1 %vm898_vm1, %v5465_v53  ;;  %v5466_v53 = vshrl.u32 %v10148_v15, 16  ;;  %v4505_v34 = vsel %vm1222_vm2, %v4500_v47, %v4504_v56  ;;  %v5472_v10 = vrot.slane %v5470_v57, 1  ;;  %v11088_v15 = vrot.slane %v10165_v48, 1  ;;  %v11211_v47 = vld [vmem:[#allocation21_spill] sm:$0xff] }
 0x2ed   : > { %v3892_v50 = vmul.f32 %v3860_v19, %v3828_v58  ;;  %v3765_v41 = vadd.f32 %v10123_v23, %v3730_v62  ;;  %8036 = vmatmul.msk.bf16.gmra.mxu3 %vm898_vm1, %v4763_v21  ;;  %v8656_v21 = vld [vmem:[%s8930_s30 + $0xcc] sm:$0xff] }
 0x2ee   : > { %v2995_v27 = vpop.f32.mrf.mxu2 }
 0x2ef   : > { %v3948_v54 = vsel %vm3900_vm10, %v3892_v50, 0.0  ;;  %v3797_v30 = vmax.f32 %v3765_v41, 0.0  ;;  %v5468_v41 = vor.u32 %v5466_v53, %v5464_v17 }
 0x2f0   : > { %v3949_v0 = vadd.f32 %v3948_v54, %v3947_v46  ;;  %v3447_v60 = vpop.f32.mrf.mxu3 }
 0x2f1   : > { %v3829_v58 = vmax.f32 %v3797_v30, 1e-06  ;;  %v3488_v19 = vadd.f32 %v3447_v60, %v3066_v39  ;;  %v10191_v62 = vpop.f32.mrf.mxu1  ;;  %v3663_v33 = vpop.f32.mrf.mxu0  ;;  %v10200_v30 = vld [vmem:[%s8930_s30 + $0xd4] sm:$0xff]  ;;  %v3067_v60 = vadd.f32 %v2995_v27, %v11211_v47  ;;  %v5473_v57 = vsel %vm1222_vm2, %v5468_v41, %v5472_v10 }
 0x2f2   : > { %11210 = vst [vmem:[#allocation19_spill] sm:$0xff] %v10191_v62  ;;  %v4510_v27 = vshll.u32 %v10200_v30, 16  ;;  %v11214_v41 = vld [vmem:[#allocation20_spill] sm:$0xff] }
 0x2f3   : > { %v3861_v37 = vmul.f32 %v3829_v58, %v3829_v58  ;;  %v3731_v50 = vadd.f32 %v3658_v44, %v3488_v19  ;;  %8020 = vmatmul.msk.bf16.gmra.mxu2 %vm898_vm1, %v4505_v34 }
 0x2f4   : > { %8149 = vmatmul.msk.bf16.gmra.mxu0 %vm898_vm1, %v8656_v21 }
 0x2f5   : > { %v3893_v46 = vmul.f32 %v3861_v37, %v3829_v58  ;;  %v3766_v32 = vadd.f32 %v10123_v23, %v3731_v50  ;;  %v11212_v58 = vld [vmem:[#allocation37_spill] sm:$0xff]  ;;  %v11213_v37 = vrot.slane %v10130_v52, 1 }
 0x2f6   : > { %v2998_v17 = vpop.f32.mrf.mxu2  ;;  %v3700_v19 = vmul.f32 %v11212_v58, %v3660_v1  ;;  %v10218_v1 = vld [vmem:[%s8930_s30 + $0xdc] sm:$0xff] }
 0x2f7   : > { %v3950_v39 = vsel %vm3900_vm10, %v3893_v46, 0.0  ;;  %v3798_v54 = vmax.f32 %v3766_v32, 0.0  ;;  %v4765_v50 = vsel %vm1533_vm3, %v11213_v37, %v11088_v15 }
 0x2f8   : > { %v3951_v62 = vadd.f32 %v3950_v39, %v3949_v0  ;;  %v3449_v44 = vpop.f32.mrf.mxu3  ;;  %v4506_v0 = vshrl.u32 %v10165_v48, 16 }
 0x2f9   : > { %v3830_v53 = vmax.f32 %v3798_v54, 1e-06  ;;  %v3489_v34 = vadd.f32 %v3449_v44, %v3067_v60  ;;  %v10206_v21 = vpop.f32.mrf.mxu1  ;;  %v3665_v46 = vpop.f32.mrf.mxu0  ;;  %v3036_v54 = vmul.f32 %v11214_v41, %v2998_v17  ;;  %v4512_v44 = vrot.slane %v4510_v27, 1 }
 0x2fa   : > { %v4508_v52 = vor.u32 %v4506_v0, %v4504_v56  ;;  %v5478_v41 = vshll.u32 %v10218_v1, 16 }
 0x2fb   : > { %v3862_v32 = vmul.f32 %v3830_v53, %v3830_v53  ;;  %v3732_v39 = vadd.f32 %v3700_v19, %v3489_v34  ;;  %v3068_v58 = vadd.f32 %v3036_v54, %v9747_v25 }
 0x2fc   : > { %8258 = vmatmul.msk.bf16.gmra.mxu1 %vm898_vm1, %v5473_v57  ;;  %v5474_v57 = vshrl.u32 %v10183_v35, 16  ;;  %v4513_v56 = vsel %vm1222_vm2, %v4508_v52, %v4512_v44  ;;  %v5480_v25 = vrot.slane %v5478_v41, 1  ;;  %v11089_v35 = vrot.slane %v10200_v30, 1  ;;  %v11216_v52 = vld [vmem:[#allocation22_spill] sm:$0xff] }
 0x2fd   : > { %v3894_v47 = vmul.f32 %v3862_v32, %v3830_v53  ;;  %v3767_v60 = vadd.f32 %v10123_v23, %v3732_v39  ;;  %8037 = vmatmul.msk.bf16.gmra.mxu3 %vm898_vm1, %v4765_v50  ;;  %v8657_v50 = vld [vmem:[%s8930_s30 + $0xd4] sm:$0xff] }
 0x2fe   : > { %v3000_v17 = vpop.f32.mrf.mxu2 }
 0x2ff   : > { %v3952_v37 = vsel %vm3900_vm10, %v3894_v47, 0.0  ;;  %v3799_v15 = vmax.f32 %v3767_v60, 0.0  ;;  %v5476_v60 = vor.u32 %v5474_v57, %v5472_v10 }
 0x300   : > { %v3953_v19 = vadd.f32 %v3952_v37, %v3951_v62  ;;  %v3452_v34 = vpop.f32.mrf.mxu3 }
 0x301   : > { %v3831_v53 = vmax.f32 %v3799_v15, 1e-06  ;;  %v3490_v32 = vadd.f32 %v3452_v34, %v3068_v58  ;;  %v10226_v39 = vpop.f32.mrf.mxu1  ;;  %v3668_v0 = vpop.f32.mrf.mxu0  ;;  %v10235_v15 = vld [vmem:[%s8930_s30 + $0xdc] sm:$0xff]  ;;  %v3069_v34 = vadd.f32 %v3000_v17, %v11216_v52  ;;  %v5481_v41 = vsel %vm1222_vm2, %v5476_v60, %v5480_v25  ;;  %v11219_v60 = vld [vmem:[#allocation23_spill] sm:$0xff] }
 0x302   : > { %11215 = vst [vmem:[#allocation21_spill] sm:$0xff] %v10226_v39  ;;  %v4518_v17 = vshll.u32 %v10235_v15, 16 }
 0x303   : > { %v3863_v27 = vmul.f32 %v3831_v53, %v3831_v53  ;;  %v3733_v47 = vadd.f32 %v3663_v33, %v3490_v32  ;;  %8021 = vmatmul.msk.bf16.gmra.mxu2 %vm898_vm1, %v4513_v56 }
 0x304   : > { %8150 = vmatmul.msk.bf16.gmra.mxu0 %vm898_vm1, %v8657_v50 }
 0x305   : > { %v3895_v62 = vmul.f32 %v3863_v27, %v3831_v53  ;;  %v3768_v54 = vadd.f32 %v10123_v23, %v3733_v47  ;;  %v11217_v53 = vld [vmem:[#allocation38_spill] sm:$0xff]  ;;  %v11218_v27 = vrot.slane %v10165_v48, 1 }
 0x306   : > { %v3003_v10 = vpop.f32.mrf.mxu2  ;;  %v3702_v32 = vmul.f32 %v11217_v53, %v3665_v46  ;;  %v10253_v46 = vld [vmem:[%s8930_s30 + $0xe4] sm:$0xff] }
 0x307   : > { %v3954_v58 = vsel %vm3900_vm10, %v3895_v62, 0.0  ;;  %v3800_v37 = vmax.f32 %v3768_v54, 0.0  ;;  %v4767_v47 = vsel %vm1533_vm3, %v11218_v27, %v11089_v35 }
 0x308   : > { %v3955_v39 = vadd.f32 %v3954_v58, %v3953_v19  ;;  %v3454_v33 = vpop.f32.mrf.mxu3  ;;  %v4514_v19 = vshrl.u32 %v10200_v30, 16 }
 0x309   : > { %v3832_v57 = vmax.f32 %v3800_v37, 1e-06  ;;  %v3491_v56 = vadd.f32 %v3454_v33, %v3069_v34  ;;  %v10241_v50 = vpop.f32.mrf.mxu1  ;;  %v3670_v62 = vpop.f32.mrf.mxu0  ;;  %v3038_v37 = vmul.f32 %v11219_v60, %v3003_v10  ;;  %v4520_v33 = vrot.slane %v4518_v17, 1 }
 0x30a   : > { %v4516_v48 = vor.u32 %v4514_v19, %v4512_v44  ;;  %v5486_v60 = vshll.u32 %v10253_v46, 16 }
 0x30b   : > { %v3864_v54 = vmul.f32 %v3832_v57, %v3832_v57  ;;  %v3734_v58 = vadd.f32 %v3702_v32, %v3491_v56  ;;  %v3070_v53 = vadd.f32 %v3038_v37, %v9768_v61 }
 0x30c   : > { %8259 = vmatmul.msk.bf16.gmra.mxu1 %vm898_vm1, %v5481_v41  ;;  %v5482_v41 = vshrl.u32 %v10218_v1, 16  ;;  %v4521_v44 = vsel %vm1222_vm2, %v4516_v48, %v4520_v33  ;;  %v5488_v61 = vrot.slane %v5486_v60, 1  ;;  %v4266_v1 = vmul.f32 %v11173_v16, %v9771_v9 }
 0x30d   : > { %v3896_v52 = vmul.f32 %v3864_v54, %v3832_v57  ;;  %v3769_v34 = vadd.f32 %v10123_v23, %v3734_v58  ;;  %8038 = vmatmul.msk.bf16.gmra.mxu3 %vm898_vm1, %v4767_v47  ;;  %v8658_v47 = vld [vmem:[%s8930_s30 + $0xdc] sm:$0xff] }
 0x30e   : > { %v3005_v10 = vpop.f32.mrf.mxu2 }
 0x30f   : > { %v3956_v27 = vsel %vm3900_vm10, %v3896_v52, 0.0  ;;  %v3801_v35 = vmax.f32 %v3769_v34, 0.0  ;;  %v5484_v34 = vor.u32 %v5482_v41, %v5480_v25 }
 0x310   : > { %v3957_v32 = vadd.f32 %v3956_v27, %v3955_v39  ;;  %v3457_v56 = vpop.f32.mrf.mxu3 }
 0x311   : > { %v3833_v57 = vmax.f32 %v3801_v35, 1e-06  ;;  %v3492_v54 = vadd.f32 %v3457_v56, %v3070_v53  ;;  %v10261_v58 = vpop.f32.mrf.mxu1  ;;  %v5154_v19 = vpop.f32.mrf.mxu0  ;;  %v11090_v35 = vrot.slane %v10235_v15, 1  ;;  %v10272_v53 = vld [vmem:[%s8930_s30 + $0xe4] sm:$0xff]  ;;  %v5489_v41 = vsel %vm1222_vm2, %v5484_v34, %v5488_v61 }
 0x313   : > { %v3865_v17 = vmul.f32 %v3833_v57, %v3833_v57  ;;  %v3735_v52 = vadd.f32 %v3668_v0, %v3492_v54  ;;  %8022 = vmatmul.msk.bf16.gmra.mxu2 %vm898_vm1, %v4521_v44  ;;  %v3071_v0 = vadd.f32 %v3005_v10, %v9779_v2  ;;  %v3704_v54 = vmul.f32 %v9758_v3, %v3670_v62  ;;  %v10287_v62 = vld [vmem:[%s8930_s30 + $0xec] sm:$0xff] }
 0x314   : > { %8151 = vmatmul.msk.bf16.gmra.mxu0 %vm898_vm1, %v8658_v47  ;;  %v4522_v10 = vshrl.u32 %v10235_v15, 16 }
 0x315   : > { %v3897_v39 = vmul.f32 %v3865_v17, %v3833_v57  ;;  %v3770_v37 = vadd.f32 %v10123_v23, %v3735_v52  ;;  %v8855_v17 = vmov 256.0   ;;  %v11220_v52 = vrot.slane %v10200_v30, 1 }
 0x316   : > { %v4635_v56 = vpop.f32.mrf.mxu2  ;;  %8797 = vrcp.f32 %v8855_v17  ;;  %v4524_v30 = vor.u32 %v4522_v10, %v4520_v33  ;;  %v8659_v33 = vld [vmem:[%s8930_s30 + $0xe4] sm:$0xff] }
 0x317   : > { %v3958_v48 = vsel %vm3900_vm10, %v3897_v39, 0.0  ;;  %v3802_v27 = vmax.f32 %v3770_v37, 0.0  ;;  %v4715_v9 = vadd.f32 %v4635_v56, %v4266_v1  ;;  %v4769_v2 = vsel %vm1533_vm3, %v11220_v52, %v11090_v35 }
 0x318   : > { %v3959_v25 = vadd.f32 %v3958_v48, %v3957_v32  ;;  %v3459_v60 = vpop.f32.mrf.mxu3  ;;  %v4526_v39 = vshll.u32 %v10272_v53, 16  ;;  %v5234_v56 = vmul.f32 %v11173_v16, %v5154_v19  ;;  %v5490_v52 = vshrl.u32 %v10253_v46, 16 }
 0x319   : > { %v3834_v57 = vmax.f32 %v3802_v27, 1e-06  ;;  %v3493_v47 = vadd.f32 %v3459_v60, %v3071_v0  ;;  %v5603_v44 = vpop.f32.mrf.mxu1  ;;  %v5156_v32 = vpop.f32.mrf.mxu0 }
 0x31a   : > { %v4528_v27 = vrot.slane %v4526_v39, 1 }
 0x31b   : > { %v3866_v34 = vmul.f32 %v3834_v57, %v3834_v57  ;;  %v3736_v37 = vadd.f32 %v3704_v54, %v3493_v47 }
 0x31c   : > { %8260 = vmatmul.msk.bf16.gmra.mxu1 %vm898_vm1, %v5489_v41  ;;  %v10293_v17 = vpop.eup %8797  ;;  %v4529_v10 = vsel %vm1222_vm2, %v4524_v30, %v4528_v27  ;;  %v4268_v30 = vmul.f32 %v9137_v4, %v9797_v63  ;;  %v11222_v63 = vrot.slane %v10235_v15, 1 }
 0x31d   : > { %v3898_v1 = vmul.f32 %v3866_v34, %v3834_v57  ;;  %v3771_v48 = vadd.f32 %v10123_v23, %v3736_v37  ;;  %8039 = vmatmul.msk.bf16.gmra.mxu3 %vm898_vm1, %v4769_v2  ;;  %v5494_v57 = vshll.u32 %v10287_v62, 16  ;;  %v3971_v19 = vmul.f32 256.0, %v10293_v17 }
 0x31e   : > { %v4637_v41 = vpop.f32.mrf.mxu2  ;;  %vm3975_vm11 = vweird.f32 %v10293_v17 }
 0x31f   : > { %v3960_v0 = vsel %vm3900_vm10, %v3898_v1, 0.0  ;;  %v3803_v60 = vmax.f32 %v3771_v48, 0.0  ;;  %v5492_v48 = vor.u32 %v5490_v52, %v5488_v61  ;;  %v3972_v35 = vsub.f32 1.0, %v3971_v19 }
 0x320   : > { %v3961_v54 = vadd.f32 %v3960_v0, %v3959_v25  ;;  %v4841_v47 = vpop.f32.mrf.mxu3  ;;  %v5496_v25 = vrot.slane %v5494_v57, 1 }
 0x321   : > { %v3835_v23 = vmax.f32 %v3803_v60, 1e-06  ;;  %v4953_v34 = vadd.f32 %v4841_v47, %v4715_v9  ;;  %v5605_v2 = vpop.f32.mrf.mxu1  ;;  %v5159_v39 = vpop.f32.mrf.mxu0  ;;  %v11091_v9 = vrot.slane %v10272_v53, 1  ;;  %v10306_v60 = vld [vmem:[%s8930_s30 + $0xec] sm:$0xff] }
 0x322   : > { %v5497_v57 = vsel %vm1222_vm2, %v5492_v48, %v5496_v25  ;;  %v3973_v48 = vmul.f32 %v10293_v17, %v3972_v35 }
 0x323   : > { %v3867_v37 = vmul.f32 %v3835_v23, %v3835_v23  ;;  %v5266_v1 = vadd.f32 %v5234_v56, %v4953_v34  ;;  %8023 = vmatmul.msk.bf16.gmra.mxu2 %vm898_vm1, %v4529_v10 }
 0x324   : > { %8152 = vmatmul.msk.bf16.gmra.mxu0 %vm898_vm1, %v8659_v33 }
 0x325   : > { %v3899_v0 = vmul.f32 %v3867_v37, %v3835_v23  ;;  %v10302_v46 = vadd.f32 %v5603_v44, %v5266_v1  ;;  %v4716_v23 = vadd.f32 %v4637_v41, %v9787_v55  ;;  %v11221_v44 = vld [vmem:[#allocation26_spill] sm:$0xff]  ;;  %v4771_v1 = vsel %vm1533_vm3, %v11222_v63, %v11091_v9  ;;  %v10324_v41 = vld [vmem:[%s8930_s30 + $0xf4] sm:$0xff] }
 0x326   : > { %v4640_v52 = vpop.f32.mrf.mxu2  ;;  %v3974_v63 = vadd.f32 %v10293_v17, %v3973_v48  ;;  %v5236_v9 = vmul.f32 %v9137_v4, %v5159_v39 }
 0x327   : > { %v3962_v47 = vsel %vm3900_vm10, %v3899_v0, 0.0  ;;  %v4717_v33 = vadd.f32 %v4640_v52, %v4268_v30  ;;  %v4534_v0 = vshll.u32 %v10306_v60, 16 }
 0x328   : > { %v3963_v56 = vadd.f32 %v3962_v47, %v3961_v54  ;;  %v4843_v61 = vpop.f32.mrf.mxu3  ;;  %v4530_v54 = vshrl.u32 %v10272_v53, 16 }
 0x329   : > { %v4922_v34 = vmul.f32 %v11221_v44, %v4843_v61  ;;  %v5608_v10 = vpop.f32.mrf.mxu1  ;;  %v5161_v19 = vpop.f32.mrf.mxu0  ;;  %v4536_v52 = vrot.slane %v4534_v0, 1 }
 0x32a   : > { %v3964_v37 = vrot.slane %v3963_v56, 4  ;;  %v4532_v61 = vor.u32 %v4530_v54, %v4528_v27  ;;  %v8660_v27 = vld [vmem:[%s8930_s30 + $0xec] sm:$0xff] }
 0x32b   : > { %v4954_v47 = vadd.f32 %v4922_v34, %v4716_v23  ;;  %v5498_v23 = vshrl.u32 %v10287_v62, 16 }
 0x32c   : > { %8261 = vmatmul.msk.bf16.gmra.mxu1 %vm898_vm1, %v5497_v57  ;;  %v3965_v55 = vadd.f32 %v3964_v37, %v3963_v56  ;;  %v4537_v54 = vsel %vm1222_vm2, %v4532_v61, %v4536_v52 }
 0x32d   : > { %v5267_v30 = vadd.f32 %v5156_v32, %v4954_v47  ;;  %8040 = vmatmul.msk.bf16.gmra.mxu3 %vm898_vm1, %v4771_v1  ;;  %v5502_v32 = vshll.u32 %v10324_v41, 16  ;;  %v5500_v47 = vor.u32 %v5498_v23, %v5496_v25 }
 0x32e   : > { %v3966_v15 = vrot.slane %v3965_v55, 2  ;;  %v4642_v56 = vpop.f32.mrf.mxu2 }
 0x32f   : > { %v10329_v44 = vadd.f32 %v5605_v2, %v5267_v30  ;;  %v10337_v2 = vsel %vm3975_vm11, %v10293_v17, %v3974_v63  ;;  %v4772_v30 = vrot.slane %v10306_v60, 1  ;;  %v4270_v17 = vmul.f32 %v9170_v22, %v9822_v42 }
 0x330   : > { %v3967_v35 = vadd.f32 %v3966_v15, %v3965_v55  ;;  %v4846_v57 = vpop.f32.mrf.mxu3  ;;  %11223 = vst [vmem:[#allocation22_spill] sm:$0xff] %v10337_v2  ;;  %v5504_v55 = vrot.slane %v5502_v32, 1  ;;  %v10348_v15 = vld [vmem:[%s8930_s30 + $0xf4] sm:$0xff]  ;;  %v4718_v63 = vadd.f32 %v4642_v56, %v9809_v12  ;;  %v11224_v32 = vrot.slane %v10272_v53, 1  ;;  %v10366_v12 = vld [vmem:[%s8930_s30 + $0xfc] sm:$0xff] }
 0x331   : > { %v4955_v34 = vadd.f32 %v4846_v57, %v4717_v33  ;;  %v5610_v37 = vpop.f32.mrf.mxu1  ;;  %v5164_v0 = vpop.f32.mrf.mxu0  ;;  %v4538_v42 = vshrl.u32 %v10306_v60, 16 }
 0x332   : > { %v3968_v1 = vrot.slane %v3967_v35, 1  ;;  %v5505_v61 = vsel %vm1222_vm2, %v5500_v47, %v5504_v55 }
 0x333   : > { %v5268_v39 = vadd.f32 %v5236_v9, %v4955_v34  ;;  %8024 = vmatmul.msk.bf16.gmra.mxu2 %vm898_vm1, %v4537_v54  ;;  %v4773_v34 = vsel %vm1533_vm3, %v11224_v32, %v4772_v30  ;;  %v8661_v32 = vld [vmem:[%s8930_s30 + $0xf4] sm:$0xff] }
 0x334   : > { %v3969_v48 = vadd.f32 %v3968_v1, %v3967_v35  ;;  %8153 = vmatmul.msk.bf16.gmra.mxu0 %vm898_vm1, %v8660_v27  ;;  %v4542_v1 = vshll.u32 %v10348_v15, 16 }
 0x335   : > { %v10341_v62 = vadd.f32 %v5608_v10, %v5268_v39  ;;  %v4540_v39 = vor.u32 %v4538_v42, %v4536_v52 }
 0x336   : > { %v10344_v33 = vmul.f32 %v10337_v2, %v3969_v48  ;;  %v4645_v25 = vpop.f32.mrf.mxu2  ;;  %v4544_v53 = vrot.slane %v4542_v1, 1  ;;  %v5238_v48 = vmul.f32 %v9170_v22, %v5164_v0 }
 0x337   : > { %v4719_v35 = vadd.f32 %v4645_v25, %v4270_v17  ;;  %v5510_v25 = vshll.u32 %v10366_v12, 16 }
 0x338   : > { %v4848_v9 = vpop.f32.mrf.mxu3  ;;  %v10356_v23 = vand.u32 2147483647, %v10344_v33  ;;  %vm8739_vm14 = vcmp.lt.f32.partialorder %v10344_v33, 0.0  ;;  %vm8738_vm15 = vcmp.eq.f32.partialorder %v10344_v33, 0.0 }
 0x339   : > { %v4924_v10 = vmul.f32 %v9410_v26, %v4848_v9  ;;  %v5613_v57 = vpop.f32.mrf.mxu1  ;;  %v5166_v27 = vpop.f32.mrf.mxu0  ;;  %v5506_v9 = vshrl.u32 %v10324_v41, 16  ;;  %v5512_v0 = vrot.slane %v5510_v25, 1 }
 0x33a   : > { %8799 = vlog2.f32 %v10356_v23  ;;  %vm8754_vm12 = vweird.f32 %v10356_v23  ;;  %vm8756_vm13 = vcmp.eq.f32.partialorder %v10356_v23, 0.0  ;;  %vm8741_vm0 = vcmp.eq.f32.partialorder %v10356_v23, inf }
 0x33b   : > { %v4956_v54 = vadd.f32 %v4924_v10, %v4718_v63  ;;  %v5508_v1 = vor.u32 %v5506_v9, %v5504_v55 }
 0x33c   : > { %8262 = vmatmul.msk.bf16.gmra.mxu1 %vm898_vm1, %v5505_v61 }
 0x33d   : > { %v5269_v56 = vadd.f32 %v5161_v19, %v4956_v54  ;;  %8041 = vmatmul.msk.bf16.gmra.mxu3 %vm898_vm1, %v4773_v34  ;;  %v4545_v19 = vsel %vm1222_vm2, %v4540_v39, %v4544_v53  ;;  %v10382_v54 = vld [vmem:[%s8930_s30 + $0xfc] sm:$0xff]  ;;  %v5513_v55 = vsel %vm1222_vm2, %v5508_v1, %v5512_v0  ;;  %v10394_v1 = vld [vmem:[%s8930_s30 + $0x104] sm:$0xff] }
 0x33e   : > { %v4647_v17 = vpop.f32.mrf.mxu2 }
 0x33f   : > { %v10370_v47 = vadd.f32 %v5610_v37, %v5269_v56  ;;  %v4774_v37 = vrot.slane %v10348_v15, 1 }
 0x340   : > { %v4851_v60 = vpop.f32.mrf.mxu3  ;;  %v8800_v61 = vpop.eup %8799 }
 0x341   : > { %v4957_v63 = vadd.f32 %v4851_v60, %v4719_v35  ;;  %v5615_v10 = vpop.f32.mrf.mxu1  ;;  %v5169_v34 = vpop.f32.mrf.mxu0  ;;  %v8744_v52 = vmul.f32 -0.33333334, %v8800_v61  ;;  %v4272_v35 = vmul.f32 %v11175_v40, %v9848_v49 }
 0x343   : > { %v5270_v42 = vadd.f32 %v5238_v48, %v4957_v63  ;;  %8801 = vpow2.f32 %v8744_v52  ;;  %8025 = vmatmul.msk.bf16.gmra.mxu2 %vm898_vm1, %v4545_v19  ;;  %v11225_v48 = vld [vmem:[#allocation25_spill] sm:$0xff]  ;;  %v4775_v63 = vsel %vm1533_vm3, %v4772_v30, %v4774_v37  ;;  %v4546_v19 = vshrl.u32 %v10348_v15, 16 }
 0x344   : > { %8154 = vmatmul.msk.bf16.gmra.mxu0 %vm898_vm1, %v8661_v32  ;;  %v4720_v60 = vadd.f32 %v4647_v17, %v11225_v48  ;;  %v4550_v52 = vshll.u32 %v10382_v54, 16  ;;  %v5240_v30 = vmul.f32 %v11175_v40, %v5169_v34 }
 0x345   : > { %v10378_v41 = vadd.f32 %v5613_v57, %v5270_v42 }
 0x346   : > { %v4650_v39 = vpop.f32.mrf.mxu2 }
 0x347   : > { %v4721_v25 = vadd.f32 %v4650_v39, %v4272_v35  ;;  %v4552_v39 = vrot.slane %v4550_v52, 1 }
 0x348   : > { %v4853_v56 = vpop.f32.mrf.mxu3 }
 0x349   : > { %v4926_v9 = vmul.f32 %v9438_v18, %v4853_v56  ;;  %v5618_v61 = vpop.f32.mrf.mxu1  ;;  %v8802_v57 = vpop.eup %8801  ;;  %v4548_v56 = vor.u32 %v4546_v19, %v4544_v53 }
 0x34a   : > { %v5171_v32 = vpop.f32.mrf.mxu0  ;;  %v8746_v42 = vmul.f32 %v8802_v57, %v8802_v57 }
 0x34b   : > { %v4958_v49 = vadd.f32 %v4926_v9, %v4720_v60  ;;  %v5518_v9 = vshll.u32 %v10394_v1, 16  ;;  %v4553_v22 = vsel %vm1222_vm2, %v4548_v56, %v4552_v39 }
 0x34c   : > { %8263 = vmatmul.msk.bf16.gmra.mxu1 %vm898_vm1, %v5513_v55  ;;  %v8747_v35 = vmul.f32 %v8746_v42, %v10356_v23  ;;  %v5514_v55 = vshrl.u32 %v10366_v12, 16 }
 0x34d   : > { %v5271_v17 = vadd.f32 %v5166_v27, %v4958_v49  ;;  %8042 = vmatmul.msk.bf16.gmra.mxu3 %vm898_vm1, %v4775_v63  ;;  %v8662_v49 = vld [vmem:[%s8930_s30 + $0xfc] sm:$0xff] }
 0x34e   : > { %v8748_v48 = vmul.f32 %v8747_v35, %v8746_v42  ;;  %v4652_v60 = vpop.f32.mrf.mxu2  ;;  %v5516_v34 = vor.u32 %v5514_v55, %v5512_v0  ;;  %v5520_v42 = vrot.slane %v5518_v9, 1 }
 0x34f   : > { %v10399_v15 = vadd.f32 %v5615_v10, %v5271_v17  ;;  %v4776_v17 = vrot.slane %v10382_v54, 1 }
 0x350   : > { %v4856_v2 = vpop.f32.mrf.mxu3  ;;  %v8749_v63 = vsub.f32 %v8748_v48, %v8802_v57  ;;  %v5521_v0 = vsel %vm1222_vm2, %v5516_v34, %v5520_v42  ;;  %v11227_v48 = vld [vmem:[#allocation3_spill] sm:$0xff] }
 0x351   : > { %v4959_v18 = vadd.f32 %v4856_v2, %v4721_v25  ;;  %v5620_v27 = vpop.f32.mrf.mxu1  ;;  %v10411_v2 = vld [vmem:[%s8930_s30 + $0x104] sm:$0xff]  ;;  %v4722_v55 = vadd.f32 %v4652_v60, %v11227_v48 }
 0x352   : > { %v5174_v53 = vpop.f32.mrf.mxu0  ;;  %v8750_v52 = vmul.f32 -0.33333334, %v8749_v63  ;;  %v11226_v25 = vld [vmem:[#allocation10_spill] sm:$0xff]  ;;  %v4558_v34 = vshll.u32 %v10411_v2, 16 }
 0x353   : > { %v5272_v19 = vadd.f32 %v5240_v30, %v4959_v18  ;;  %8026 = vmatmul.msk.bf16.gmra.mxu2 %vm898_vm1, %v4553_v22  ;;  %v4274_v35 = vmul.f32 %v11226_v25, %v9874_v8  ;;  %v8757_v22 = vand.u32 2147483648, %v10344_v33  ;;  %v4777_v8 = vsel %vm1533_vm3, %v4774_v37, %v4776_v17 }
 0x354   : > { %8155 = vmatmul.msk.bf16.gmra.mxu0 %vm898_vm1, %v8662_v49  ;;  %v8751_v10 = vadd.f32 %v8802_v57, %v8750_v52  ;;  %v11228_v57 = vld [vmem:[#allocation28_spill] sm:$0xff]  ;;  %v4554_v52 = vshrl.u32 %v10382_v54, 16  ;;  %v5242_v48 = vmul.f32 %v11226_v25, %v5174_v53 }
 0x355   : > { %v10407_v12 = vadd.f32 %v5618_v61, %v5272_v19 }
 0x356   : > { %v8752_v56 = vmul.f32 %v8751_v10, %v10344_v33  ;;  %v4655_v30 = vpop.f32.mrf.mxu2 }
 0x357   : > { %v4723_v9 = vadd.f32 %v4655_v30, %v4274_v35  ;;  %v10431_v35 = vld [vmem:[%s8930_s30 + $0x10c] sm:$0xff]  ;;  %v4556_v30 = vor.u32 %v4554_v52, %v4552_v39  ;;  %v8663_v39 = vld [vmem:[%s8930_s30 + $0x104] sm:$0xff] }
 0x358   : > { %v4858_v18 = vpop.f32.mrf.mxu3  ;;  %v8753_v63 = vmul.f32 %v8752_v56, %v8751_v10 }
 0x359   : > { %v4928_v61 = vmul.f32 %v11228_v57, %v4858_v18  ;;  %v5623_v49 = vpop.f32.mrf.mxu1 }
 0x35a   : > { %v5176_v19 = vpop.f32.mrf.mxu0  ;;  %v8755_v60 = vsel %vm8754_vm12, %v10344_v33, %v8753_v63  ;;  %v5522_v33 = vshrl.u32 %v10394_v1, 16 }
 0x35b   : > { %v4960_v40 = vadd.f32 %v4928_v61, %v4722_v55  ;;  %v8758_v10 = vsel %vm8756_vm13, %v8757_v22, %v8755_v60 }
 0x35c   : > { %8264 = vmatmul.msk.bf16.gmra.mxu1 %vm898_vm1, %v5521_v0  ;;  %v8759_v56 = vsel %vm8739_vm14, nan, %v8758_v10  ;;  %v4560_v0 = vrot.slane %v4558_v34, 1  ;;  %v5524_v60 = vor.u32 %v5522_v33, %v5520_v42  ;;  %v11230_v42 = vld [vmem:[#allocation30_spill] sm:$0xff] }
 0x35d   : > { %v5273_v37 = vadd.f32 %v5171_v32, %v4960_v40  ;;  %8043 = vmatmul.msk.bf16.gmra.mxu3 %vm898_vm1, %v4777_v8  ;;  %v8760_v18 = vsel %vm8738_vm15, 0.0, %v8759_v56  ;;  %v5526_v32 = vshll.u32 %v10431_v35, 16  ;;  %v4276_v56 = vmul.f32 %v11181_v36, %v9900_v11 }
 0x35e   : > { %v10437_v55 = vsel %vm8741_vm0, inf, %v8760_v18  ;;  %v4657_v63 = vpop.f32.mrf.mxu2  ;;  %v4561_v53 = vsel %vm1222_vm2, %v4556_v30, %v4560_v0 }
 0x35f   : > { %11229 = vst [vmem:[#allocation25_spill] sm:$0xff] %v10437_v55  ;;  %v10439_v61 = vadd.f32 %v5620_v27, %v5273_v37  ;;  %v3979_v40 = vmul.f32 %v10437_v55, %v10437_v55  ;;  %v5528_v10 = vrot.slane %v5526_v32, 1  ;;  %v4778_v37 = vrot.slane %v10411_v2, 1 }
 0x360   : > { %v4861_v22 = vpop.f32.mrf.mxu3 }
 0x361   : > { %v4961_v23 = vadd.f32 %v4861_v22, %v4723_v9  ;;  %v5625_v8 = vpop.f32.mrf.mxu1  ;;  %v3980_v52 = vsel %vm3900_vm10, %v3979_v40, 0.0  ;;  %v10454_v9 = vld [vmem:[%s8930_s30 + $0x10c] sm:$0xff]  ;;  %v4724_v22 = vadd.f32 %v4657_v63, %v11230_v42  ;;  %v4779_v32 = vsel %vm1533_vm3, %v4776_v17, %v4778_v37 }
 0x362   : > { %v5179_v34 = vpop.f32.mrf.mxu0  ;;  %3981 = vadd.xlane.f32.xlu0 %v3980_v52  ;;  %v4566_v11 = vshll.u32 %v10454_v9, 16 }
 0x363   : > { %v5274_v27 = vadd.f32 %v5242_v48, %v4961_v23  ;;  %8027 = vmatmul.msk.bf16.gmra.mxu2 %vm898_vm1, %v4561_v53  ;;  %v5529_v48 = vsel %vm1222_vm2, %v5524_v60, %v5528_v10  ;;  %v10468_v53 = vld [vmem:[%s8930_s30 + $0x114] sm:$0xff]  ;;  %v5244_v54 = vmul.f32 %v11181_v36, %v5179_v34 }
 0x364   : > { %8156 = vmatmul.msk.bf16.gmra.mxu0 %vm898_vm1, %v8663_v39  ;;  %v4562_v39 = vshrl.u32 %v10411_v2, 16  ;;  %v4568_v60 = vrot.slane %v4566_v11, 1  ;;  %v5534_v42 = vshll.u32 %v10468_v53, 16 }
 0x365   : > { %v10450_v1 = vadd.f32 %v5623_v49, %v5274_v27 }
 0x366   : > { %v4660_v30 = vpop.f32.mrf.mxu2  ;;  %v4564_v27 = vor.u32 %v4562_v39, %v4560_v0  ;;  %v5536_v34 = vrot.slane %v5534_v42, 1  ;;  %v11233_v42 = vld [vmem:[#allocation31_spill] sm:$0xff] }
 0x367   : > { %v4725_v33 = vadd.f32 %v4660_v30, %v4276_v56  ;;  %v7953_v56 = vld [vmem:[%s8930_s30 + $0x114] sm:$0x1]  ;;  %v5530_v30 = vshrl.u32 %v10431_v35, 16  ;;  %v4780_v35 = vrot.slane %v10454_v9, 1 }
 0x368   : > { %v4863_v18 = vpop.f32.mrf.mxu3  ;;  %v4428_v0 = vunpack.c.l.b16 %v7953_v56 }
 0x369   : > { %v4930_v40 = vmul.f32 %v11180_v29, %v4863_v18  ;;  %v5628_v49 = vpop.f32.mrf.mxu1  ;;  %v5532_v11 = vor.u32 %v5530_v30, %v5528_v10 }
 0x36a   : > { %v5181_v23 = vpop.f32.mrf.mxu0 }
 0x36b   : > { %v4962_v52 = vadd.f32 %v4930_v40, %v4724_v22  ;;  %v8664_v40 = vld [vmem:[%s8930_s30 + $0x10c] sm:$0xff]  ;;  %v5537_v10 = vsel %vm1222_vm2, %v5532_v11, %v5536_v34 }
 0x36c   : > { %8265 = vmatmul.msk.bf16.gmra.mxu1 %vm898_vm1, %v5529_v48 }
 0x36d   : > { %v5275_v63 = vadd.f32 %v5176_v19, %v4962_v52  ;;  %8044 = vmatmul.msk.bf16.gmra.mxu3 %vm898_vm1, %v4779_v32  ;;  %v4569_v19 = vsel %vm1222_vm2, %v4564_v27, %v4568_v60 }
 0x36e   : > { %v4662_v18 = vpop.f32.mrf.mxu2 }
 0x36f   : > { %v10473_v17 = vadd.f32 %v5625_v8, %v5275_v63  ;;  %v8191_v8 = vld [vmem:[%s8930_s30 + $0x11c] sm:$0x1]  ;;  %v4445_v63 = vpack.c.b16 %v4428_v0, %v4428_v0  ;;  %v4570_v0 = vshrl.u32 %v10454_v9, 16 }
 0x370   : > { %v4866_v2 = vpop.f32.mrf.mxu3 }
 0x371   : > { %v4963_v48 = vadd.f32 %v4866_v2, %v4725_v33  ;;  %v5630_v22 = vpop.f32.mrf.mxu1  ;;  %v4278_v33 = vmul.f32 %v9302_v6, %v9929_v20  ;;  %v11232_v2 = vld [vmem:[#allocation29_spill] sm:$0xff]  ;;  %v4574_v55 = vshll.u32 %v4445_v63, 16  ;;  %v8397_v20 = vld [vmem:[%s8930_s30 + $0xa4] sm:$0xff]  }
 0x372   : > { %v5184_v32 = vpop.f32.mrf.mxu0  ;;  %v4726_v30 = vadd.f32 %v4662_v18, %v11232_v2  ;;  %v4572_v18 = vor.u32 %v4570_v0, %v4568_v60  ;;  %v8841_v60 = vld [vmem:[%s8930_s30 + $0x9c] sm:$0xe] }
 0x373   : > { %v5276_v39 = vadd.f32 %v5244_v54, %v4963_v48  ;;  %8028 = vmatmul.msk.bf16.gmra.mxu2 %vm898_vm1, %v4569_v19  ;;  %v5396_v54 = vunpack.c.l.b16 %v8191_v8  ;;  %v4781_v19 = vsel %vm1533_vm3, %v4778_v37, %v4780_v35  ;;  %v5246_v37 = vmul.f32 %v9302_v6, %v5184_v32 }
 0x374   : > { %8157 = vmatmul.msk.bf16.gmra.mxu0 %vm898_vm1, %v8664_v40 }
 0x375   : > { %v10482_v52 = vadd.f32 %v5628_v49, %v5276_v39  ;;  %v10495_v11 = vpack.c.b16 %v5396_v54, %v5396_v54 }
 0x376   : > { %v4665_v56 = vpop.f32.mrf.mxu2 }
 0x377   : > { %11231 = vst [vmem:[#allocation10_spill] sm:$0xff] %v10482_v52  ;;  %v4727_v40 = vadd.f32 %v4665_v56, %v4278_v33  ;;  %v8843_v52 = vld [vmem:[%s8930_s30 + $0xa4] sm:$0xf0]  ;;  %v4576_v33 = vrot.slane %v4574_v55, 1  ;;  %v5542_v2 = vshll.u32 %v10495_v11, 16 }
 0x378   : > { %v4868_v27 = vpop.f32.mrf.mxu3  ;;  %11234 = vst [vmem:[#allocation3_spill] sm:$0xff] %v10495_v11  ;;  %v6383_v11 = vshrl.u32 %v8397_v20, 16 }
 0x379   : > { %v4932_v48 = vmul.f32 %v11233_v42, %v4868_v27  ;;  %v5633_v49 = vpop.f32.mrf.mxu1  ;;  %v5544_v0 = vrot.slane %v5542_v2, 1 }
 0x37a   : > { %v5186_v39 = vpop.f32.mrf.mxu0 }
 0x37b   : > { %v4964_v36 = vadd.f32 %v4932_v48, %v4726_v30  ;;  %v8665_v48 = vld [vmem:[%s8930_s30 + $0x114] sm:$0xff] }
 0x37c   : > { %8266 = vmatmul.msk.bf16.gmra.mxu1 %vm898_vm1, %v5537_v10  ;;  %v5538_v10 = vshrl.u32 %v10468_v53, 16  ;;  %v10511_v53 = vld [vmem:[%s8930_s30 + $0xac] sm:$0xff] }
 0x37d   : > { %v5277_v8 = vadd.f32 %v5181_v23, %v4964_v36  ;;  %8045 = vmatmul.msk.bf16.gmra.mxu3 %vm898_vm1, %v4781_v19  ;;  %v4577_v36 = vsel %vm1222_vm2, %v4572_v18, %v4576_v33 }
 0x37e   : > { %v4667_v56 = vpop.f32.mrf.mxu2  ;;  %v5540_v55 = vor.u32 %v5538_v10, %v5536_v34  ;;  %v11237_v34 = vld [vmem:[#allocation39_spill] sm:$0xff]  ;;  %v11238_v10 = vld [vmem:[#allocation32_spill] sm:$0xff] }
 0x37f   : > { %v10499_v27 = vadd.f32 %v5630_v22, %v5277_v8  ;;  %v4782_v22 = vrot.slane %v4445_v63, 1  ;;  %v4280_v8 = vmul.f32 %v9335_v24, %v9965_v13  ;;  %v6390_v13 = vshll.u32 %v10511_v53, 16 }
 0x380   : > { %v4871_v9 = vpop.f32.mrf.mxu3 }
 0x381   : > { %11235 = vst [vmem:[#allocation28_spill] sm:$0xff] %v10499_v27  ;;  %v4965_v30 = vadd.f32 %v4871_v9, %v4727_v40  ;;  %v5635_v54 = vpop.f32.mrf.mxu1  ;;  %v6385_v40 = vshll.u32 %v8397_v20, 16  ;;  %v4728_v9 = vadd.f32 %v4667_v56, %v11237_v34 }
 0x382   : > { %v5189_v23 = vpop.f32.mrf.mxu0 }
 0x383   : > { %v5278_v19 = vadd.f32 %v5246_v37, %v4965_v30  ;;  %8029 = vmatmul.msk.bf16.gmra.mxu2 %vm898_vm1, %v4577_v36  ;;  %v5545_v37 = vsel %vm1222_vm2, %v5540_v55, %v5544_v0  ;;  %v8820_v0 = vld [vmem:[%s8930_s30 + $0xa4] sm:$0xff] }
 0x384   : > { %8158 = vmatmul.msk.bf16.gmra.mxu0 %vm898_vm1, %v8665_v48  ;;  %v8844_v48 = vld [vmem:[%s8930_s30 + $0xa4] sm:$0xe] }
 0x385   : > { %v10508_v32 = vadd.f32 %v5633_v49, %v5278_v19  ;;  %v4783_v49 = vsel %vm1533_vm3, %v4780_v35, %v4782_v22  ;;  %v11239_v19 = vld [vmem:[#allocation40_spill] sm:$0xff]  ;;  %v5248_v35 = vmul.f32 %v9335_v24, %v5189_v23 }
 0x386   : > { %v4670_v33 = vpop.f32.mrf.mxu2  ;;  %v8842_v6 = vor.u32 %v8841_v60, %v11239_v19  ;;  %v10536_v23 = vld [vmem:[%s8930_s30 + $0xb4] sm:$0xff] }
 0x387   : > { %11236 = vst [vmem:[#allocation30_spill] sm:$0xff] %v10508_v32  ;;  %v4729_v63 = vadd.f32 %v4670_v33, %v4280_v8  ;;  %v6387_v32 = vrot.slane %v6385_v40, 1  ;;  %v5720_v8 = vrot.slane %v8820_v0, 1  ;;  %v6392_v33 = vrot.slane %v6390_v13, 1 }
 0x388   : > { %v4873_v18 = vpop.f32.mrf.mxu3  ;;  %v5719_v56 = vrot.slane %v8842_v6, 1  ;;  %v8845_v40 = vor.u32 %v8844_v48, %v8843_v52  ;;  %v4282_v52 = vmul.f32 %v9122_v5, %v9998_v45 }
 0x389   : > { %v4934_v2 = vmul.f32 %v11238_v10, %v4873_v18  ;;  %v5638_v30 = vpop.f32.mrf.mxu1  ;;  %v6388_v18 = vor.u32 %v6387_v32, %v6383_v11  ;;  %v6688_v11 = vrot.slane %v10511_v53, 1 }
 0x38a   : > { %v5191_v36 = vpop.f32.mrf.mxu0 }
 0x38b   : > { %v4966_v27 = vadd.f32 %v4934_v2, %v4728_v9  ;;  %v6687_v2 = vrot.slane %v8845_v40, 1 }
 0x38c   : > { %8267 = vmatmul.msk.bf16.gmra.mxu1 %vm898_vm1, %v5545_v37  ;;  %v5721_v37 = vsel %vm1533_vm3, %v5719_v56, %v5720_v8  ;;  %v8681_v56 = vld [vmem:[%s8930_s30 + $0xa4] sm:$0xff] }
 0x38d   : > { %v5279_v55 = vadd.f32 %v5186_v39, %v4966_v27  ;;  %8046 = vmatmul.msk.bf16.gmra.mxu3 %vm898_vm1, %v4783_v49  ;;  %v6393_v27 = vsel %vm1222_vm2, %v6388_v18, %v6392_v33  ;;  %v6689_v49 = vsel %vm1533_vm3, %v6687_v2, %v6688_v11  ;;  %v6398_v18 = vshll.u32 %v10536_v23, 16 }
 0x38e   : > { %v4672_v60 = vpop.f32.mrf.mxu2 }
 0x38f   : > { %v10526_v22 = vadd.f32 %v5635_v54, %v5279_v55  ;;  %v4730_v48 = vadd.f32 %v4672_v60, %v9982_v28  ;;  %v6400_v28 = vrot.slane %v6398_v18, 1 }
 0x390   : > { %v4876_v20 = vpop.f32.mrf.mxu3 }
 0x391   : > { %v4967_v34 = vadd.f32 %v4876_v20, %v4729_v63  ;;  %v5640_v9 = vpop.f32.mrf.mxu1  ;;  %v8821_v20 = vld [vmem:[%s8930_s30 + $0xac] sm:$0xff] }
 0x392   : > { %v5194_v39 = vpop.f32.mrf.mxu0  ;;  %v5722_v40 = vrot.slane %v8821_v20, 1 }
 0x393   : > { %v5280_v6 = vadd.f32 %v5248_v35, %v4967_v34  ;;  %8269 = vmatmul.msk.bf16.vlgmr.msra.gmra.mxu2 %vm898_vm1, %v5721_v37  ;;  %v5250_v60 = vmul.f32 %v9122_v5, %v5194_v39  ;;  %v4284_v39 = vmul.f32 %v9157_v59, %v10031_v43 }
 0x394   : > { %8490 = vmatmul.msk.bf16.vlgmr.msra.gmra.mxu0 %vm898_vm1, %v6393_v27 }
 0x395   : > { %v10533_v54 = vadd.f32 %v5638_v30, %v5280_v6  ;;  %v6394_v30 = vshrl.u32 %v10511_v53, 16 }
 0x396   : > { %v4675_v63 = vpop.f32.mrf.mxu2 }
 0x397   : > { %v4731_v13 = vadd.f32 %v4675_v63, %v4282_v52  ;;  %v6396_v34 = vor.u32 %v6394_v30, %v6392_v33  ;;  %v5723_v52 = vsel %vm1533_vm3, %v5720_v8, %v5722_v40 }
 0x398   : > { %v4878_v32 = vpop.f32.mrf.mxu3 }
 0x399   : > { %v4936_v19 = vmul.f32 %v9575_v51, %v4878_v32  ;;  %v5643_v55 = vpop.f32.mrf.mxu1 }
 0x39a   : > { %v5196_v0 = vpop.f32.mrf.mxu0 }
 0x39b   : > { %v4968_v35 = vadd.f32 %v4936_v19, %v4730_v48 }
 0x39c   : > { %8507 = vmatmul.msk.bf16.vlgmr.msra.gmra.mxu1 %vm898_vm1, %v6689_v49  ;;  %v6690_v49 = vrot.slane %v10536_v23, 1 }
 0x39d   : > { %v5281_v45 = vadd.f32 %v5191_v36, %v4968_v35  ;;  %8381 = vmatmul.msk.bf16.vlgmr.msra.gmra.mxu3 %vm898_vm1, %v8681_v56  ;;  %v6401_v36 = vsel %vm1222_vm2, %v6396_v34, %v6400_v28  ;;  %v8682_v35 = vld [vmem:[%s8930_s30 + $0xac] sm:$0xff] }
 0x39e   : > { %v4677_v6 = vpop.f32.mrf.mxu2  ;;  %v6691_v19 = vsel %vm1533_vm3, %v6688_v11, %v6690_v49 }
 0x39f   : > { %v10550_v37 = vadd.f32 %v5640_v9, %v5281_v45  ;;  %v10560_v9 = vld [vmem:[%s8930_s30 + $0xbc] sm:$0xff] }
 0x3a0   : > { %v4881_v27 = vpop.f32.mrf.mxu3  ;;  %v6406_v20 = vshll.u32 %v10560_v9, 16 }
 0x3a1   : > { %v4969_v53 = vadd.f32 %v4881_v27, %v4731_v13  ;;  %v5645_v2 = vpop.f32.mrf.mxu1  ;;  %v4732_v13 = vadd.f32 %v4677_v6, %v10016_v38 }
 0x3a2   : > { %v5199_v32 = vpop.f32.mrf.mxu0  ;;  %v6408_v38 = vrot.slane %v6406_v20, 1 }
 0x3a3   : > { %v5282_v63 = vadd.f32 %v5250_v60, %v4969_v53  ;;  %8270 = vmatmul.msk.bf16.gmra.mxu2 %vm898_vm1, %v5723_v52  ;;  %v8822_v60 = vld [vmem:[%s8930_s30 + $0xb4] sm:$0xff]  ;;  %v5252_v6 = vmul.f32 %v9157_v59, %v5199_v32  ;;  %v4286_v32 = vmul.f32 %v11188_v14, %v10066_v7 }
 0x3a4   : > { %8491 = vmatmul.msk.bf16.gmra.mxu0 %vm898_vm1, %v6401_v36  ;;  %v5724_v11 = vrot.slane %v8822_v60, 1  ;;  %v8683_v60 = vld [vmem:[%s8930_s30 + $0xb4] sm:$0xff] }
 0x3a5   : > { %v10557_v33 = vadd.f32 %v5643_v55, %v5282_v63  ;;  %v6402_v55 = vshrl.u32 %v10536_v23, 16 }
 0x3a6   : > { %v4680_v48 = vpop.f32.mrf.mxu2 }
 0x3a7   : > { %v4733_v30 = vadd.f32 %v4680_v48, %v4284_v39  ;;  %v6404_v27 = vor.u32 %v6402_v55, %v6400_v28  ;;  %v5725_v39 = vsel %vm1533_vm3, %v5722_v40, %v5724_v11  ;;  %v11241_v55 = vld [vmem:[#allocation33_spill] sm:$0xff] }
 0x3a8   : > { %v4883_v8 = vpop.f32.mrf.mxu3 }
 0x3a9   : > { %v4938_v56 = vmul.f32 %v9602_v31, %v4883_v8  ;;  %v5648_v18 = vpop.f32.mrf.mxu1 }
 0x3aa   : > { %v5201_v45 = vpop.f32.mrf.mxu0 }
 0x3ab   : > { %v4970_v34 = vadd.f32 %v4938_v56, %v4732_v13 }
 0x3ac   : > { %8508 = vmatmul.msk.bf16.gmra.mxu1 %vm898_vm1, %v6691_v19  ;;  %v6692_v19 = vrot.slane %v10560_v9, 1 }
 0x3ad   : > { %v5283_v43 = vadd.f32 %v5196_v0, %v4970_v34  ;;  %8382 = vmatmul.msk.bf16.gmra.mxu3 %vm898_vm1, %v8682_v35  ;;  %v6409_v0 = vsel %vm1222_vm2, %v6404_v27, %v6408_v38 }
 0x3ae   : > { %v4682_v36 = vpop.f32.mrf.mxu2  ;;  %v6693_v56 = vsel %vm1533_vm3, %v6690_v49, %v6692_v19 }
 0x3af   : > { %v10574_v53 = vadd.f32 %v5645_v2, %v5283_v43  ;;  %v10584_v2 = vld [vmem:[%s8930_s30 + $0xc4] sm:$0xff] }
 0x3b0   : > { %v4886_v52 = vpop.f32.mrf.mxu3 }
 0x3b1   : > { %v4971_v23 = vadd.f32 %v4886_v52, %v4733_v30  ;;  %v5650_v63 = vpop.f32.mrf.mxu1  ;;  %v11240_v30 = vld [vmem:[#allocation41_spill] sm:$0xff] }
 0x3b2   : > { %v5204_v8 = vpop.f32.mrf.mxu0  ;;  %v4734_v35 = vadd.f32 %v4682_v36, %v11240_v30 }
 0x3b3   : > { %v5284_v48 = vadd.f32 %v5252_v6, %v4971_v23  ;;  %8271 = vmatmul.msk.bf16.gmra.mxu2 %vm898_vm1, %v5725_v39  ;;  %v6414_v6 = vshll.u32 %v10584_v2, 16  ;;  %v8823_v23 = vld [vmem:[%s8930_s30 + $0xbc] sm:$0xff] }
 0x3b4   : > { %8492 = vmatmul.msk.bf16.gmra.mxu0 %vm898_vm1, %v6409_v0  ;;  %v5726_v49 = vrot.slane %v8823_v23, 1  ;;  %v5254_v0 = vmul.f32 %v11188_v14, %v5204_v8  ;;  %v11243_v8 = vld [vmem:[#allocation9_spill] sm:$0xff]  ;;  %v11246_v23 = vld [vmem:[#allocation34_spill] sm:$0xff] }
 0x3b5   : > { %v10581_v28 = vadd.f32 %v5648_v18, %v5284_v48  ;;  %v6410_v18 = vshrl.u32 %v10560_v9, 16  ;;  %v6416_v36 = vrot.slane %v6414_v6, 1  ;;  %v8824_v14 = vld [vmem:[%s8930_s30 + $0xc4] sm:$0xff] }
 0x3b6   : > { %v4685_v13 = vpop.f32.mrf.mxu2  ;;  %v5727_v30 = vsel %vm1533_vm3, %v5724_v11, %v5726_v49 }
 0x3b7   : > { %v4735_v34 = vadd.f32 %v4685_v13, %v4286_v32  ;;  %v6412_v39 = vor.u32 %v6410_v18, %v6408_v38 }
 0x3b8   : > { %v4888_v40 = vpop.f32.mrf.mxu3 }
 0x3b9   : > { %v4940_v20 = vmul.f32 %v11241_v55, %v4888_v40  ;;  %v5653_v43 = vpop.f32.mrf.mxu1 }
 0x3ba   : > { %v5206_v27 = vpop.f32.mrf.mxu0 }
 0x3bb   : > { %v4972_v52 = vadd.f32 %v4940_v20, %v4734_v35  ;;  %v6694_v20 = vrot.slane %v10584_v2, 1 }
 0x3bc   : > { %8509 = vmatmul.msk.bf16.gmra.mxu1 %vm898_vm1, %v6693_v56 }
 0x3bd   : > { %v5285_v7 = vadd.f32 %v5201_v45, %v4972_v52  ;;  %8383 = vmatmul.msk.bf16.gmra.mxu3 %vm898_vm1, %v8683_v60  ;;  %v6417_v45 = vsel %vm1222_vm2, %v6412_v39, %v6416_v36  ;;  %v6695_v6 = vsel %vm1533_vm3, %v6692_v19, %v6694_v20  ;;  %v11245_v52 = vld [vmem:[#allocation7_spill] sm:$0xff]  ;;  %v5728_v19 = vrot.slane %v8824_v14, 1 }
 0x3be   : > { %v4687_v40 = vpop.f32.mrf.mxu2 }
 0x3bf   : > { %v10598_v48 = vadd.f32 %v5650_v63, %v5285_v7  ;;  %v10608_v63 = vld [vmem:[%s8930_s30 + $0xcc] sm:$0xff]  ;;  %v4736_v7 = vadd.f32 %v4687_v40, %v11245_v52 }
 0x3c0   : > { %v4891_v32 = vpop.f32.mrf.mxu3  ;;  %v6696_v14 = vrot.slane %v10608_v63, 1 }
 0x3c1   : > { %v4973_v9 = vadd.f32 %v4891_v32, %v4735_v34  ;;  %v5655_v13 = vpop.f32.mrf.mxu1  ;;  %v11244_v34 = vld [vmem:[#allocation8_spill] sm:$0xff] }
 0x3c2   : > { %v5209_v35 = vpop.f32.mrf.mxu0  ;;  %v4288_v60 = vmul.f32 %v11244_v34, %v11243_v8 }
 0x3c3   : > { %v5286_v56 = vadd.f32 %v5254_v0, %v4973_v9  ;;  %8272 = vmatmul.msk.bf16.gmra.mxu2 %vm898_vm1, %v5727_v30  ;;  %v8684_v9 = vld [vmem:[%s8930_s30 + $0xbc] sm:$0xff] }
 0x3c4   : > { %8493 = vmatmul.msk.bf16.gmra.mxu0 %vm898_vm1, %v6417_v45  ;;  %v6422_v45 = vshll.u32 %v10608_v63, 16 }
 0x3c5   : > { %v10605_v38 = vadd.f32 %v5653_v43, %v5286_v56  ;;  %v6418_v43 = vshrl.u32 %v10584_v2, 16 }
 0x3c6   : > { %v4690_v18 = vpop.f32.mrf.mxu2  ;;  %v6424_v40 = vrot.slane %v6422_v45, 1  ;;  %v6697_v45 = vsel %vm1533_vm3, %v6694_v20, %v6696_v14 }
 0x3c7   : > { %11242 = vst [vmem:[#allocation29_spill] sm:$0xff] %v10605_v38  ;;  %v4737_v0 = vadd.f32 %v4690_v18, %v4288_v60  ;;  %v6420_v38 = vor.u32 %v6418_v43, %v6416_v36  ;;  %v5256_v60 = vmul.f32 %v11244_v34, %v5209_v35  ;;  %v11249_v35 = vld [vmem:[#allocation13_spill] sm:$0xff] }
 0x3c8   : > { %v4893_v11 = vpop.f32.mrf.mxu3 }
 0x3c9   : > { %v4942_v39 = vmul.f32 %v11246_v23, %v4893_v11  ;;  %v5658_v32 = vpop.f32.mrf.mxu1 }
 0x3ca   : > { %v5211_v30 = vpop.f32.mrf.mxu0 }
 0x3cb   : > { %v4974_v56 = vadd.f32 %v4942_v39, %v4736_v7  ;;  %v5729_v7 = vsel %vm1533_vm3, %v5726_v49, %v5728_v19 }
 0x3cc   : > { %8510 = vmatmul.msk.bf16.gmra.mxu1 %vm898_vm1, %v6695_v6 }
 0x3cd   : > { %v5287_v8 = vadd.f32 %v5206_v27, %v4974_v56  ;;  %8384 = vmatmul.msk.bf16.gmra.mxu3 %vm898_vm1, %v8684_v9  ;;  %v6425_v27 = vsel %vm1222_vm2, %v6420_v38, %v6424_v40  ;;  %v11251_v38 = vld [vmem:[#allocation11_spill] sm:$0xff] }
 0x3ce   : > { %v4692_v52 = vpop.f32.mrf.mxu2 }
 0x3cf   : > { %v10622_v11 = vadd.f32 %v5655_v13, %v5287_v8  ;;  %v10632_v13 = vld [vmem:[%s8930_s30 + $0xd4] sm:$0xff]  ;;  %v4738_v56 = vadd.f32 %v4692_v52, %v11251_v38  ;;  %v11252_v8 = vld [vmem:[#allocation35_spill] sm:$0xff] }
 0x3d0   : > { %v4896_v18 = vpop.f32.mrf.mxu3 }
 0x3d1   : > { %11247 = vst [vmem:[#allocation31_spill] sm:$0xff] %v10622_v11  ;;  %v4975_v2 = vadd.f32 %v4896_v18, %v4737_v0  ;;  %v5660_v23 = vpop.f32.mrf.mxu1  ;;  %v11250_v0 = vld [vmem:[#allocation12_spill] sm:$0xff] }
 0x3d2   : > { %v5214_v39 = vpop.f32.mrf.mxu0  ;;  %v4290_v9 = vmul.f32 %v11250_v0, %v11249_v35 }
 0x3d3   : > { %v5288_v6 = vadd.f32 %v5256_v60, %v4975_v2  ;;  %8273 = vmatmul.msk.bf16.gmra.mxu2 %vm898_vm1, %v5729_v7  ;;  %v8685_v7 = vld [vmem:[%s8930_s30 + $0xc4] sm:$0xff] }
 0x3d4   : > { %8494 = vmatmul.msk.bf16.gmra.mxu0 %vm898_vm1, %v6425_v27 }
 0x3d5   : > { %v10629_v36 = vadd.f32 %v5658_v32, %v5288_v6  ;;  %v6426_v32 = vshrl.u32 %v10608_v63, 16  ;;  %v6430_v6 = vshll.u32 %v10632_v13, 16 }
 0x3d6   : > { %v4695_v43 = vpop.f32.mrf.mxu2 }
 0x3d7   : > { %11248 = vst [vmem:[#allocation39_spill] sm:$0xff] %v10629_v36  ;;  %v4739_v18 = vadd.f32 %v4695_v43, %v4290_v9  ;;  %v8825_v36 = vld [vmem:[%s8930_s30 + $0xcc] sm:$0xff]  ;;  %v6428_v11 = vor.u32 %v6426_v32, %v6424_v40  ;;  %v6432_v52 = vrot.slane %v6430_v6, 1  ;;  %v5258_v9 = vmul.f32 %v11250_v0, %v5214_v39  ;;  %v11255_v39 = vld [vmem:[#allocation17_spill] sm:$0xff] }
 0x3d8   : > { %v4898_v49 = vpop.f32.mrf.mxu3  ;;  %v5730_v20 = vrot.slane %v8825_v36, 1  ;;  %v6698_v36 = vrot.slane %v10632_v13, 1 }
 0x3d9   : > { %v4944_v60 = vmul.f32 %v11252_v8, %v4898_v49  ;;  %v5663_v2 = vpop.f32.mrf.mxu1 }
 0x3da   : > { %v5216_v27 = vpop.f32.mrf.mxu0  ;;  %v6699_v32 = vsel %vm1533_vm3, %v6696_v14, %v6698_v36 }
 0x3db   : > { %v4976_v34 = vadd.f32 %v4944_v60, %v4738_v56  ;;  %v5731_v56 = vsel %vm1533_vm3, %v5728_v19, %v5730_v20 }
 0x3dc   : > { %8511 = vmatmul.msk.bf16.gmra.mxu1 %vm898_vm1, %v6697_v45  ;;  %v11256_v45 = vld [vmem:[#allocation16_spill] sm:$0xff] }
 0x3dd   : > { %v5289_v35 = vadd.f32 %v5211_v30, %v4976_v34  ;;  %8385 = vmatmul.msk.bf16.gmra.mxu3 %vm898_vm1, %v8685_v7  ;;  %v6433_v34 = vsel %vm1222_vm2, %v6428_v11, %v6432_v52  ;;  %v11257_v11 = vld [vmem:[#allocation15_spill] sm:$0xff] }
 0x3de   : > { %v4697_v38 = vpop.f32.mrf.mxu2 }
 0x3df   : > { %v10646_v49 = vadd.f32 %v5660_v23, %v5289_v35  ;;  %v10656_v23 = vld [vmem:[%s8930_s30 + $0xdc] sm:$0xff]  ;;  %v4740_v6 = vadd.f32 %v4697_v38, %v11257_v11  ;;  %v11258_v35 = vld [vmem:[#allocation36_spill] sm:$0xff] }
 0x3e0   : > { %v4901_v43 = vpop.f32.mrf.mxu3 }
 0x3e1   : > { %11253 = vst [vmem:[#allocation32_spill] sm:$0xff] %v10646_v49  ;;  %v4977_v63 = vadd.f32 %v4901_v43, %v4739_v18  ;;  %v5665_v8 = vpop.f32.mrf.mxu1  ;;  %v4292_v18 = vmul.f32 %v11256_v45, %v11255_v39 }
 0x3e2   : > { %v5219_v60 = vpop.f32.mrf.mxu0 }
 0x3e3   : > { %v5290_v30 = vadd.f32 %v5258_v9, %v4977_v63  ;;  %8274 = vmatmul.msk.bf16.gmra.mxu2 %vm898_vm1, %v5731_v56  ;;  %v8686_v56 = vld [vmem:[%s8930_s30 + $0xcc] sm:$0xff] }
 0x3e4   : > { %8495 = vmatmul.msk.bf16.gmra.mxu0 %vm898_vm1, %v6433_v34 }
 0x3e5   : > { %v10653_v40 = vadd.f32 %v5663_v2, %v5290_v30  ;;  %v6434_v2 = vshrl.u32 %v10632_v13, 16  ;;  %v6438_v30 = vshll.u32 %v10656_v23, 16 }
 0x3e6   : > { %v4700_v7 = vpop.f32.mrf.mxu2 }
 0x3e7   : > { %11254 = vst [vmem:[#allocation40_spill] sm:$0xff] %v10653_v40  ;;  %v4741_v43 = vadd.f32 %v4700_v7, %v4292_v18  ;;  %v8826_v40 = vld [vmem:[%s8930_s30 + $0xd4] sm:$0xff]  ;;  %v6436_v49 = vor.u32 %v6434_v2, %v6432_v52  ;;  %v6440_v38 = vrot.slane %v6438_v30, 1  ;;  %v5260_v18 = vmul.f32 %v11256_v45, %v5219_v60  ;;  %v8827_v45 = vld [vmem:[%s8930_s30 + $0xdc] sm:$0xff] }
 0x3e8   : > { %v4903_v19 = vpop.f32.mrf.mxu3  ;;  %v5732_v14 = vrot.slane %v8826_v40, 1  ;;  %v6700_v40 = vrot.slane %v10656_v23, 1  ;;  %v11260_v60 = vld [vmem:[#allocation20_spill] sm:$0xff]  ;;  %v11262_v30 = vld [vmem:[#allocation37_spill] sm:$0xff] }
 0x3e9   : > { %v4946_v9 = vmul.f32 %v11258_v35, %v4903_v19  ;;  %v5668_v63 = vpop.f32.mrf.mxu1 }
 0x3ea   : > { %v5221_v34 = vpop.f32.mrf.mxu0 }
 0x3eb   : > { %v4978_v0 = vadd.f32 %v4946_v9, %v4740_v6  ;;  %v5733_v6 = vsel %vm1533_vm3, %v5730_v20, %v5732_v14 }
 0x3ec   : > { %8512 = vmatmul.msk.bf16.gmra.mxu1 %vm898_vm1, %v6699_v32  ;;  %v4294_v32 = vmul.f32 %v11260_v60, %v10206_v21 }
 0x3ed   : > { %v5291_v39 = vadd.f32 %v5216_v27, %v4978_v0  ;;  %8386 = vmatmul.msk.bf16.gmra.mxu3 %vm898_vm1, %v8686_v56  ;;  %v6441_v0 = vsel %vm1222_vm2, %v6436_v49, %v6440_v38  ;;  %v6701_v56 = vsel %vm1533_vm3, %v6698_v36, %v6700_v40  ;;  %v11261_v49 = vld [vmem:[#allocation19_spill] sm:$0xff]  ;;  %v5734_v36 = vrot.slane %v8827_v45, 1 }
 0x3ee   : > { %v4702_v11 = vpop.f32.mrf.mxu2 }
 0x3ef   : > { %v10670_v19 = vadd.f32 %v5665_v8, %v5291_v39  ;;  %v10680_v8 = vld [vmem:[%s8930_s30 + $0xe4] sm:$0xff]  ;;  %v4742_v2 = vadd.f32 %v4702_v11, %v11261_v49 }
 0x3f0   : > { %v4906_v7 = vpop.f32.mrf.mxu3  ;;  %v6702_v45 = vrot.slane %v10680_v8, 1 }
 0x3f1   : > { %v4979_v13 = vadd.f32 %v4906_v7, %v4741_v43  ;;  %v5670_v35 = vpop.f32.mrf.mxu1 }
 0x3f2   : > { %v5224_v9 = vpop.f32.mrf.mxu0 }
 0x3f3   : > { %v5292_v27 = vadd.f32 %v5260_v18, %v4979_v13  ;;  %8275 = vmatmul.msk.bf16.gmra.mxu2 %vm898_vm1, %v5733_v6  ;;  %v8687_v13 = vld [vmem:[%s8930_s30 + $0xd4] sm:$0xff] }
 0x3f4   : > { %8496 = vmatmul.msk.bf16.gmra.mxu0 %vm898_vm1, %v6441_v0  ;;  %v6446_v0 = vshll.u32 %v10680_v8, 16 }
 0x3f5   : > { %v10677_v52 = vadd.f32 %v5668_v63, %v5292_v27  ;;  %v6442_v63 = vshrl.u32 %v10656_v23, 16 }
 0x3f6   : > { %v4705_v43 = vpop.f32.mrf.mxu2  ;;  %v6448_v11 = vrot.slane %v6446_v0, 1 }
 0x3f7   : > { %11259 = vst [vmem:[#allocation41_spill] sm:$0xff] %v10677_v52  ;;  %v4743_v18 = vadd.f32 %v4705_v43, %v4294_v32  ;;  %v6444_v52 = vor.u32 %v6442_v63, %v6440_v38  ;;  %v5262_v32 = vmul.f32 %v11260_v60, %v5224_v9  ;;  %v11264_v9 = vld [vmem:[#allocation23_spill] sm:$0xff]  ;;  %v6703_v63 = vsel %vm1533_vm3, %v6700_v40, %v6702_v45 }
 0x3f8   : > { %v4908_v20 = vpop.f32.mrf.mxu3  ;;  %v8828_v60 = vld [vmem:[%s8930_s30 + $0xe4] sm:$0xff] }
 0x3f9   : > { %v4948_v39 = vmul.f32 %v11262_v30, %v4908_v20  ;;  %v5673_v7 = vpop.f32.mrf.mxu1  ;;  %v5736_v40 = vrot.slane %v8828_v60, 1 }
 0x3fa   : > { %v5226_v6 = vpop.f32.mrf.mxu0 }
 0x3fb   : > { %v4980_v27 = vadd.f32 %v4948_v39, %v4742_v2  ;;  %v5735_v2 = vsel %vm1533_vm3, %v5732_v14, %v5734_v36 }
 0x3fc   : > { %8513 = vmatmul.msk.bf16.gmra.mxu1 %vm898_vm1, %v6701_v56 }
 0x3fd   : > { %v5293_v21 = vadd.f32 %v5221_v34, %v4980_v27  ;;  %8387 = vmatmul.msk.bf16.gmra.mxu3 %vm898_vm1, %v8687_v13  ;;  %v6449_v34 = vsel %vm1222_vm2, %v6444_v52, %v6448_v11  ;;  %v11265_v52 = vld [vmem:[#allocation21_spill] sm:$0xff]  ;;  %v11266_v27 = vld [vmem:[#allocation38_spill] sm:$0xff] }
 0x3fe   : > { %v4707_v49 = vpop.f32.mrf.mxu2 }
 0x3ff   : > { %v10694_v20 = vadd.f32 %v5670_v35, %v5293_v21  ;;  %v10704_v35 = vld [vmem:[%s8930_s30 + $0xec] sm:$0xff]  ;;  %v4744_v0 = vadd.f32 %v4707_v49, %v11265_v52 }
 0x400   : > { %v4911_v43 = vpop.f32.mrf.mxu3  ;;  %v6704_v60 = vrot.slane %v10704_v35, 1 }
 0x401   : > { %v4981_v23 = vadd.f32 %v4911_v43, %v4743_v18  ;;  %v5675_v30 = vpop.f32.mrf.mxu1  ;;  %v4296_v18 = vmul.f32 %v11264_v9, %v10241_v50 }
 0x402   : > { %v5229_v39 = vpop.f32.mrf.mxu0 }
 0x403   : > { %v5294_v56 = vadd.f32 %v5262_v32, %v4981_v23  ;;  %8276 = vmatmul.msk.bf16.gmra.mxu2 %vm898_vm1, %v5735_v2  ;;  %v8688_v23 = vld [vmem:[%s8930_s30 + $0xdc] sm:$0xff] }
 0x404   : > { %8497 = vmatmul.msk.bf16.gmra.mxu0 %vm898_vm1, %v6449_v34  ;;  %v6454_v34 = vshll.u32 %v10704_v35, 16 }
 0x405   : > { %v10701_v38 = vadd.f32 %v5673_v7, %v5294_v56  ;;  %v6450_v7 = vshrl.u32 %v10680_v8, 16 }
 0x406   : > { %v4710_v13 = vpop.f32.mrf.mxu2  ;;  %v6456_v49 = vrot.slane %v6454_v34, 1 }
 0x407   : > { %11263 = vst [vmem:[#allocation33_spill] sm:$0xff] %v10701_v38  ;;  %v4745_v32 = vadd.f32 %v4710_v13, %v4296_v18  ;;  %v6452_v38 = vor.u32 %v6450_v7, %v6448_v11  ;;  %v5264_v18 = vmul.f32 %v11264_v9, %v5229_v39 }
 0x408   : > { %v4913_v14 = vpop.f32.mrf.mxu3 }
 0x409   : > { %v4950_v21 = vmul.f32 %v11266_v27, %v4913_v14  ;;  %v5678_v43 = vpop.f32.mrf.mxu1 }
 0x40a   : > { %v5231_v2 = vpop.f32.mrf.mxu0 }
 0x40b   : > { %v4982_v56 = vadd.f32 %v4950_v21, %v4744_v0  ;;  %v5737_v0 = vsel %vm1533_vm3, %v5734_v36, %v5736_v40  ;;  %v6705_v36 = vsel %vm1533_vm3, %v6702_v45, %v6704_v60  ;;  %v8829_v45 = vld [vmem:[%s8930_s30 + $0xec] sm:$0xff] }
 0x40c   : > { %8514 = vmatmul.msk.bf16.gmra.mxu1 %vm898_vm1, %v6703_v63 }
 0x40d   : > { %v5295_v50 = vadd.f32 %v5226_v6, %v4982_v56  ;;  %8388 = vmatmul.msk.bf16.gmra.mxu3 %vm898_vm1, %v8688_v23  ;;  %v6457_v6 = vsel %vm1222_vm2, %v6452_v38, %v6456_v49  ;;  %v8689_v56 = vld [vmem:[%s8930_s30 + $0xe4] sm:$0xff] }
 0x40e   : > { %v4712_v52 = vpop.f32.mrf.mxu2 }
 0x40f   : > { %v10718_v14 = vadd.f32 %v5675_v30, %v5295_v50  ;;  %v10728_v30 = vld [vmem:[%s8930_s30 + $0xf4] sm:$0xff]  ;;  %v4746_v23 = vadd.f32 %v4712_v52, %v10261_v58 }
 0x410   : > { %v4916_v13 = vpop.f32.mrf.mxu3 }
 0x411   : > { %v4983_v8 = vadd.f32 %v4916_v13, %v4745_v32  ;;  %v5680_v27 = vpop.f32.mrf.mxu1 }
 0x412   : > { %v6571_v63 = vpop.f32.mrf.mxu0 }
 0x413   : > { %v5296_v21 = vadd.f32 %v5264_v18, %v4983_v8  ;;  %8277 = vmatmul.msk.bf16.gmra.mxu2 %vm898_vm1, %v5737_v0  ;;  %v6458_v18 = vshrl.u32 %v10704_v35, 16  ;;  %v5738_v0 = vrot.slane %v8829_v45, 1  ;;  %v11267_v35 = vld [vmem:[#allocation26_spill] sm:$0xff] }
 0x414   : > { %8498 = vmatmul.msk.bf16.gmra.mxu0 %vm898_vm1, %v6457_v6 }
 0x415   : > { %v10725_v11 = vadd.f32 %v5678_v43, %v5296_v21  ;;  %v6462_v43 = vshll.u32 %v10728_v30, 16  ;;  %v6460_v58 = vor.u32 %v6458_v18, %v6456_v49 }
 0x416   : > { %v5809_v32 = vpop.f32.mrf.mxu2 }
 0x417   : > { %v5921_v7 = vadd.f32 %v5809_v32, %v10302_v46  ;;  %v6464_v52 = vrot.slane %v6462_v43, 1 }
 0x418   : > { %v4918_v39 = vpop.f32.mrf.mxu3 }
 0x419   : > { %v4952_v38 = vmul.f32 %v9758_v3, %v4918_v39  ;;  %v6777_v34 = vpop.f32.mrf.mxu1 }
 0x41a   : > { %v6573_v50 = vpop.f32.mrf.mxu0 }
 0x41b   : > { %v4984_v13 = vadd.f32 %v4952_v38, %v4746_v23  ;;  %v5739_v23 = vsel %vm1533_vm3, %v5736_v40, %v5738_v0 }
 0x41c   : > { %8515 = vmatmul.msk.bf16.gmra.mxu1 %vm898_vm1, %v6705_v36 }
 0x41d   : > { %v5297_v8 = vadd.f32 %v5231_v2, %v4984_v13  ;;  %8389 = vmatmul.msk.bf16.gmra.mxu3 %vm898_vm1, %v8689_v56  ;;  %v6465_v2 = vsel %vm1222_vm2, %v6460_v58, %v6464_v52  ;;  %v6706_v56 = vrot.slane %v10728_v30, 1  ;;  %v8690_v58 = vld [vmem:[%s8930_s30 + $0xec] sm:$0xff] }
 0x41e   : > { %v5811_v21 = vpop.f32.mrf.mxu2 }
 0x41f   : > { %v10740_v6 = vadd.f32 %v5680_v27, %v5297_v8  ;;  %v5890_v32 = vmul.f32 %v11267_v35, %v5811_v21  ;;  %v6707_v40 = vsel %vm1533_vm3, %v6704_v60, %v6706_v56 }
 0x420   : > { %v6122_v46 = vpop.f32.mrf.mxu3 }
 0x421   : > { %v6202_v39 = vmul.f32 %v11173_v16, %v6122_v46  ;;  %v6779_v3 = vpop.f32.mrf.mxu1  ;;  %v5922_v49 = vadd.f32 %v5890_v32, %v10329_v44  ;;  %v10751_v16 = vld [vmem:[%s8930_s30 + $0xfc] sm:$0xff] }
 0x422   : > { %v6576_v36 = vpop.f32.mrf.mxu0  ;;  %v6470_v21 = vshll.u32 %v10751_v16, 16  ;;  %v6858_v60 = vmul.f32 %v11267_v35, %v6779_v3 }
 0x423   : > { %v6234_v38 = vadd.f32 %v6202_v39, %v5921_v7  ;;  %8278 = vmatmul.msk.bf16.gmra.mxu2 %vm898_vm1, %v5739_v23  ;;  %v10757_v7 = vld [vmem:[%s11035_s2] ss:$0 sm:$0xff] }
 0x424   : > { %8499 = vmatmul.msk.bf16.gmra.mxu0 %vm898_vm1, %v6465_v2 }
 0x425   : > { %v6651_v27 = vadd.f32 %v6571_v63, %v6234_v38  ;;  %v10768_v38 = vld [vmem:[%s8930_s30 + $0xf4] sm:$0xff] }
 0x426   : > { %v5814_v13 = vpop.f32.mrf.mxu2 }
 0x427   : > { %v6889_v18 = vadd.f32 %v6777_v34, %v6651_v27  ;;  %v5923_v8 = vadd.f32 %v5814_v13, %v10341_v62  ;;  %v6466_v34 = vshrl.u32 %v10728_v30, 16  ;;  %v5740_v62 = vrot.slane %v10768_v38, 1 }
 0x428   : > { %v6124_v43 = vpop.f32.mrf.mxu3  ;;  %v6472_v27 = vrot.slane %v6470_v21, 1 }
 0x429   : > { %v6921_v44 = vadd.f32 %v10757_v7, %v6889_v18  ;;  %v6235_v63 = vadd.f32 %v6124_v43, %v5922_v49  ;;  %v6782_v45 = vpop.f32.mrf.mxu1  ;;  %v6468_v49 = vor.u32 %v6466_v34, %v6464_v52 }
 0x42a   : > { %v6578_v46 = vpop.f32.mrf.mxu0 }
 0x42b   : > { %v6953_v39 = vmax.f32 %v6921_v44, 0.0  ;;  %v6652_v32 = vadd.f32 %v6573_v50, %v6235_v63 }
 0x42c   : > { %8516 = vmatmul.msk.bf16.gmra.mxu1 %vm898_vm1, %v6707_v40  ;;  %v5741_v40 = vsel %vm1533_vm3, %v5738_v0, %v5740_v62 }
 0x42d   : > { %v6985_v23 = vmax.f32 %v6953_v39, 1e-06  ;;  %v6890_v2 = vadd.f32 %v6858_v60, %v6652_v32  ;;  %8390 = vmatmul.msk.bf16.gmra.mxu3 %vm898_vm1, %v8690_v58  ;;  %v6473_v58 = vsel %vm1222_vm2, %v6468_v49, %v6472_v27  ;;  %v6708_v60 = vrot.slane %v10751_v16, 1 }
 0x42e   : > { %v5816_v13 = vpop.f32.mrf.mxu2 }
 0x42f   : > { %v6922_v30 = vadd.f32 %v10757_v7, %v6890_v2  ;;  %v7017_v18 = vmul.f32 %v6985_v23, %v6985_v23  ;;  %v5892_v50 = vmul.f32 %v9410_v26, %v5816_v13 }
 0x430   : > { %v6127_v43 = vpop.f32.mrf.mxu3 }
 0x431   : > { %v6954_v44 = vmax.f32 %v6922_v30, 0.0  ;;  %v6204_v3 = vmul.f32 %v9137_v4, %v6127_v43  ;;  %v6784_v35 = vpop.f32.mrf.mxu1  ;;  %v5924_v34 = vadd.f32 %v5892_v50, %v10370_v47  ;;  %v7049_v21 = vmul.f32 %v7017_v18, %v6985_v23  ;;  %v10781_v4 = vld [vmem:[%s8930_s30 + $0x104] sm:$0xff] }
 0x432   : > { %v6581_v63 = vpop.f32.mrf.mxu0  ;;  %v6709_v47 = vsel %vm1533_vm3, %v6706_v56, %v6708_v60 }
 0x433   : > { %v6986_v39 = vmax.f32 %v6954_v44, 1e-06  ;;  %v6236_v52 = vadd.f32 %v6204_v3, %v5923_v8  ;;  %8279 = vmatmul.msk.bf16.gmra.mxu2 %vm898_vm1, %v5741_v40  ;;  %v7081_v49 = vsel %vm3900_vm10, %v7049_v21, 0.0  ;;  %v8691_v44 = vld [vmem:[%s8930_s30 + $0xf4] sm:$0xff]  ;;  %v6478_v40 = vshll.u32 %v10781_v4, 16 }
 0x434   : > { %8500 = vmatmul.msk.bf16.gmra.mxu0 %vm898_vm1, %v6473_v58 }
 0x435   : > { %v7018_v32 = vmul.f32 %v6986_v39, %v6986_v39  ;;  %v6653_v2 = vadd.f32 %v6576_v36, %v6236_v52 }
 0x436   : > { %v5819_v8 = vpop.f32.mrf.mxu2 }
 0x437   : > { %v7050_v0 = vmul.f32 %v7018_v32, %v6986_v39  ;;  %v6891_v38 = vadd.f32 %v6782_v45, %v6653_v2  ;;  %v5925_v43 = vadd.f32 %v5819_v8, %v10378_v41  ;;  %v6474_v45 = vshrl.u32 %v10751_v16, 16  ;;  %v11269_v8 = vld [vmem:[#allocation27_spill] sm:$0xff] }
 0x438   : > { %v6129_v30 = vpop.f32.mrf.mxu3  ;;  %v6860_v39 = vmul.f32 %v9410_v26, %v6784_v35  ;;  %v6480_v2 = vrot.slane %v6478_v40, 1 }
 0x439   : > { %v7082_v23 = vsel %vm3900_vm10, %v7050_v0, 0.0  ;;  %v6923_v18 = vadd.f32 %v10757_v7, %v6891_v38  ;;  %v6237_v36 = vadd.f32 %v6129_v30, %v5924_v34  ;;  %v6787_v13 = vpop.f32.mrf.mxu1  ;;  %v10795_v34 = vld [vmem:[%s8930_s30 + $0xfc] sm:$0xff]  ;;  %v6476_v32 = vor.u32 %v6474_v45, %v6472_v27 }
 0x43a   : > { %v7083_v3 = vadd.f32 %v7082_v23, %v7081_v49  ;;  %v6583_v50 = vpop.f32.mrf.mxu0  ;;  %v5742_v41 = vrot.slane %v10795_v34, 1 }
 0x43b   : > { %v6955_v58 = vmax.f32 %v6923_v18, 0.0  ;;  %v6654_v56 = vadd.f32 %v6578_v46, %v6237_v36  ;;  %v11268_v46 = vld [vmem:[#allocation4_spill] sm:$0xff] }
 0x43c   : > { %8517 = vmatmul.msk.bf16.gmra.mxu1 %vm898_vm1, %v6709_v47  ;;  %v5743_v18 = vsel %vm1533_vm3, %v5740_v62, %v5742_v41  ;;  %v10809_v62 = vld [vmem:[%s8930_s30 + $0x10c] sm:$0xff] }
 0x43d   : > { %v6987_v52 = vmax.f32 %v6955_v58, 1e-06  ;;  %v6892_v21 = vadd.f32 %v6860_v39, %v6654_v56  ;;  %8391 = vmatmul.msk.bf16.gmra.mxu3 %vm898_vm1, %v8691_v44  ;;  %v6481_v44 = vsel %vm1222_vm2, %v6476_v32, %v6480_v2  ;;  %v6710_v56 = vrot.slane %v10781_v4, 1 }
 0x43e   : > { %v5821_v49 = vpop.f32.mrf.mxu2 }
 0x43f   : > { %v7019_v0 = vmul.f32 %v6987_v52, %v6987_v52  ;;  %v6924_v16 = vadd.f32 %v10757_v7, %v6892_v21  ;;  %v5894_v47 = vmul.f32 %v11269_v8, %v5821_v49 }
 0x440   : > { %v6132_v38 = vpop.f32.mrf.mxu3 }
 0x441   : > { %v7051_v30 = vmul.f32 %v7019_v0, %v6987_v52  ;;  %v6956_v26 = vmax.f32 %v6924_v16, 0.0  ;;  %v6206_v35 = vmul.f32 %v11268_v46, %v6132_v38  ;;  %v6789_v23 = vpop.f32.mrf.mxu1  ;;  %v5926_v58 = vadd.f32 %v5894_v47, %v10399_v15 }
 0x442   : > { %v6586_v36 = vpop.f32.mrf.mxu0 }
 0x443   : > { %v7084_v27 = vsel %vm3900_vm10, %v7051_v30, 0.0  ;;  %v6988_v45 = vmax.f32 %v6956_v26, 1e-06  ;;  %v6238_v40 = vadd.f32 %v6206_v35, %v5925_v43  ;;  %8280 = vmatmul.msk.bf16.gmra.mxu2 %vm898_vm1, %v5743_v18  ;;  %v6711_v43 = vsel %vm1533_vm3, %v6708_v60, %v6710_v56  ;;  %v8692_v30 = vld [vmem:[%s8930_s30 + $0xfc] sm:$0xff] }
 0x444   : > { %v7085_v39 = vadd.f32 %v7084_v27, %v7083_v3  ;;  %8501 = vmatmul.msk.bf16.gmra.mxu0 %vm898_vm1, %v6481_v44  ;;  %v6482_v35 = vshrl.u32 %v10781_v4, 16  ;;  %v6862_v18 = vmul.f32 %v11269_v8, %v6789_v23 }
 0x445   : > { %v7020_v52 = vmul.f32 %v6988_v45, %v6988_v45  ;;  %v6655_v21 = vadd.f32 %v6581_v63, %v6238_v40 }
 0x446   : > { %v5824_v16 = vpop.f32.mrf.mxu2  ;;  %v6484_v40 = vor.u32 %v6482_v35, %v6480_v2 }
 0x447   : > { %v7052_v34 = vmul.f32 %v7020_v52, %v6988_v45  ;;  %v6893_v32 = vadd.f32 %v6787_v13, %v6655_v21  ;;  %v5927_v63 = vadd.f32 %v5824_v16, %v10407_v12  ;;  %v6486_v13 = vshll.u32 %v10809_v62, 16  ;;  %v10822_v45 = vld [vmem:[%s8930_s30 + $0x104] sm:$0xff] }
 0x448   : > { %v6134_v0 = vpop.f32.mrf.mxu3  ;;  %v5744_v12 = vrot.slane %v10822_v45, 1 }
 0x449   : > { %v7086_v15 = vsel %vm3900_vm10, %v7052_v34, 0.0  ;;  %v6925_v3 = vadd.f32 %v10757_v7, %v6893_v32  ;;  %v6239_v38 = vadd.f32 %v6134_v0, %v5926_v58  ;;  %v6792_v49 = vpop.f32.mrf.mxu1  ;;  %v6488_v58 = vrot.slane %v6486_v13, 1 }
 0x44a   : > { %v7087_v26 = vadd.f32 %v7086_v15, %v7085_v39  ;;  %v6588_v46 = vpop.f32.mrf.mxu0  ;;  %v5745_v16 = vsel %vm1533_vm3, %v5742_v41, %v5744_v12  ;;  %v6712_v13 = vrot.slane %v10809_v62, 1  ;;  %v10836_v41 = vld [vmem:[%s8930_s30 + $0x114] sm:$0xff] }
 0x44b   : > { %v6957_v47 = vmax.f32 %v6925_v3, 0.0  ;;  %v6656_v60 = vadd.f32 %v6583_v50, %v6239_v38  ;;  %v11270_v50 = vld [vmem:[#allocation6_spill] sm:$0xff]  ;;  %v6489_v15 = vsel %vm1222_vm2, %v6484_v40, %v6488_v58 }
 0x44c   : > { %8518 = vmatmul.msk.bf16.gmra.mxu1 %vm898_vm1, %v6711_v43 }
 0x44d   : > { %v6989_v44 = vmax.f32 %v6957_v47, 1e-06  ;;  %v6894_v27 = vadd.f32 %v6862_v18, %v6656_v60  ;;  %8392 = vmatmul.msk.bf16.gmra.mxu3 %vm898_vm1, %v8692_v30 }
 0x44e   : > { %v5826_v21 = vpop.f32.mrf.mxu2 }
 0x44f   : > { %v7021_v39 = vmul.f32 %v6989_v44, %v6989_v44  ;;  %v6926_v4 = vadd.f32 %v10757_v7, %v6894_v27  ;;  %v5896_v32 = vmul.f32 %v11228_v57, %v5826_v21 }
 0x450   : > { %v6137_v52 = vpop.f32.mrf.mxu3 }
 0x451   : > { %v7053_v34 = vmul.f32 %v7021_v39, %v6989_v44  ;;  %v6958_v8 = vmax.f32 %v6926_v4, 0.0  ;;  %v6208_v23 = vmul.f32 %v11270_v50, %v6137_v52  ;;  %v6794_v0 = vpop.f32.mrf.mxu1  ;;  %v5928_v30 = vadd.f32 %v5896_v32, %v10439_v61  ;;  %v8693_v4 = vld [vmem:[%s8930_s30 + $0x104] sm:$0xff] }
 0x452   : > { %v6591_v43 = vpop.f32.mrf.mxu0  ;;  %v6864_v50 = vmul.f32 %v11228_v57, %v6794_v0 }
 0x453   : > { %v7088_v2 = vsel %vm3900_vm10, %v7053_v34, 0.0  ;;  %v6990_v3 = vmax.f32 %v6958_v8, 1e-06  ;;  %v6240_v38 = vadd.f32 %v6208_v23, %v5927_v63  ;;  %8281 = vmatmul.msk.bf16.gmra.mxu2 %vm898_vm1, %v5745_v16  ;;  %v6713_v63 = vsel %vm1533_vm3, %v6710_v56, %v6712_v13  ;;  %v10849_v16 = vld [vmem:[%s8930_s30 + $0x10c] sm:$0xff] }
 0x454   : > { %v7089_v35 = vadd.f32 %v7088_v2, %v7087_v26  ;;  %8502 = vmatmul.msk.bf16.gmra.mxu0 %vm898_vm1, %v6489_v15  ;;  %v6490_v34 = vshrl.u32 %v10809_v62, 16 }
 0x455   : > { %v7022_v47 = vmul.f32 %v6990_v3, %v6990_v3  ;;  %v6657_v18 = vadd.f32 %v6586_v36, %v6240_v38 }
 0x456   : > { %v5829_v45 = vpop.f32.mrf.mxu2  ;;  %v6492_v15 = vor.u32 %v6490_v34, %v6488_v58 }
 0x457   : > { %v7054_v60 = vmul.f32 %v7022_v47, %v6990_v3  ;;  %v6895_v44 = vadd.f32 %v6792_v49, %v6657_v18  ;;  %v5929_v36 = vadd.f32 %v5829_v45, %v10450_v1  ;;  %v6494_v49 = vshll.u32 %v10836_v41, 16 }
 0x458   : > { %v6139_v27 = vpop.f32.mrf.mxu3  ;;  %v5746_v1 = vrot.slane %v10849_v16, 1 }
 0x459   : > { %v7090_v61 = vsel %vm3900_vm10, %v7054_v60, 0.0  ;;  %v6927_v26 = vadd.f32 %v10757_v7, %v6895_v44  ;;  %v6241_v40 = vadd.f32 %v6139_v27, %v5928_v30  ;;  %v6797_v39 = vpop.f32.mrf.mxu1  ;;  %v6496_v2 = vrot.slane %v6494_v49, 1 }
 0x45a   : > { %v7091_v52 = vadd.f32 %v7090_v61, %v7089_v35  ;;  %v6593_v21 = vpop.f32.mrf.mxu0  ;;  %v5747_v18 = vsel %vm1533_vm3, %v5744_v12, %v5746_v1  ;;  %v10865_v12 = vld [vmem:[%s8930_s30 + $0x11c] sm:$0xff] }
 0x45b   : > { %v6959_v8 = vmax.f32 %v6927_v26, 0.0  ;;  %v6658_v56 = vadd.f32 %v6588_v46, %v6241_v40  ;;  %v6497_v58 = vsel %vm1222_vm2, %v6492_v15, %v6496_v2 }
 0x45c   : > { %8519 = vmatmul.msk.bf16.gmra.mxu1 %vm898_vm1, %v6713_v63 }
 0x45d   : > { %v6991_v23 = vmax.f32 %v6959_v8, 1e-06  ;;  %v6896_v32 = vadd.f32 %v6864_v50, %v6658_v56  ;;  %8393 = vmatmul.msk.bf16.gmra.mxu3 %vm898_vm1, %v8693_v4  ;;  %v11271_v56 = vld [vmem:[#allocation10_spill] sm:$0xff] }
 0x45e   : > { %v5831_v30 = vpop.f32.mrf.mxu2 }
 0x45f   : > { %v7023_v3 = vmul.f32 %v6991_v23, %v6991_v23  ;;  %v6928_v62 = vadd.f32 %v10757_v7, %v6896_v32  ;;  %v5898_v0 = vmul.f32 %v11180_v29, %v5831_v30  ;;  %v8694_v32 = vld [vmem:[%s8930_s30 + $0x10c] sm:$0xff] }
 0x460   : > { %v6142_v38 = vpop.f32.mrf.mxu3 }
 0x461   : > { %v7055_v35 = vmul.f32 %v7023_v3, %v6991_v23  ;;  %v6960_v57 = vmax.f32 %v6928_v62, 0.0  ;;  %v6210_v46 = vmul.f32 %v11226_v25, %v6142_v38  ;;  %v6799_v47 = vpop.f32.mrf.mxu1  ;;  %v5930_v63 = vadd.f32 %v5898_v0, %v10473_v17 }
 0x462   : > { %v6596_v60 = vpop.f32.mrf.mxu0  ;;  %v6714_v25 = vrot.slane %v10836_v41, 1  ;;  %v6498_v62 = vshrl.u32 %v10836_v41, 16 }
 0x463   : > { %v7092_v44 = vsel %vm3900_vm10, %v7055_v35, 0.0  ;;  %v6992_v27 = vmax.f32 %v6960_v57, 1e-06  ;;  %v6242_v45 = vadd.f32 %v6210_v46, %v5929_v36  ;;  %8282 = vmatmul.msk.bf16.gmra.mxu2 %vm898_vm1, %v5747_v18  ;;  %v10878_v46 = vld [vmem:[%s8930_s30 + $0x114] sm:$0xff] }
 0x464   : > { %v7093_v61 = vadd.f32 %v7092_v44, %v7091_v52  ;;  %8503 = vmatmul.msk.bf16.gmra.mxu0 %vm898_vm1, %v6497_v58  ;;  %v6715_v36 = vsel %vm1533_vm3, %v6712_v13, %v6714_v25  ;;  %v6866_v13 = vmul.f32 %v11180_v29, %v6799_v47  ;;  %v5748_v0 = vrot.slane %v10878_v46, 1  ;;  %v11272_v47 = vld [vmem:[#allocation14_spill] sm:$0xff] }
 0x465   : > { %v7024_v26 = vmul.f32 %v6992_v27, %v6992_v27  ;;  %v6659_v40 = vadd.f32 %v6591_v43, %v6242_v45  ;;  %v6500_v18 = vor.u32 %v6498_v62, %v6496_v2 }
 0x466   : > { %v5834_v8 = vpop.f32.mrf.mxu2  ;;  %v5749_v2 = vsel %vm1533_vm3, %v5746_v1, %v5748_v0 }
 0x467   : > { %v7056_v4 = vmul.f32 %v7024_v26, %v6992_v27  ;;  %v6897_v34 = vadd.f32 %v6797_v39, %v6659_v40  ;;  %v5931_v43 = vadd.f32 %v5834_v8, %v11271_v56  ;;  %v6502_v39 = vshll.u32 %v10865_v12, 16  ;;  %v8429_v27 = vld [vmem:[%s8930_s30 + $0x124] sm:$0x1] }
 0x468   : > { %v6144_v49 = vpop.f32.mrf.mxu3 }
 0x469   : > { %v7094_v17 = vsel %vm3900_vm10, %v7056_v4, 0.0  ;;  %v6929_v52 = vadd.f32 %v10757_v7, %v6897_v34  ;;  %v6243_v50 = vadd.f32 %v6144_v49, %v5930_v63  ;;  %v6802_v23 = vpop.f32.mrf.mxu1  ;;  %v6504_v58 = vrot.slane %v6502_v39, 1 }
 0x46a   : > { %v7095_v15 = vadd.f32 %v7094_v17, %v7093_v61  ;;  %v6598_v3 = vpop.f32.mrf.mxu0  ;;  %v6364_v49 = vunpack.c.l.b16 %v8429_v27 }
 0x46b   : > { %v6961_v38 = vmax.f32 %v6929_v52, 0.0  ;;  %v6660_v30 = vadd.f32 %v6593_v21, %v6243_v50  ;;  %v6505_v34 = vsel %vm1222_vm2, %v6500_v18, %v6504_v58  ;;  %v11273_v52 = vld [vmem:[#allocation28_spill] sm:$0xff]  ;;  %v11274_v18 = vld [vmem:[#allocation30_spill] sm:$0xff] }
 0x46c   : > { %8520 = vmatmul.msk.bf16.gmra.mxu1 %vm898_vm1, %v6715_v36  ;;  %v6381_v16 = vpack.c.b16 %v6364_v49, %v6364_v49 }
 0x46d   : > { %v6993_v35 = vmax.f32 %v6961_v38, 1e-06  ;;  %v6898_v57 = vadd.f32 %v6866_v13, %v6660_v30  ;;  %8394 = vmatmul.msk.bf16.gmra.mxu3 %vm898_vm1, %v8694_v32  ;;  %v6716_v32 = vrot.slane %v10865_v12, 1 }
 0x46e   : > { %v5836_v63 = vpop.f32.mrf.mxu2 }
 0x46f   : > { %v7025_v44 = vmul.f32 %v6993_v35, %v6993_v35  ;;  %v6930_v41 = vadd.f32 %v10757_v7, %v6898_v57  ;;  %v5900_v26 = vmul.f32 %v11233_v42, %v5836_v63  ;;  %v6506_v63 = vshrl.u32 %v10865_v12, 16 }
 0x470   : > { %v6147_v45 = vpop.f32.mrf.mxu3 }
 0x471   : > { %v7057_v29 = vmul.f32 %v7025_v44, %v6993_v35  ;;  %v6962_v21 = vmax.f32 %v6930_v41, 0.0  ;;  %v6212_v61 = vmul.f32 %v11272_v47, %v6147_v45  ;;  %v6804_v40 = vpop.f32.mrf.mxu1  ;;  %v5932_v50 = vadd.f32 %v5900_v26, %v11273_v52  ;;  %v11275_v26 = vld [vmem:[#allocation3_spill] sm:$0xff] }
 0x472   : > { %v6601_v4 = vpop.f32.mrf.mxu0  ;;  %v6717_v35 = vsel %vm1533_vm3, %v6714_v25, %v6716_v32 }
 0x473   : > { %v7096_v8 = vsel %vm3900_vm10, %v7057_v29, 0.0  ;;  %v6994_v36 = vmax.f32 %v6962_v21, 1e-06  ;;  %v6244_v17 = vadd.f32 %v6212_v61, %v5931_v43  ;;  %8283 = vmatmul.msk.bf16.gmra.mxu2 %vm898_vm1, %v5749_v2  ;;  %v6510_v29 = vshll.u32 %v6381_v16, 16 }
 0x474   : > { %v7097_v56 = vadd.f32 %v7096_v8, %v7095_v15  ;;  %8504 = vmatmul.msk.bf16.gmra.mxu0 %vm898_vm1, %v6505_v34  ;;  %v5750_v2 = vrot.slane %v11275_v26, 1  ;;  %v6508_v34 = vor.u32 %v6506_v63, %v6504_v58 }
 0x475   : > { %v7026_v62 = vmul.f32 %v6994_v36, %v6994_v36  ;;  %v6661_v39 = vadd.f32 %v6596_v60, %v6244_v17  ;;  %v8695_v60 = vld [vmem:[%s8930_s30 + $0x114] sm:$0xff]  ;;  %v6512_v49 = vrot.slane %v6510_v29, 1 }
 0x476   : > { %v5839_v30 = vpop.f32.mrf.mxu2 }
 0x477   : > { %v7058_v1 = vmul.f32 %v7026_v62, %v6994_v36  ;;  %v6899_v38 = vadd.f32 %v6802_v23, %v6661_v39  ;;  %v5933_v44 = vadd.f32 %v5839_v30, %v11274_v18  ;;  %v6868_v23 = vmul.f32 %v11233_v42, %v6804_v40 }
 0x478   : > { %v6149_v13 = vpop.f32.mrf.mxu3  ;;  %v5751_v62 = vsel %vm1533_vm3, %v5748_v0, %v5750_v2  ;;  %v6513_v58 = vsel %vm1222_vm2, %v6508_v34, %v6512_v49 }
 0x479   : > { %v7098_v43 = vsel %vm3900_vm10, %v7058_v1, 0.0  ;;  %v6931_v15 = vadd.f32 %v10757_v7, %v6899_v38  ;;  %v6245_v57 = vadd.f32 %v6149_v13, %v5932_v50  ;;  %v6807_v41 = vpop.f32.mrf.mxu1 }
 0x47a   : > { %v7099_v27 = vadd.f32 %v7098_v43, %v7097_v56  ;;  %v6603_v45 = vpop.f32.mrf.mxu0  ;;  %v11276_v56 = vld [vmem:[#allocation18_spill] sm:$0xff]  ;;  %v6718_v43 = vrot.slane %v6381_v16, 1 }
 0x47b   : > { %v6963_v21 = vmax.f32 %v6931_v15, 0.0  ;;  %v6662_v47 = vadd.f32 %v6598_v3, %v6245_v57 }
 0x47c   : > { %8521 = vmatmul.msk.bf16.gmra.mxu1 %vm898_vm1, %v6717_v35  ;;  %v6719_v63 = vsel %vm1533_vm3, %v6716_v32, %v6718_v43 }
 0x47d   : > { %v6995_v25 = vmax.f32 %v6963_v21, 1e-06  ;;  %v6900_v61 = vadd.f32 %v6868_v23, %v6662_v47  ;;  %8395 = vmatmul.msk.bf16.gmra.mxu3 %vm898_vm1, %v8695_v60  ;;  %v8696_v21 = vld [vmem:[%s8930_s30 + $0x11c] sm:$0xff] }
 0x47e   : > { %v5841_v12 = vpop.f32.mrf.mxu2 }
 0x47f   : > { %v7027_v8 = vmul.f32 %v6995_v25, %v6995_v25  ;;  %v6932_v36 = vadd.f32 %v10757_v7, %v6900_v61  ;;  %v5902_v3 = vmul.f32 %v11238_v10, %v5841_v12 }
 0x480   : > { %v6152_v17 = vpop.f32.mrf.mxu3 }
 0x481   : > { %v7059_v52 = vmul.f32 %v7027_v8, %v6995_v25  ;;  %v6964_v50 = vmax.f32 %v6932_v36, 0.0  ;;  %v6214_v42 = vmul.f32 %v11276_v56, %v6152_v17  ;;  %v6809_v40 = vpop.f32.mrf.mxu1  ;;  %v5934_v30 = vadd.f32 %v5902_v3, %v10526_v22 }
 0x482   : > { %v6606_v39 = vpop.f32.mrf.mxu0  ;;  %v6870_v25 = vmul.f32 %v11238_v10, %v6809_v40 }
 0x483   : > { %v7100_v1 = vsel %vm3900_vm10, %v7059_v52, 0.0  ;;  %v6996_v38 = vmax.f32 %v6964_v50, 1e-06  ;;  %v6246_v13 = vadd.f32 %v6214_v42, %v5933_v44  ;;  %8284 = vmatmul.msk.bf16.gmra.mxu2 %vm898_vm1, %v5751_v62 }
 0x484   : > { %v7101_v35 = vadd.f32 %v7100_v1, %v7099_v27  ;;  %8505 = vmatmul.msk.bf16.gmra.mxu0 %vm898_vm1, %v6513_v58 }
 0x485   : > { %v7028_v15 = vmul.f32 %v6996_v38, %v6996_v38  ;;  %v6663_v57 = vadd.f32 %v6601_v4, %v6246_v13 }
 0x486   : > { %v5844_v60 = vpop.f32.mrf.mxu2 }
 0x487   : > { %v7060_v46 = vmul.f32 %v7028_v15, %v6996_v38  ;;  %v6901_v0 = vadd.f32 %v6807_v41, %v6663_v57  ;;  %v5935_v27 = vadd.f32 %v5844_v60, %v10533_v54 }
 0x488   : > { %v6154_v18 = vpop.f32.mrf.mxu3 }
 0x489   : > { %v7102_v29 = vsel %vm3900_vm10, %v7060_v46, 0.0  ;;  %v6933_v44 = vadd.f32 %v10757_v7, %v6901_v0  ;;  %v6247_v22 = vadd.f32 %v6154_v18, %v5934_v30  ;;  %v6812_v16 = vpop.f32.mrf.mxu1 }
 0x48a   : > { %v7103_v4 = vadd.f32 %v7102_v29, %v7101_v35  ;;  %v6608_v23 = vpop.f32.mrf.mxu0 }
 0x48b   : > { %v6965_v47 = vmax.f32 %v6933_v44, 0.0  ;;  %v6664_v61 = vadd.f32 %v6603_v45, %v6247_v22 }
 0x48c   : > { %8522 = vmatmul.msk.bf16.gmra.mxu1 %vm898_vm1, %v6719_v63 }
 0x48d   : > { %v6997_v41 = vmax.f32 %v6965_v47, 1e-06  ;;  %v6902_v26 = vadd.f32 %v6870_v25, %v6664_v61  ;;  %8396 = vmatmul.msk.bf16.gmra.mxu3 %vm898_vm1, %v8696_v21 }
 0x48e   : > { %v5846_v49 = vpop.f32.mrf.mxu2 }
 0x48f   : > { %v7029_v32 = vmul.f32 %v6997_v41, %v6997_v41  ;;  %v6934_v2 = vadd.f32 %v10757_v7, %v6902_v26  ;;  %v5904_v17 = vmul.f32 %v9575_v51, %v5846_v49 }
 0x490   : > { %v6157_v34 = vpop.f32.mrf.mxu3 }
 0x491   : > { %v7061_v54 = vmul.f32 %v7029_v32, %v6997_v41  ;;  %v6966_v8 = vmax.f32 %v6934_v2, 0.0  ;;  %v6216_v36 = vmul.f32 %v9335_v24, %v6157_v34  ;;  %v6814_v12 = vpop.f32.mrf.mxu1  ;;  %v5936_v56 = vadd.f32 %v5904_v17, %v10550_v37 }
 0x492   : > { %v6611_v10 = vpop.f32.mrf.mxu0  ;;  %v6872_v37 = vmul.f32 %v9575_v51, %v6814_v12 }
 0x493   : > { %v7104_v45 = vsel %vm3900_vm10, %v7061_v54, 0.0  ;;  %v6998_v52 = vmax.f32 %v6966_v8, 1e-06  ;;  %v6248_v50 = vadd.f32 %v6216_v36, %v5935_v27 }
 0x494   : > { %v7105_v42 = vadd.f32 %v7104_v45, %v7103_v4 }
 0x495   : > { %v7030_v3 = vmul.f32 %v6998_v52, %v6998_v52  ;;  %v6665_v40 = vadd.f32 %v6606_v39, %v6248_v50 }
 0x496   : > { %v5849_v38 = vpop.f32.mrf.mxu2 }
 0x497   : > { %v7062_v62 = vmul.f32 %v7030_v3, %v6998_v52  ;;  %v6903_v58 = vadd.f32 %v6812_v16, %v6665_v40  ;;  %v5937_v35 = vadd.f32 %v5849_v38, %v10557_v33 }
 0x498   : > { %v6159_v1 = vpop.f32.mrf.mxu3 }
 0x499   : > { %v7106_v13 = vsel %vm3900_vm10, %v7062_v62, 0.0  ;;  %v6935_v24 = vadd.f32 %v10757_v7, %v6903_v58  ;;  %v6249_v30 = vadd.f32 %v6159_v1, %v5936_v56  ;;  %v6817_v43 = vpop.f32.mrf.mxu1 }
 0x49a   : > { %v7107_v15 = vadd.f32 %v7106_v13, %v7105_v42  ;;  %v6613_v57 = vpop.f32.mrf.mxu0 }
 0x49b   : > { %v6967_v46 = vmax.f32 %v6935_v24, 0.0  ;;  %v6666_v0 = vadd.f32 %v6608_v23, %v6249_v30 }
 0x49d   : > { %v6999_v18 = vmax.f32 %v6967_v46, 1e-06  ;;  %v6904_v39 = vadd.f32 %v6872_v37, %v6666_v0 }
 0x49e   : > { %v5851_v44 = vpop.f32.mrf.mxu2 }
 0x49f   : > { %v7031_v60 = vmul.f32 %v6999_v18, %v6999_v18  ;;  %v6936_v63 = vadd.f32 %v10757_v7, %v6904_v39  ;;  %v5906_v33 = vmul.f32 %v9602_v31, %v5851_v44 }
 0x4a0   : > { %v6162_v29 = vpop.f32.mrf.mxu3 }
 0x4a1   : > { %v7063_v22 = vmul.f32 %v7031_v60, %v6999_v18  ;;  %v6968_v27 = vmax.f32 %v6936_v63, 0.0  ;;  %v6218_v16 = vmul.f32 %v9122_v5, %v6162_v29  ;;  %v6819_v21 = vpop.f32.mrf.mxu1  ;;  %v5938_v23 = vadd.f32 %v5906_v33, %v10574_v53  ;;  %v11277_v29 = vld [vmem:[#allocation29_spill] sm:$0xff] }
 0x4a2   : > { %v6616_v4 = vpop.f32.mrf.mxu0  ;;  %v6874_v53 = vmul.f32 %v9602_v31, %v6819_v21 }
 0x4a3   : > { %v7108_v47 = vsel %vm3900_vm10, %v7063_v22, 0.0  ;;  %v7000_v25 = vmax.f32 %v6968_v27, 1e-06  ;;  %v6250_v51 = vadd.f32 %v6218_v16, %v5937_v35 }
 0x4a4   : > { %v7109_v61 = vadd.f32 %v7108_v47, %v7107_v15 }
 0x4a5   : > { %v7032_v41 = vmul.f32 %v7000_v25, %v7000_v25  ;;  %v6667_v26 = vadd.f32 %v6611_v10, %v6250_v51 }
 0x4a6   : > { %v5854_v49 = vpop.f32.mrf.mxu2 }
 0x4a7   : > { %v7064_v32 = vmul.f32 %v7032_v41, %v7000_v25  ;;  %v6905_v2 = vadd.f32 %v6817_v43, %v6667_v26  ;;  %v5939_v36 = vadd.f32 %v5854_v49, %v10581_v28 }
 0x4a8   : > { %v6164_v34 = vpop.f32.mrf.mxu3 }
 0x4a9   : > { %v7110_v54 = vsel %vm3900_vm10, %v7064_v32, 0.0  ;;  %v6937_v5 = vadd.f32 %v10757_v7, %v6905_v2  ;;  %v6251_v8 = vadd.f32 %v6164_v34, %v5938_v23  ;;  %v6822_v17 = vpop.f32.mrf.mxu1  ;;  %v11278_v32 = vld [vmem:[#allocation5_spill] sm:$0xff] }
 0x4aa   : > { %v7111_v12 = vadd.f32 %v7110_v54, %v7109_v61  ;;  %v6618_v45 = vpop.f32.mrf.mxu0 }
 0x4ab   : > { %v6969_v52 = vmax.f32 %v6937_v5, 0.0  ;;  %v6668_v50 = vadd.f32 %v6613_v57, %v6251_v8 }
 0x4ad   : > { %v7001_v56 = vmax.f32 %v6969_v52, 1e-06  ;;  %v6906_v10 = vadd.f32 %v6874_v53, %v6668_v50  ;;  %v11280_v50 = vld [vmem:[#allocation31_spill] sm:$0xff] }
 0x4ae   : > { %v5856_v62 = vpop.f32.mrf.mxu2 }
 0x4af   : > { %v7033_v42 = vmul.f32 %v7001_v56, %v7001_v56  ;;  %v6938_v3 = vadd.f32 %v10757_v7, %v6906_v10  ;;  %v5908_v28 = vmul.f32 %v11241_v55, %v5856_v62 }
 0x4b0   : > { %v6167_v40 = vpop.f32.mrf.mxu3 }
 0x4b1   : > { %v7065_v58 = vmul.f32 %v7033_v42, %v7001_v56  ;;  %v6970_v1 = vmax.f32 %v6938_v3, 0.0  ;;  %v6220_v38 = vmul.f32 %v9157_v59, %v6167_v40  ;;  %v6824_v13 = vpop.f32.mrf.mxu1  ;;  %v5940_v43 = vadd.f32 %v5908_v28, %v10598_v48 }
 0x4b2   : > { %v6621_v24 = vpop.f32.mrf.mxu0  ;;  %v6876_v48 = vmul.f32 %v11241_v55, %v6824_v13 }
 0x4b3   : > { %v7112_v30 = vsel %vm3900_vm10, %v7065_v58, 0.0  ;;  %v7002_v35 = vmax.f32 %v6970_v1, 1e-06  ;;  %v6252_v31 = vadd.f32 %v6220_v38, %v5939_v36  ;;  %v11279_v36 = vld [vmem:[#allocation34_spill] sm:$0xff] }
 0x4b4   : > { %v7113_v15 = vadd.f32 %v7112_v30, %v7111_v12 }
 0x4b5   : > { %v7034_v57 = vmul.f32 %v7002_v35, %v7002_v35  ;;  %v6669_v46 = vadd.f32 %v6616_v4, %v6252_v31 }
 0x4b6   : > { %v5859_v39 = vpop.f32.mrf.mxu2 }
 0x4b7   : > { %v7066_v37 = vmul.f32 %v7034_v57, %v7002_v35  ;;  %v6907_v0 = vadd.f32 %v6822_v17, %v6669_v46  ;;  %v5941_v44 = vadd.f32 %v5859_v39, %v11277_v29  ;;  %v11282_v39 = vld [vmem:[#allocation8_spill] sm:$0xff] }
 0x4b8   : > { %v6169_v18 = vpop.f32.mrf.mxu3 }
 0x4b9   : > { %v7114_v60 = vsel %vm3900_vm10, %v7066_v37, 0.0  ;;  %v6939_v59 = vadd.f32 %v10757_v7, %v6907_v0  ;;  %v6253_v63 = vadd.f32 %v6169_v18, %v5940_v43  ;;  %v6827_v22 = vpop.f32.mrf.mxu1  ;;  %v11281_v0 = vld [vmem:[#allocation39_spill] sm:$0xff] }
 0x4ba   : > { %v7115_v27 = vadd.f32 %v7114_v60, %v7113_v15  ;;  %v6623_v16 = vpop.f32.mrf.mxu0 }
 0x4bb   : > { %v6971_v33 = vmax.f32 %v6939_v59, 0.0  ;;  %v6670_v21 = vadd.f32 %v6618_v45, %v6253_v63 }
 0x4bd   : > { %v7003_v47 = vmax.f32 %v6971_v33, 1e-06  ;;  %v6908_v4 = vadd.f32 %v6876_v48, %v6670_v21 }
 0x4be   : > { %v5861_v61 = vpop.f32.mrf.mxu2 }
 0x4bf   : > { %v7035_v25 = vmul.f32 %v7003_v47, %v7003_v47  ;;  %v6940_v51 = vadd.f32 %v10757_v7, %v6908_v4  ;;  %v5910_v55 = vmul.f32 %v11279_v36, %v5861_v61 }
 0x4c0   : > { %v6172_v23 = vpop.f32.mrf.mxu3 }
 0x4c1   : > { %v7067_v41 = vmul.f32 %v7035_v25, %v7003_v47  ;;  %v6972_v26 = vmax.f32 %v6940_v51, 0.0  ;;  %v6222_v2 = vmul.f32 %v11278_v32, %v6172_v23  ;;  %v6829_v34 = vpop.f32.mrf.mxu1  ;;  %v5942_v56 = vadd.f32 %v5910_v55, %v11280_v50  ;;  %v11284_v25 = vld [vmem:[#allocation32_spill] sm:$0xff] }
 0x4c2   : > { %v6626_v49 = vpop.f32.mrf.mxu0  ;;  %v6878_v13 = vmul.f32 %v11279_v36, %v6829_v34 }
 0x4c3   : > { %v7116_v54 = vsel %vm3900_vm10, %v7067_v41, 0.0  ;;  %v7004_v5 = vmax.f32 %v6972_v26, 1e-06  ;;  %v6254_v8 = vadd.f32 %v6222_v2, %v5941_v44 }
 0x4c4   : > { %v7117_v17 = vadd.f32 %v7116_v54, %v7115_v27 }
 0x4c5   : > { %v7036_v12 = vmul.f32 %v7004_v5, %v7004_v5  ;;  %v6671_v45 = vadd.f32 %v6621_v24, %v6254_v8 }
 0x4c6   : > { %v5864_v42 = vpop.f32.mrf.mxu2 }
 0x4c7   : > { %v7068_v52 = vmul.f32 %v7036_v12, %v7004_v5  ;;  %v6909_v53 = vadd.f32 %v6827_v22, %v6671_v45  ;;  %v5943_v18 = vadd.f32 %v5864_v42, %v11281_v0  ;;  %v11283_v22 = vld [vmem:[#allocation35_spill] sm:$0xff]  ;;  %v11286_v42 = vld [vmem:[#allocation12_spill] sm:$0xff] }
 0x4c8   : > { %v6174_v10 = vpop.f32.mrf.mxu3 }
 0x4c9   : > { %v7118_v3 = vsel %vm3900_vm10, %v7068_v52, 0.0  ;;  %v6941_v40 = vadd.f32 %v10757_v7, %v6909_v53  ;;  %v6255_v62 = vadd.f32 %v6174_v10, %v5942_v56  ;;  %v6832_v58 = vpop.f32.mrf.mxu1  ;;  %v11285_v56 = vld [vmem:[#allocation40_spill] sm:$0xff] }
 0x4ca   : > { %v7119_v1 = vadd.f32 %v7118_v3, %v7117_v17  ;;  %v6628_v38 = vpop.f32.mrf.mxu0 }
 0x4cb   : > { %v6973_v28 = vmax.f32 %v6941_v40, 0.0  ;;  %v6672_v30 = vadd.f32 %v6623_v16, %v6255_v62 }
 0x4cd   : > { %v7005_v35 = vmax.f32 %v6973_v28, 1e-06  ;;  %v6910_v24 = vadd.f32 %v6878_v13, %v6672_v30 }
 0x4ce   : > { %v5866_v57 = vpop.f32.mrf.mxu2 }
 0x4cf   : > { %v7037_v31 = vmul.f32 %v7005_v35, %v7005_v35  ;;  %v6942_v43 = vadd.f32 %v10757_v7, %v6910_v24  ;;  %v5912_v27 = vmul.f32 %v11283_v22, %v5866_v57 }
 0x4d0   : > { %v6177_v15 = vpop.f32.mrf.mxu3 }
 0x4d1   : > { %v7069_v46 = vmul.f32 %v7037_v31, %v7005_v35  ;;  %v6974_v37 = vmax.f32 %v6942_v43, 0.0  ;;  %v6224_v60 = vmul.f32 %v11282_v39, %v6177_v15  ;;  %v6834_v59 = vpop.f32.mrf.mxu1  ;;  %v5944_v51 = vadd.f32 %v5912_v27, %v11284_v25  ;;  %v11289_v25 = vld [vmem:[#allocation16_spill] sm:$0xff] }
 0x4d2   : > { %v6631_v16 = vpop.f32.mrf.mxu0  ;;  %v6880_v5 = vmul.f32 %v11283_v22, %v6834_v59 }
 0x4d3   : > { %v7120_v63 = vsel %vm3900_vm10, %v7069_v46, 0.0  ;;  %v7006_v29 = vmax.f32 %v6974_v37, 1e-06  ;;  %v6256_v44 = vadd.f32 %v6224_v60, %v5943_v18 }
 0x4d4   : > { %v7121_v33 = vadd.f32 %v7120_v63, %v7119_v1 }
 0x4d5   : > { %v7038_v48 = vmul.f32 %v7006_v29, %v7006_v29  ;;  %v6673_v21 = vadd.f32 %v6626_v49, %v6256_v44 }
 0x4d6   : > { %v5869_v61 = vpop.f32.mrf.mxu2 }
 0x4d7   : > { %v7070_v47 = vmul.f32 %v7038_v48, %v7006_v29  ;;  %v6911_v4 = vadd.f32 %v6832_v58, %v6673_v21  ;;  %v5945_v10 = vadd.f32 %v5869_v61, %v11285_v56 }
 0x4d8   : > { %v6179_v23 = vpop.f32.mrf.mxu3 }
 0x4d9   : > { %v7122_v41 = vsel %vm3900_vm10, %v7070_v47, 0.0  ;;  %v6943_v26 = vadd.f32 %v10757_v7, %v6911_v4  ;;  %v6257_v32 = vadd.f32 %v6179_v23, %v5944_v51  ;;  %v6837_v2 = vpop.f32.mrf.mxu1  ;;  %v11288_v47 = vld [vmem:[#allocation41_spill] sm:$0xff] }
 0x4da   : > { %v7123_v34 = vadd.f32 %v7122_v41, %v7121_v33  ;;  %v6633_v49 = vpop.f32.mrf.mxu0 }
 0x4db   : > { %v6975_v54 = vmax.f32 %v6943_v26, 0.0  ;;  %v6674_v8 = vadd.f32 %v6628_v38, %v6257_v32  ;;  %v11287_v38 = vld [vmem:[#allocation36_spill] sm:$0xff] }
 0x4dd   : > { %v7007_v36 = vmax.f32 %v6975_v54, 1e-06  ;;  %v6912_v55 = vadd.f32 %v6880_v5, %v6674_v8 }
 0x4de   : > { %v5871_v52 = vpop.f32.mrf.mxu2 }
 0x4df   : > { %v7039_v17 = vmul.f32 %v7007_v36, %v7007_v36  ;;  %v6944_v12 = vadd.f32 %v10757_v7, %v6912_v55  ;;  %v5914_v28 = vmul.f32 %v11287_v38, %v5871_v52 }
 0x4e0   : > { %v6182_v45 = vpop.f32.mrf.mxu3 }
 0x4e1   : > { %v7071_v53 = vmul.f32 %v7039_v17, %v7007_v36  ;;  %v6976_v50 = vmax.f32 %v6944_v12, 0.0  ;;  %v6226_v3 = vmul.f32 %v11286_v42, %v6182_v45  ;;  %v6839_v40 = vpop.f32.mrf.mxu1  ;;  %v5946_v43 = vadd.f32 %v5914_v28, %v10670_v19  ;;  %v10988_v45 = vld [vmem:[%s11035_s2] ss:$0 sm:$0xff] }
 0x4e2   : > { %v6636_v15 = vpop.f32.mrf.mxu0  ;;  %v6882_v63 = vmul.f32 %v11287_v38, %v6839_v40 }
 0x4e3   : > { %v7124_v62 = vsel %vm3900_vm10, %v7071_v53, 0.0  ;;  %v7008_v58 = vmax.f32 %v6976_v50, 1e-06  ;;  %v6258_v1 = vadd.f32 %v6226_v3, %v5945_v10 }
 0x4e4   : > { %v7125_v13 = vadd.f32 %v7124_v62, %v7123_v34 }
 0x4e5   : > { %v7040_v30 = vmul.f32 %v7008_v58, %v7008_v58  ;;  %v6675_v35 = vadd.f32 %v6631_v16, %v6258_v1 }
 0x4e6   : > { %v5874_v46 = vpop.f32.mrf.mxu2 }
 0x4e7   : > { %v7072_v24 = vmul.f32 %v7040_v30, %v7008_v58  ;;  %v6913_v31 = vadd.f32 %v6837_v2, %v6675_v35  ;;  %v5947_v4 = vadd.f32 %v5874_v46, %v11288_v47  ;;  %v11290_v2 = vld [vmem:[#allocation37_spill] sm:$0xff] }
 0x4e8   : > { %v6184_v57 = vpop.f32.mrf.mxu3  ;;  %v11291_v35 = vld [vmem:[#allocation33_spill] sm:$0xff] }
 0x4e9   : > { %v7126_v37 = vsel %vm3900_vm10, %v7072_v24, 0.0  ;;  %v6945_v0 = vadd.f32 %v10757_v7, %v6913_v31  ;;  %v6259_v18 = vadd.f32 %v6184_v57, %v5946_v43  ;;  %v6842_v39 = vpop.f32.mrf.mxu1  ;;  %v11292_v31 = vld [vmem:[#allocation20_spill] sm:$0xff] }
 0x4ea   : > { %v7127_v60 = vadd.f32 %v7126_v37, %v7125_v13  ;;  %v6638_v23 = vpop.f32.mrf.mxu0  ;;  %v11293_v37 = vld [vmem:[#allocation38_spill] sm:$0xff] }
 0x4eb   : > { %v6977_v59 = vmax.f32 %v6945_v0, 0.0  ;;  %v6676_v29 = vadd.f32 %v6633_v49, %v6259_v18 }
 0x4ed   : > { %v7009_v44 = vmax.f32 %v6977_v59, 1e-06  ;;  %v6914_v22 = vadd.f32 %v6882_v63, %v6676_v29 }
 0x4ee   : > { %v5876_v33 = vpop.f32.mrf.mxu2 }
 0x4ef   : > { %v7041_v27 = vmul.f32 %v7009_v44, %v7009_v44  ;;  %v6946_v16 = vadd.f32 %v10757_v7, %v6914_v22  ;;  %v5916_v34 = vmul.f32 %v11290_v2, %v5876_v33 }
 0x4f0   : > { %v6187_v19 = vpop.f32.mrf.mxu3 }
 0x4f1   : > { %v7073_v48 = vmul.f32 %v7041_v27, %v7009_v44  ;;  %v6978_v21 = vmax.f32 %v6946_v16, 0.0  ;;  %v6228_v51 = vmul.f32 %v11289_v25, %v6187_v19  ;;  %v6844_v61 = vpop.f32.mrf.mxu1  ;;  %v5948_v55 = vadd.f32 %v5916_v34, %v10694_v20 }
 0x4f2   : > { %v6884_v42 = vmul.f32 %v11290_v2, %v6844_v61  ;;  %v6641_v40 = vpop.f32.mrf.mxu0 }
 0x4f3   : > { %v7128_v41 = vsel %vm3900_vm10, %v7073_v48, 0.0  ;;  %v7010_v26 = vmax.f32 %v6978_v21, 1e-06  ;;  %v6260_v32 = vadd.f32 %v6228_v51, %v5947_v4 }
 0x4f4   : > { %v7129_v54 = vadd.f32 %v7128_v41, %v7127_v60 }
 0x4f5   : > { %v7042_v5 = vmul.f32 %v7010_v26, %v7010_v26  ;;  %v6677_v8 = vadd.f32 %v6636_v15, %v6260_v32 }
 0x4f6   : > { %v5879_v17 = vpop.f32.mrf.mxu2 }
 0x4f7   : > { %v7074_v7 = vmul.f32 %v7042_v5, %v7010_v26  ;;  %v6915_v36 = vadd.f32 %v6842_v39, %v6677_v8  ;;  %v5949_v24 = vadd.f32 %v5879_v17, %v11291_v35 }
 0x4f8   : > { %v6189_v49 = vpop.f32.mrf.mxu3 }
 0x4f9   : > { %v7130_v12 = vsel %vm3900_vm10, %v7074_v7, 0.0  ;;  %v6947_v52 = vadd.f32 %v10988_v45, %v6915_v36  ;;  %v6261_v53 = vadd.f32 %v6189_v49, %v5948_v55  ;;  %v6847_v56 = vpop.f32.mrf.mxu1  ;;  %v11294_v49 = vld [vmem:[#allocation24_spill] sm:$0xff] }
 0x4fa   : > { %v7131_v50 = vadd.f32 %v7130_v12, %v7129_v54  ;;  %v6643_v63 = vpop.f32.mrf.mxu0 }
 0x4fb   : > { %v6979_v10 = vmax.f32 %v6947_v52, 0.0  ;;  %v6678_v3 = vadd.f32 %v6638_v23, %v6261_v53 }
 0x4fd   : > { %v7011_v20 = vmax.f32 %v6979_v10, 1e-06  ;;  %v6916_v62 = vadd.f32 %v6884_v42, %v6678_v3 }
 0x4fe   : > { %v5881_v28 = vpop.f32.mrf.mxu2 }
 0x4ff   : > { %v7043_v58 = vmul.f32 %v7011_v20, %v7011_v20  ;;  %v6948_v1 = vadd.f32 %v10988_v45, %v6916_v62  ;;  %v5918_v0 = vmul.f32 %v11293_v37, %v5881_v28 }
 0x500   : > { %v6192_v38 = vpop.f32.mrf.mxu3 }
 0x501   : > { %v7075_v13 = vmul.f32 %v7043_v58, %v7011_v20  ;;  %v6980_v30 = vmax.f32 %v6948_v1, 0.0  ;;  %v6230_v43 = vmul.f32 %v11292_v31, %v6192_v38  ;;  %v6849_v39 = vpop.f32.mrf.mxu1  ;;  %v5950_v22 = vadd.f32 %v5918_v0, %v10718_v14 }
 0x502   : > { %v6886_v4 = vmul.f32 %v11293_v37, %v6849_v39  ;;  %v6646_v32 = vpop.f32.mrf.mxu0 }
 0x503   : > { %v7132_v15 = vsel %vm3900_vm10, %v7075_v13, 0.0  ;;  %v7012_v57 = vmax.f32 %v6980_v30, 1e-06  ;;  %v6262_v46 = vadd.f32 %v6230_v43, %v5949_v24 }
 0x504   : > { %v7133_v18 = vadd.f32 %v7132_v15, %v7131_v50 }
 0x505   : > { %v7044_v60 = vmul.f32 %v7012_v57, %v7012_v57  ;;  %v6679_v59 = vadd.f32 %v6641_v40, %v6262_v46 }
 0x506   : > { %v5884_v16 = vpop.f32.mrf.mxu2 }
 0x507   : > { %v7076_v29 = vmul.f32 %v7044_v60, %v7012_v57  ;;  %v6917_v44 = vadd.f32 %v6847_v56, %v6679_v59  ;;  %v5951_v5 = vadd.f32 %v5884_v16, %v10725_v11 }
 0x508   : > { %v6194_v27 = vpop.f32.mrf.mxu3 }
 0x509   : > { %v7134_v19 = vsel %vm3900_vm10, %v7076_v29, 0.0  ;;  %v6949_v33 = vadd.f32 %v10988_v45, %v6917_v44  ;;  %v6263_v48 = vadd.f32 %v6194_v27, %v5950_v22  ;;  %v6852_v61 = vpop.f32.mrf.mxu1  ;;  %v11295_v44 = vld [vmem:[#allocation22_spill] sm:$0xff] }
 0x50a   : > { %v7135_v21 = vadd.f32 %v7134_v19, %v7133_v18  ;;  %v6648_v62 = vpop.f32.mrf.mxu0 }
 0x50b   : > { %v6981_v47 = vmax.f32 %v6949_v33, 0.0  ;;  %v6680_v25 = vadd.f32 %v6643_v63, %v6263_v48 }
 0x50d   : > { %v7013_v51 = vmax.f32 %v6981_v47, 1e-06  ;;  %v6918_v23 = vadd.f32 %v6886_v4, %v6680_v25 }
 0x50e   : > { %v5886_v2 = vpop.f32.mrf.mxu2 }
 0x50f   : > { %v7045_v41 = vmul.f32 %v7013_v51, %v7013_v51  ;;  %v6950_v26 = vadd.f32 %v10988_v45, %v6918_v23  ;;  %v5920_v17 = vmul.f32 %v11294_v49, %v5886_v2 }
 0x510   : > { %v6197_v14 = vpop.f32.mrf.mxu3 }
 0x511   : > { %v7077_v34 = vmul.f32 %v7045_v41, %v7013_v51  ;;  %v6982_v54 = vmax.f32 %v6950_v26, 0.0  ;;  %v6232_v8 = vmul.f32 %v11264_v9, %v6197_v14  ;;  %v5952_v10 = vadd.f32 %v5920_v17, %v10740_v6  ;;  %v6854_v42 = vpop.f32.mrf.mxu1 }
 0x512   : > { %v6888_v1 = vmul.f32 %v11294_v49, %v6854_v42 }
 0x513   : > { %v7136_v7 = vsel %vm3900_vm10, %v7077_v34, 0.0  ;;  %v7014_v36 = vmax.f32 %v6982_v54, 1e-06  ;;  %v6264_v55 = vadd.f32 %v6232_v8, %v5951_v5  ;;  %v3982_v5 = vpop.xlane.xlu0 %3981 }
 0x514   : > { %v7137_v12 = vadd.f32 %v7136_v7, %v7135_v21  ;;  %vm3990_vm6 = vcmp.eq.f32.partialorder %v3982_v5, inf  ;;  %vm3992_vm7 = vcmp.eq.f32.partialorder %v3982_v5, 0.0 }
 0x515   : > { %v7046_v52 = vmul.f32 %v7014_v36, %v7014_v36  ;;  %v6681_v53 = vadd.f32 %v6646_v32, %v6264_v55 }
 0x517   : > { %v7078_v50 = vmul.f32 %v7046_v52, %v7014_v36  ;;  %v6919_v56 = vadd.f32 %v6852_v61, %v6681_v53  ;;  %v3993_v53 = vand.u32 2147483648, %v3982_v5 }
 0x518   : > { %v6199_v3 = vpop.f32.mrf.mxu3 }
 0x519   : > { %v7138_v40 = vsel %vm3900_vm10, %v7078_v50, 0.0  ;;  %v6951_v11 = vadd.f32 %v10988_v45, %v6919_v56  ;;  %v6265_v9 = vadd.f32 %v6199_v3, %v5952_v10 }
 0x51a   : > { %v7139_v20 = vadd.f32 %v7138_v40, %v7137_v12 }
 0x51b   : > { %v6983_v58 = vmax.f32 %v6951_v11, 0.0  ;;  %v6682_v38 = vadd.f32 %v6648_v62, %v6265_v9 }
 0x51d   : > { %v7015_v28 = vmax.f32 %v6983_v58, 1e-06  ;;  %v6920_v13 = vadd.f32 %v6888_v1, %v6682_v38 }
 0x51f   : > { %v7047_v30 = vmul.f32 %v7015_v28, %v7015_v28  ;;  %v6952_v35 = vadd.f32 %v10988_v45, %v6920_v13 }
 0x521   : > { %v7079_v24 = vmul.f32 %v7047_v30, %v7015_v28  ;;  %v6984_v6 = vmax.f32 %v6952_v35, 0.0 }
 0x523   : > { %v7140_v31 = vsel %vm3900_vm10, %v7079_v24, 0.0  ;;  %v7016_v43 = vmax.f32 %v6984_v6, 1e-06 }
 0x524   : > { %v7141_v15 = vadd.f32 %v7140_v31, %v7139_v20 }
 0x525   : > { %v7048_v57 = vmul.f32 %v7016_v43, %v7016_v43 }
 0x527   : > { %v7080_v46 = vmul.f32 %v7048_v57, %v7016_v43 }
 0x529   : > { %v7142_v37 = vsel %vm3900_vm10, %v7080_v46, 0.0 }
 0x52a   : > { %v7143_v0 = vadd.f32 %v7142_v37, %v7141_v15 }
 0x52c   : > { %v7144_v18 = vrot.slane %v7143_v0, 4 }
 0x52e   : > { %v7145_v39 = vadd.f32 %v7144_v18, %v7143_v0 }
 0x530   : > { %v7146_v60 = vrot.slane %v7145_v39, 2 }
 0x532   : > { %v7147_v59 = vadd.f32 %v7146_v60, %v7145_v39 }
 0x534   : > { %v7148_v63 = vrot.slane %v7147_v59, 1 }
 0x536   : > { %v7149_v29 = vadd.f32 %v7148_v63, %v7147_v59  ;;  %v11296_v63 = vld [vmem:[#allocation2_spill] sm:$0xff] }
 0x537   : > { %vm4011_vm15 = vcmp.eq.s32.totalorder %v11296_v63, 0  ;;  %vm7184_vm0 = vcmp.eq.s32.totalorder %v11296_v63, 1 }
 0x538   : > { %v7150_v22 = vmul.f32 %v7149_v29, %v11295_v44 }
 0x53a   : > { %v8764_v45 = vand.u32 2147483647, %v7150_v22  ;;  %v8781_v61 = vand.u32 2147483648, %v7150_v22  ;;  %vm8763_vm3 = vcmp.lt.f32.partialorder %v7150_v22, 0.0  ;;  %vm8762_vm4 = vcmp.eq.f32.partialorder %v7150_v22, 0.0 }
 0x53c   : > { %8803 = vlog2.f32 %v8764_v45  ;;  %vm8778_vm1 = vweird.f32 %v8764_v45  ;;  %vm8780_vm2 = vcmp.eq.f32.partialorder %v8764_v45, 0.0  ;;  %vm8765_vm5 = vcmp.eq.f32.partialorder %v8764_v45, inf }
 0x542   : > { %v8804_v27 = vpop.eup %8803 }
 0x543   : > { %v8768_v16 = vmul.f32 -0.33333334, %v8804_v27 }
 0x545   : > { %8805 = vpow2.f32 %v8768_v16  ;;  %v11298_v16 = vmov 0.0  }
 0x546   : > { %8807 = vrsqrt.f32 %v3982_v5 }
 0x54b   : > { %v8806_v19 = vpop.eup %8805 }
 0x54c   : > { %v8770_v33 = vmul.f32 %v8806_v19, %v8806_v19  ;;  %v8808_v8 = vpop.eup %8807 }
 0x54d   : > { %v3984_v7 = vmul.f32 %v8808_v8, %v3982_v5 }
 0x54e   : > { %v8771_v48 = vmul.f32 %v8770_v33, %v8764_v45 }
 0x54f   : > { %v3985_v36 = vmul.f32 %v8808_v8, %v3984_v7 }
 0x550   : > { %v8772_v21 = vmul.f32 %v8771_v48, %v8770_v33  ;;  %v8523_v33 = vsel %vm7184_vm0, 1.0, %v11298_v16 }
 0x551   : > { %v3986_v55 = vmul.f32 0.5, %v3985_v36 }
 0x552   : > { %v8773_v47 = vsub.f32 %v8772_v21, %v8806_v19 }
 0x553   : > { %v3987_v49 = vsub.f32 1.5, %v3986_v55 }
 0x554   : > { %v8774_v4 = vmul.f32 -0.33333334, %v8773_v47 }
 0x555   : > { %v3988_v17 = vmul.f32 %v8808_v8, %v3987_v49 }
 0x556   : > { %v8775_v25 = vadd.f32 %v8806_v19, %v8774_v4  ;;  %v7808_v19 = vsel %vm4011_vm15, 1.0, %v11298_v16 }
 0x557   : > { %v3989_v12 = vmul.f32 %v3988_v17, %v3982_v5 }
 0x558   : > { %v8776_v51 = vmul.f32 %v8775_v25, %v7150_v22 }
 0x559   : > { %v3991_v52 = vsel %vm3990_vm6, %v3982_v5, %v3989_v12 }
 0x55a   : > { %v8777_v23 = vmul.f32 %v8776_v51, %v8775_v25  ;;  %v3994_v56 = vsel %vm3992_vm7, %v3993_v53, %v3991_v52 }
 0x55b   : > { %v3995_v10 = vmax.f32 %v3994_v56, 1e-12 }
 0x55c   : > { %v8779_v41 = vsel %vm8778_vm1, %v7150_v22, %v8777_v23  ;;  %v11297_v22 = vld [vmem:[#allocation25_spill] sm:$0xff] }
 0x55d   : > { %v8782_v26 = vsel %vm8780_vm2, %v8781_v61, %v8779_v41  ;;  %v4007_v43 = vand.u32 2147483648, %v3995_v10  ;;  %vm4001_vm11 = vweird.f32 %v3995_v10  ;;  %v4005_v15 = vand.u32 2147483647, %v3995_v10 }
 0x55e   : > { %v8783_v32 = vsel %vm8763_vm3, nan, %v8782_v26 }
 0x55f   : > { %v8784_v14 = vsel %vm8762_vm4, 0.0, %v8783_v32  ;;  %v4008_v0 = vor.u32 1.1754944e-38, %v4007_v43  ;;  %vm4006_vm13 = vcmp.eq.f32.partialorder %v4005_v15, 8.507059e+37  ;;  %vm7189_vm4 = vcmask 254976  }
 0x560   : > { %v11014_v2 = vsel %vm8765_vm5, inf, %v8784_v14 }
 0x561   : > { %v7152_v34 = vmul.f32 %v11014_v2, %v11014_v2 }
 0x563   : > { %v7153_v54 = vsel %vm3900_vm10, %v7152_v34, 0.0 }
 0x564   : > { %7154 = vadd.xlane.f32.xlu0 %v7153_v54 }
 0x5d7   : > { %v7155_v50 = vpop.xlane.xlu0 %7154 }
 0x5d8   : > { %8809 = vrsqrt.f32 %v7155_v50  ;;  %vm7163_vm8 = vcmp.eq.f32.partialorder %v7155_v50, inf  ;;  %v7166_v38 = vand.u32 2147483648, %v7155_v50  ;;  %vm7165_vm9 = vcmp.eq.f32.partialorder %v7155_v50, 0.0 }
 0x5d9   : > { %8811 = vrcp.f32 %v3995_v10 }
 0x5de   : > { %v8810_v42 = vpop.eup %8809 }
 0x5df   : > { %v7157_v3 = vmul.f32 %v8810_v42, %v7155_v50  ;;  %v8812_v9 = vpop.eup %8811 }
 0x5e0   : > { %v3997_v58 = vmul.f32 %v8812_v9, %v3995_v10  ;;  %vm4002_vm10 = vweird.f32 %v8812_v9 }
 0x5e1   : > { %v7158_v40 = vmul.f32 %v8810_v42, %v7157_v3  ;;  %vm4003_vm12 = vmor %vm4001_vm11, %vm4002_vm10 }
 0x5e2   : > { %v3998_v13 = vsub.f32 1.0, %v3997_v58 }
 0x5e3   : > { %v7159_v11 = vmul.f32 0.5, %v7158_v40 }
 0x5e4   : > { %v3999_v24 = vmul.f32 %v8812_v9, %v3998_v13 }
 0x5e5   : > { %v7160_v20 = vsub.f32 1.5, %v7159_v11 }
 0x5e6   : > { %v4000_v6 = vadd.f32 %v8812_v9, %v3999_v24 }
 0x5e7   : > { %v7161_v62 = vmul.f32 %v8810_v42, %v7160_v20 }
 0x5e8   : > { %v4004_v46 = vsel %vm4003_vm12, %v8812_v9, %v4000_v6 }
 0x5e9   : > { %v7162_v1 = vmul.f32 %v7161_v62, %v7155_v50  ;;  %v4009_v59 = vsel %vm4006_vm13, %v4008_v0, %v4004_v46 }
 0x5ea   : > { %v4010_v45 = vmul.f32 %v11297_v22, %v4009_v59 }
 0x5eb   : > { %v7164_v28 = vsel %vm7163_vm8, %v7155_v50, %v7162_v1 }
 0x5ec   : > { %v7167_v30 = vsel %vm7165_vm9, %v7166_v38, %v7164_v28  ;;  %v4014_v47 = vmul.f32 %v7808_v19, %v4010_v45 }
 0x5ed   : > { %v7168_v35 = vmax.f32 %v7167_v30, 1e-12 }
 0x5ef   : > { %8813 = vrcp.f32 %v7168_v35  ;;  %v7180_v18 = vand.u32 2147483648, %v7168_v35  ;;  %v7178_v60 = vand.u32 2147483647, %v7168_v35  ;;  %vm7174_vm1 = vweird.f32 %v7168_v35 }
 0x5f1   : > { %v7181_v44 = vor.u32 1.1754944e-38, %v7180_v18  ;;  %vm7179_vm3 = vcmp.eq.f32.partialorder %v7178_v60, 8.507059e+37 }
 0x5f5   : > { %v8814_v31 = vpop.eup %8813 }
 0x5f6   : > { %v7170_v57 = vmul.f32 %v8814_v31, %v7168_v35  ;;  %vm7175_vm14 = vweird.f32 %v8814_v31 }
 0x5f7   : > { %vm7176_vm2 = vmor %vm7174_vm1, %vm7175_vm14 }
 0x5f8   : > { %v7171_v37 = vsub.f32 1.0, %v7170_v57 }
 0x5fa   : > { %v7172_v39 = vmul.f32 %v8814_v31, %v7171_v37 }
 0x5fc   : > { %v7173_v29 = vadd.f32 %v8814_v31, %v7172_v39 }
 0x5fe   : > { %v7177_v27 = vsel %vm7176_vm2, %v8814_v31, %v7173_v29 }
 0x5ff   : > { %v7182_v48 = vsel %vm7179_vm3, %v7181_v44, %v7177_v27 }
 0x600   : > { %v7183_v21 = vmul.f32 %v11014_v2, %v7182_v48 }
 0x602   : > { %v7187_v4 = vmul.f32 %v8523_v33, %v7183_v21 }
 0x604   : > { %v7188_v25 = vadd.f32 %v7187_v4, %v4014_v47 }
 0x606   : > { %7190 = vst.msk [vmem:[%s173_s23] sm:$0x3] %vm7189_vm4, %v7188_v25 }
 0x607 PF: > { %s13_s12 = sadd.s32 1, %s8852_s12  }
 0x608   : > { %p10_p5 = scmp.ge.s32.totalorder %s13_s12, 4  }
 0x60a   :  { %12 = sbr.rel (!%p10_p5) target bundleno = 1 (0x1), region = 71 }

</bundles_post_ra>
